<compile_context>
chip_gen: v5e
topology: v5e:2x2
jax: 0.10.0
libtpu: 0.0.40
codegen_flags: <defaults>
</compile_context>

<pallas_src>
import functools
import numpy as np

import jax
import jax.numpy as jnp
from jax import lax
from jax.experimental import pallas as pl
from jax.experimental.pallas import tpu as pltpu


MIN_LOGITS = -10000.0  # Transformer.MIN_LOGITS


# --------------------------------------------------------------------------
# helpers
# --------------------------------------------------------------------------

def _round_up(x, m):
    return (x + m - 1) // m * m


def _pick_block(dim, tile):
    """(padded_dim, block): full-dim block if dim <= tile, else `tile`."""
    if dim <= tile:
        return dim, dim
    return _round_up(dim, tile), tile


@functools.lru_cache(maxsize=None)
def _vmem_limit_bytes():
    # Explicit scoped-VMEM limit (defaults are only 16/32 MiB): ~7/8 of the
    # physical capacity, capped at 100 MiB (v5e/v6e 128 MiB -> 100, v7x 64 -> 56).
    try:
        cap = pltpu.get_tpu_info().vmem_capacity_bytes
    except Exception:
        cap = 64 * 1024 * 1024
    return int(min(100 * 1024 * 1024, cap * 7 // 8))


@functools.lru_cache(maxsize=None)
def _linear_tiles():
    try:
        kind = jax.devices()[0].device_kind.lower()
    except Exception:
        kind = ""
    if "v6" in kind:            # 128 MiB VMEM + 918 TF/s MXU: amortize per-step overhead
        return 512, 512, 1024
    return 256, 256, 512        # v5e (128-wide MXU) / v7x (64 MiB VMEM)


def _params(*semantics):
    return pltpu.CompilerParams(dimension_semantics=semantics,
                                vmem_limit_bytes=_vmem_limit_bytes())


# --------------------------------------------------------------------------
# tiled linear:  out = [residual +] x @ w + b   (grid over M, N, K)
# --------------------------------------------------------------------------

def _linear_f32_kernel(x_ref, w_ref, b_ref, o_ref):
    # f32 output is resident across k -> accumulate directly into o_ref.
    @pl.when(pl.program_id(2) == 0)
    def _():
        o_ref[...] = jnp.broadcast_to(b_ref[...], o_ref.shape)
    o_ref[...] += jnp.dot(x_ref[...].astype(jnp.bfloat16),       # no-op if bf16
                          w_ref[...].astype(jnp.bfloat16),
                          preferred_element_type=jnp.float32)


def _linear_res_kernel(x_ref, w_ref, b_ref, r_ref, o_ref):
    # fused residual add:  o = residual + x @ w + b
    @pl.when(pl.program_id(2) == 0)
    def _():
        o_ref[...] = r_ref[...] + b_ref[...]
    o_ref[...] += jnp.dot(x_ref[...].astype(jnp.bfloat16),
                          w_ref[...].astype(jnp.bfloat16),
                          preferred_element_type=jnp.float32)


def _linear_bf16_kernel(x_ref, w_ref, b_ref, o_ref, acc_ref):
    # bf16 output (feeds the next matmul) needs an f32 scratch accumulator.
    @pl.when(pl.program_id(2) == 0)
    def _():
        acc_ref[...] = jnp.broadcast_to(b_ref[...], acc_ref.shape)
    acc_ref[...] += jnp.dot(x_ref[...].astype(jnp.bfloat16),
                            w_ref[...].astype(jnp.bfloat16),
                            preferred_element_type=jnp.float32)

    @pl.when(pl.program_id(2) == pl.num_programs(2) - 1)
    def _():
        o_ref[...] = acc_ref[...].astype(o_ref.dtype)


def linear(x, w, b, *, residual=None, out_dtype=jnp.float32,
           tm=None, tn=None, tk=None):
    """x: (M, K), w: (K, N) bf16, b: (N,) f32 -> (M, N) out_dtype."""
    M, K = x.shape
    N = w.shape[1]
    dm, dn, dk = _linear_tiles()
    tm, tn, tk = tm or dm, tn or dn, tk or dk
    Mp, bm = _pick_block(M, tm)
    Np, bn = _pick_block(N, tn)
    Kp, bk = _pick_block(K, tk)
    if (Mp, Kp) != (M, K):
        x = jnp.pad(x, ((0, Mp - M), (0, Kp - K)))
    if (Kp, Np) != (K, N):
        w = jnp.pad(w, ((0, Kp - K), (0, Np - N)))
    b2 = b.reshape(1, N)
    if Np != N:
        b2 = jnp.pad(b2, ((0, 0), (0, Np - N)))

    grid = (Mp // bm, Np // bn, Kp // bk)
    x_spec = pl.BlockSpec((bm, bk), lambda i, j, k: (i, k))
    w_spec = pl.BlockSpec((bk, bn), lambda i, j, k: (k, j))
    b_spec = pl.BlockSpec((1, bn), lambda i, j, k: (0, j))
    o_spec = pl.BlockSpec((bm, bn), lambda i, j, k: (i, j))
    cp = _params("parallel", "parallel", "arbitrary")

    if residual is not None:
        assert out_dtype == jnp.float32
        r = residual
        if (Mp, Np) != (M, N):
            r = jnp.pad(r, ((0, Mp - M), (0, Np - N)))
        out = pl.pallas_call(
            _linear_res_kernel,
            out_shape=jax.ShapeDtypeStruct((Mp, Np), jnp.float32),
            grid=grid,
            in_specs=[x_spec, w_spec, b_spec,
                      pl.BlockSpec((bm, bn), lambda i, j, k: (i, j))],
            out_specs=o_spec, compiler_params=cp,
        )(x, w, b2, r)
    elif out_dtype == jnp.float32:
        out = pl.pallas_call(
            _linear_f32_kernel,
            out_shape=jax.ShapeDtypeStruct((Mp, Np), jnp.float32),
            grid=grid, in_specs=[x_spec, w_spec, b_spec],
            out_specs=o_spec, compiler_params=cp,
        )(x, w, b2)
    else:
        out = pl.pallas_call(
            _linear_bf16_kernel,
            out_shape=jax.ShapeDtypeStruct((Mp, Np), out_dtype),
            grid=grid, in_specs=[x_spec, w_spec, b_spec], out_specs=o_spec,
            scratch_shapes=[pltpu.VMEM((bm, bn), jnp.float32)],
            compiler_params=cp,
        )(x, w, b2)
    return out[:M, :N] if (Mp, Np) != (M, N) else out


# --------------------------------------------------------------------------
# fused LayerNorm + linear (QKV / Q projections), N-tiled, LN computed once
# --------------------------------------------------------------------------

def _ln_linear_kernel(x_ref, g_ref, be_ref, w_ref, b_ref, o_ref, h_sc, *, eps):
    @pl.when(pl.program_id(1) == 0)
    def _():
        x = x_ref[...]                                       # (bm, D) f32
        mu = jnp.mean(x, axis=-1, keepdims=True)
        var = jnp.mean(jnp.square(x - mu), axis=-1, keepdims=True)
        h = (x - mu) * lax.rsqrt(var + eps) * g_ref[...] + be_ref[...]
        h_sc[...] = h.astype(jnp.bfloat16)                   # reused across N tiles
    o_ref[...] = (jnp.dot(h_sc[...], w_ref[...].astype(jnp.bfloat16),
                          preferred_element_type=jnp.float32)
                  + b_ref[...]).astype(o_ref.dtype)


def ln_linear(x, gamma, beta, w, b, eps, *, out_dtype=jnp.bfloat16,
              tm=256, tn=512):
    """out = LayerNorm(x) @ w + b; x: (M, D) f32."""
    M, D = x.shape
    N = w.shape[1]
    Mp, bm = _pick_block(M, tm)
    Np, bn = _pick_block(N, tn)
    if Mp != M:
        x = jnp.pad(x, ((0, Mp - M), (0, 0)))
    wp = w if Np == N else jnp.pad(w, ((0, 0), (0, Np - N)))
    b2 = b.reshape(1, N)
    if Np != N:
        b2 = jnp.pad(b2, ((0, 0), (0, Np - N)))

    out = pl.pallas_call(
        functools.partial(_ln_linear_kernel, eps=eps),
        out_shape=jax.ShapeDtypeStruct((Mp, Np), out_dtype),
        grid=(Mp // bm, Np // bn),
        in_specs=[
            pl.BlockSpec((bm, D), lambda i, j: (i, 0)),
            pl.BlockSpec((1, D), lambda i, j: (0, 0)),
            pl.BlockSpec((1, D), lambda i, j: (0, 0)),
            pl.BlockSpec((D, bn), lambda i, j: (0, j)),
            pl.BlockSpec((1, bn), lambda i, j: (0, j)),
        ],
        out_specs=pl.BlockSpec((bm, bn), lambda i, j: (i, j)),
        scratch_shapes=[pltpu.VMEM((bm, D), jnp.bfloat16)],
        compiler_params=_params("parallel", "arbitrary"),
    )(x, gamma.reshape(1, D), beta.reshape(1, D), wp, b2)
    return out[:M, :N] if (Mp, Np) != (M, N) else out


# --------------------------------------------------------------------------
# fused LayerNorm + FFN(relu) + residual, Dff-tiled reduction
# --------------------------------------------------------------------------

def _ln_ffn_kernel(x_ref, g_ref, be_ref, w1_ref, b1_ref, w2_ref, b2_ref,
                   o_ref, h_sc, *, eps):
    @pl.when(pl.program_id(1) == 0)
    def _():
        x = x_ref[...]                                       # (bm, D) f32
        mu = jnp.mean(x, axis=-1, keepdims=True)
        var = jnp.mean(jnp.square(x - mu), axis=-1, keepdims=True)
        h_sc[...] = ((x - mu) * lax.rsqrt(var + eps) * g_ref[...]
                     + be_ref[...]).astype(jnp.bfloat16)
        o_ref[...] = x + b2_ref[...]                         # residual + final bias

    u = jnp.dot(h_sc[...], w1_ref[...].astype(jnp.bfloat16),
                preferred_element_type=jnp.float32) + b1_ref[...]
    u = jnp.maximum(u, 0.0)                                  # activation='relu'
    o_ref[...] += jnp.dot(u.astype(jnp.bfloat16),
                          w2_ref[...].astype(jnp.bfloat16),
                          preferred_element_type=jnp.float32)


def ln_ffn_residual(x, gamma, beta, w1, b1, w2, b2, eps, *, tm=256, tff=512):
    """out = x + FFN(LayerNorm(x)); x: (M, D) f32, Dff streamed in chunks."""
    M, D = x.shape
    Dff = w1.shape[1]
    Mp, bm = _pick_block(M, tm)
    Fp, bff = _pick_block(Dff, tff)
    if Mp != M:
        x = jnp.pad(x, ((0, Mp - M), (0, 0)))
    if Fp != Dff:
        w1 = jnp.pad(w1, ((0, 0), (0, Fp - Dff)))
        b1 = jnp.pad(b1, (0, Fp - Dff))
        w2 = jnp.pad(w2, ((0, Fp - Dff), (0, 0)))

    out = pl.pallas_call(
        functools.partial(_ln_ffn_kernel, eps=eps),
        out_shape=jax.ShapeDtypeStruct((Mp, D), jnp.float32),
        grid=(Mp // bm, Fp // bff),
        in_specs=[
            pl.BlockSpec((bm, D), lambda i, j: (i, 0)),
            pl.BlockSpec((1, D), lambda i, j: (0, 0)),
            pl.BlockSpec((1, D), lambda i, j: (0, 0)),
            pl.BlockSpec((D, bff), lambda i, j: (0, j)),
            pl.BlockSpec((1, bff), lambda i, j: (0, j)),
            pl.BlockSpec((bff, D), lambda i, j: (j, 0)),
            pl.BlockSpec((1, D), lambda i, j: (0, 0)),
        ],
        out_specs=pl.BlockSpec((bm, D), lambda i, j: (i, 0)),
        scratch_shapes=[pltpu.VMEM((bm, D), jnp.bfloat16)],
        compiler_params=_params("parallel", "arbitrary"),
    )(x, gamma.reshape(1, D), beta.reshape(1, D),
      w1, b1.reshape(1, Fp), w2, b2.reshape(1, D))
    return out[:M] if Mp != M else out


# --------------------------------------------------------------------------
# multi-head attention: Q-tiled flash-style online softmax, batched heads
# --------------------------------------------------------------------------

def _mha_kernel(kpad_ref, q_ref, k_ref, v_ref, o_ref, m_sc, l_sc, acc_sc, *,
                n_heads, d_v, causal, scale, tq, blk_k):
    q_i = pl.program_id(1)
    kv_i = pl.program_id(2)

    @pl.when(kv_i == 0)
    def _():
        m_sc[...] = jnp.full(m_sc.shape, -jnp.inf, jnp.float32)
        l_sc[...] = jnp.zeros(l_sc.shape, jnp.float32)
        acc_sc[...] = jnp.zeros(acc_sc.shape, jnp.float32)

    def _compute():
        # key-pad (+ causal) mask built in-kernel from the (1, blk_k) pad row
        mask = jnp.broadcast_to(kpad_ref[...] != 0.0, (tq, blk_k))
        if causal:
            row = lax.broadcasted_iota(jnp.int32, (tq, blk_k), 0) + q_i * tq
            col = lax.broadcasted_iota(jnp.int32, (tq, blk_k), 1) + kv_i * blk_k
            mask = jnp.logical_or(mask, col > row)

        # all heads at once: (H, tq, d) x (H, blk_k, d) -> (H, tq, blk_k)
        s = jnp.einsum('hqd,hkd->hqk', q_ref[...], k_ref[...],
                       preferred_element_type=jnp.float32) * scale
        s = jnp.where(mask[None, :, :], MIN_LOGITS, s)       # masked_fill

        m_prev = m_sc[...]                                   # (H, tq, 1)
        m_new = jnp.maximum(m_prev, jnp.max(s, axis=-1, keepdims=True))
        alpha = jnp.exp(m_prev - m_new)
        p = jnp.exp(s - m_new)                               # (H, tq, blk_k) f32
        l_sc[...] = alpha * l_sc[...] + jnp.sum(p, axis=-1, keepdims=True)
        acc_sc[...] = alpha * acc_sc[...] + jnp.einsum(
            'hqk,hkd->hqd', p.astype(jnp.bfloat16), v_ref[...],
            preferred_element_type=jnp.float32)
        m_sc[...] = m_new

    if causal:
        # skip KV blocks entirely above the diagonal of this Q tile
        @pl.when(kv_i * blk_k <= (q_i + 1) * tq - 1)
        def _():
            _compute()
    else:
        _compute()

    @pl.when(kv_i == pl.num_programs(2) - 1)
    def _():
        inv_l = pl.reciprocal(l_sc[...], approx=True)        # (H, tq, 1)
        for h in range(n_heads):                             # lane-dense o block,
            o_ref[:, h * d_v:(h + 1) * d_v] = (              # per-head slice stores
                acc_sc[h] * inv_l[h]).astype(o_ref.dtype)


def attention(q, k, v, kpad, *, causal, scale, tq=256, tk=256):
    """q: (B,H,Lq,dqk) bf16, k: (B,H,Lk,dqk) bf16, v: (B,H,Lk,dv) bf16,
       kpad: (B,1,Lk) f32 (1.0 == padded key).  Returns (B, Lq, H*dv) bf16."""
    B, H, Lq, dqk = q.shape
    dv = v.shape[-1]
    Lk = k.shape[2]
    Lq_p, bq = _pick_block(Lq, tq)
    Lk_p, bk = _pick_block(Lk, tk)
    if Lq_p != Lq:
        q = jnp.pad(q, ((0, 0), (0, 0), (0, Lq_p - Lq), (0, 0)))
    if Lk_p != Lk:
        k = jnp.pad(k, ((0, 0), (0, 0), (0, Lk_p - Lk), (0, 0)))
        v = jnp.pad(v, ((0, 0), (0, 0), (0, Lk_p - Lk), (0, 0)))
        kpad = jnp.pad(kpad, ((0, 0), (0, 0), (0, Lk_p - Lk)),
                       constant_values=1.0)                  # padded keys masked out

    kernel = functools.partial(_mha_kernel, n_heads=H, d_v=dv,
                               causal=causal, scale=scale, tq=bq, blk_k=bk)
    out = pl.pallas_call(
        kernel,
        out_shape=jax.ShapeDtypeStruct((B, Lq_p, H * dv), jnp.bfloat16),
        grid=(B, Lq_p // bq, Lk_p // bk),
        in_specs=[
            pl.BlockSpec((None, 1, bk), lambda b, i, j: (b, 0, j)),
            pl.BlockSpec((None, H, bq, dqk), lambda b, i, j: (b, 0, i, 0)),
            pl.BlockSpec((None, H, bk, dqk), lambda b, i, j: (b, 0, j, 0)),
            pl.BlockSpec((None, H, bk, dv), lambda b, i, j: (b, 0, j, 0)),
        ],
        out_specs=pl.BlockSpec((None, bq, H * dv), lambda b, i, j: (b, i, 0)),
        scratch_shapes=[
            pltpu.VMEM((H, bq, 1), jnp.float32),             # running max
            pltpu.VMEM((H, bq, 1), jnp.float32),             # running sum
            pltpu.VMEM((H, bq, dv), jnp.float32),            # running output
        ],
        compiler_params=_params("parallel", "parallel", "arbitrary"),
    )(kpad, q, k, v)
    return out[:, :Lq] if Lq_p != Lq else out


# --------------------------------------------------------------------------
# layers (plain-JAX glue: embedding gather, head reshapes)
# --------------------------------------------------------------------------

def _split_heads(x, B, L, H, widths):
    """x: (B*L, H*sum(widths)) packed per-head -> tuple of (B, H, L, w)."""
    x = x.reshape(B, L, H, sum(widths)).transpose(0, 2, 1, 3)
    outs, off = [], 0
    for w in widths:
        outs.append(x[..., off:off + w])
        off += w
    return tuple(outs)


def encoder_layer(x, pad_x, p, cfg):
    B, L, D = x.shape
    H, dqk, dv, eps = cfg["n_heads"], cfg["d_qk"], cfg["d_v"], cfg["ln_eps"]
    scale = 1.0 / float(np.sqrt(dqk))

    qkv = ln_linear(x.reshape(B * L, D), p["ln1_g"], p["ln1_b"],
                    p["w_qkv"], p["b_qkv"], eps)
    q, k, v = _split_heads(qkv, B, L, H, (dqk, dqk, dv))
    attn = attention(q, k, v, pad_x, causal=False, scale=scale)
    x = linear(attn.reshape(B * L, H * dv), p["wo"], p["bo"],
               residual=x.reshape(B * L, D)).reshape(B, L, D)

    x = ln_ffn_residual(x.reshape(B * L, D), p["ln2_g"], p["ln2_b"],
                        p["w1"], p["b1"], p["w2"], p["b2"], eps).reshape(B, L, D)
    return x


def decoder_layer(y, enc_out, pad_y, pad_x, p, cfg):
    B, Ly, D = y.shape
    Lx = enc_out.shape[1]
    H, dqk, dv, eps = cfg["n_heads"], cfg["d_qk"], cfg["d_v"], cfg["ln_eps"]
    scale = 1.0 / float(np.sqrt(dqk))

    # masked (causal + pad) self-attention
    qkv = ln_linear(y.reshape(B * Ly, D), p["ln1_g"], p["ln1_b"],
                    p["self_w_qkv"], p["self_b_qkv"], eps)
    q, k, v = _split_heads(qkv, B, Ly, H, (dqk, dqk, dv))
    sa = attention(q, k, v, pad_y, causal=True, scale=scale)
    y = linear(sa.reshape(B * Ly, H * dv), p["self_wo"], p["self_bo"],
               residual=y.reshape(B * Ly, D)).reshape(B, Ly, D)

    # cross-attention (Q from normalized decoder state, K/V from encoder output)
    q = ln_linear(y.reshape(B * Ly, D), p["ln2_g"], p["ln2_b"],
                  p["cross_wq"], p["cross_bq"], eps)
    (q,) = _split_heads(q, B, Ly, H, (dqk,))
    kv = linear(enc_out.reshape(B * Lx, D), p["cross_w_kv"], p["cross_b_kv"],
                out_dtype=jnp.bfloat16)
    k, v = _split_heads(kv, B, Lx, H, (dqk, dv))
    ca = attention(q, k, v, pad_x, causal=False, scale=scale)
    y = linear(ca.reshape(B * Ly, H * dv), p["cross_wo"], p["cross_bo"],
               residual=y.reshape(B * Ly, D)).reshape(B, Ly, D)

    # feed-forward
    y = ln_ffn_residual(y.reshape(B * Ly, D), p["ln3_g"], p["ln3_b"],
                        p["w1"], p["b1"], p["w2"], p["b2"], eps).reshape(B, Ly, D)
    return y


def sinusoidal_positions(max_len, d_model):
    pos = np.arange(max_len)[:, None].astype(np.float32)
    i = np.arange(d_model)[None, :].astype(np.float32)
    angle = pos / np.power(10000.0, 2.0 * np.floor(i / 2.0) / d_model)
    pe = np.zeros((max_len, d_model), np.float32)
    pe[:, 0::2] = np.sin(angle[:, 0::2])
    pe[:, 1::2] = np.cos(angle[:, 1::2])
    return jnp.asarray(pe)


def transformer_forward(params, x, y, cfg):
    """Mirrors Transformer.forward((x, y)) with return_states=False -> logits."""
    PAD = cfg["PAD"]
    B, Lx = x.shape
    _, Ly = y.shape
    D = cfg["d_model"]

    # per-key pad vectors (1.0 == padded); causal part is built in-kernel.
    pad_x = (x == PAD).astype(jnp.float32).reshape(B, 1, Lx)
    pad_y = (y == PAD).astype(jnp.float32).reshape(B, 1, Ly)

    # ---------------- encoder ----------------
    h = params["src_emb"][x] + params["pe_src"][:Lx][None, :, :]
    for lyr in params["enc_layers"]:
        h = encoder_layer(h, pad_x, lyr, cfg)
    enc_out = h

    # ---------------- decoder ----------------
    g = params["trg_emb"][y] + params["pe_trg"][:Ly][None, :, :]
    for lyr in params["dec_layers"]:
        g = decoder_layer(g, enc_out, pad_y, pad_x, lyr, cfg)

    # output projection to target vocab (use_proj_bias=True, no weight sharing)
    logits = linear(g.reshape(B * Ly, D), params["out_w"], params["out_b"])
    return logits.reshape(B, Ly, cfg["trg_vocab_size"])


# --------------------------------------------------------------------------
# deterministic parameter init (matmul weights bf16; LN / bias / emb f32)
# --------------------------------------------------------------------------

def init_params(key, cfg):
    D, H = cfg["d_model"], cfg["n_heads"]
    dqk, dv, dff = cfg["d_qk"], cfg["d_v"], cfg["d_ff"]
    keys = iter(jax.random.split(key, 1024))

    def w(shape, s=0.02):
        return (jax.random.normal(next(keys), shape, jnp.float32) * s).astype(jnp.bfloat16)

    def f32(shape, s=0.02):
        return jax.random.normal(next(keys), shape, jnp.float32) * s

    def zeros(n): return jnp.zeros((n,), jnp.float32)
    def ones(n): return jnp.ones((n,), jnp.float32)

    def enc_layer():
        return dict(
            ln1_g=ones(D), ln1_b=zeros(D),
            w_qkv=w((D, H * (2 * dqk + dv))), b_qkv=zeros(H * (2 * dqk + dv)),
            wo=w((H * dv, D)), bo=zeros(D),
            ln2_g=ones(D), ln2_b=zeros(D),
            w1=w((D, dff)), b1=zeros(dff),
            w2=w((dff, D)), b2=zeros(D))

    def dec_layer():
        return dict(
            ln1_g=ones(D), ln1_b=zeros(D),
            self_w_qkv=w((D, H * (2 * dqk + dv))), self_b_qkv=zeros(H * (2 * dqk + dv)),
            self_wo=w((H * dv, D)), self_bo=zeros(D),
            ln2_g=ones(D), ln2_b=zeros(D),
            cross_wq=w((D, H * dqk)), cross_bq=zeros(H * dqk),
            cross_w_kv=w((D, H * (dqk + dv))), cross_b_kv=zeros(H * (dqk + dv)),
            cross_wo=w((H * dv, D)), cross_bo=zeros(D),
            ln3_g=ones(D), ln3_b=zeros(D),
            w1=w((D, dff)), b1=zeros(dff),
            w2=w((dff, D)), b2=zeros(D))

    return dict(
        src_emb=f32((cfg["src_vocab_size"], D)),
        trg_emb=f32((cfg["trg_vocab_size"], D)),
        pe_src=sinusoidal_positions(cfg["src_max_len"], D),   # pos_need_train=False
        pe_trg=sinusoidal_positions(cfg["trg_max_len"], D),
        enc_layers=[enc_layer() for _ in range(cfg["n_enc_layers"])],
        dec_layers=[dec_layer() for _ in range(cfg["n_dec_layers"])],
        out_w=w((D, cfg["trg_vocab_size"])),
        out_b=zeros(cfg["trg_vocab_size"]))


# --------------------------------------------------------------------------
# main
# --------------------------------------------------------------------------

if __name__ == "__main__":
    symbol2id = {'_pad_': 0, '_bos_': 1, '_eos_': 2, '_unk_': 3,
                 '_sep_': 4, '_cls_': 5, '_mask_': 6}
    cfg = dict(
        PAD=symbol2id['_pad_'],
        src_vocab_size=32, trg_vocab_size=32,
        src_max_len=16, trg_max_len=16,
        n_heads=4, d_model=32, d_ff=64, d_qk=8, d_v=8,
        n_enc_layers=2, n_dec_layers=2,
        ln_eps=1e-5,
    )
    # TODO(synk): compute_loss / return_states / incremental decode paths
    # (init_search / step / beam-state gather) are not implemented; only the
    # default forward returning decoder logits.

    key = jax.random.PRNGKey(0)
    pkey, xkey, ykey = jax.random.split(key, 3)
    params = init_params(pkey, cfg)

    B, Lx, Ly = 2, 8, 8
    x = jax.random.randint(xkey, (B, Lx), 7, cfg["src_vocab_size"], dtype=jnp.int32)
    y = jax.random.randint(ykey, (B, Ly), 7, cfg["trg_vocab_size"], dtype=jnp.int32)
    # add some padding to exercise the in-kernel masks
    x = x.at[1, 6:].set(symbol2id['_pad_'])
    y = y.at[1, 6:].set(symbol2id['_pad_'])

    fwd = jax.jit(lambda p, xx, yy: transformer_forward(p, xx, yy, cfg))
    logits = fwd(params, x, y)
    logits = jax.block_until_ready(logits)

    assert logits.shape == (B, Ly, cfg["trg_vocab_size"]), logits.shape
    assert bool(jnp.all(jnp.isfinite(logits)))
    print("KERNEL_OK")
</pallas_src>

<mosaic_0001>
module attributes {stable_mosaic.version = 11 : i64} {
  func.func @_mha_kernel(%arg0: i32, %arg1: i32, %arg2: i32, %arg3: memref<1x1x8xf32, #tpu.memory_space<vmem>>, %arg4: memref<1x4x8x8xbf16, #tpu.memory_space<vmem>>, %arg5: memref<1x4x8x8xbf16, #tpu.memory_space<vmem>>, %arg6: memref<1x4x8x8xbf16, #tpu.memory_space<vmem>>, %arg7: memref<1x8x32xbf16, #tpu.memory_space<vmem>>, %arg8: memref<4x8x1xf32, #tpu.memory_space<vmem>>, %arg9: memref<4x8x1xf32, #tpu.memory_space<vmem>>, %arg10: memref<4x8x8xf32, #tpu.memory_space<vmem>>) attributes {dimension_semantics = [#tpu.dimension_semantics<parallel>, #tpu.dimension_semantics<parallel>, #tpu.dimension_semantics<arbitrary>], iteration_bounds = array<i64: 2, 1, 1>, scalar_prefetch = 0 : i64, scratch_operands = 3 : i64, tpu.core_type = #tpu.core_type<tc>, window_params = [{transform_indices = @transform_0, window_bounds = array<i64: 1, 1, 8>}, {transform_indices = @transform_1, window_bounds = array<i64: 1, 4, 8, 8>}, {transform_indices = @transform_2, window_bounds = array<i64: 1, 4, 8, 8>}, {transform_indices = @transform_3, window_bounds = array<i64: 1, 4, 8, 8>}, {transform_indices = @transform_4, window_bounds = array<i64: 1, 8, 32>}]} {
    %c0_i32 = arith.constant 0 : i32
    %0 = arith.cmpi eq, %arg2, %c0_i32 : i32
    %1 = arith.extui %0 : i1 to i32
    %c0_i32_0 = arith.constant 0 : i32
    %2 = arith.cmpi ne, %1, %c0_i32_0 : i32
    scf.if %2 {
      %cst = arith.constant 0xFF800000 : f32
      %13 = vector.broadcast %cst : f32 to vector<4x8x1xf32>
      %c0 = arith.constant 0 : index
      %c0_6 = arith.constant 0 : index
      %c0_7 = arith.constant 0 : index
      %14 = vector.load %arg8[%c0, %c0_6, %c0_7] : memref<4x8x1xf32, #tpu.memory_space<vmem>>, vector<4x8x1xf32>
      tpu.vector_store %arg8[%c0, %c0_6, %c0_7], %13 {strides = array<i32>} : memref<4x8x1xf32, #tpu.memory_space<vmem>>, vector<4x8x1xf32>,
      %cst_8 = arith.constant 0.000000e+00 : f32
      %15 = vector.broadcast %cst_8 : f32 to vector<4x8x1xf32>
      %c0_9 = arith.constant 0 : index
      %c0_10 = arith.constant 0 : index
      %c0_11 = arith.constant 0 : index
      %16 = vector.load %arg9[%c0_9, %c0_10, %c0_11] : memref<4x8x1xf32, #tpu.memory_space<vmem>>, vector<4x8x1xf32>
      tpu.vector_store %arg9[%c0_9, %c0_10, %c0_11], %15 {strides = array<i32>} : memref<4x8x1xf32, #tpu.memory_space<vmem>>, vector<4x8x1xf32>,
      %cst_12 = arith.constant 0.000000e+00 : f32
      %17 = vector.broadcast %cst_12 : f32 to vector<4x8x8xf32>
      %c0_13 = arith.constant 0 : index
      %c0_14 = arith.constant 0 : index
      %c0_15 = arith.constant 0 : index
      %18 = vector.load %arg10[%c0_13, %c0_14, %c0_15] : memref<4x8x8xf32, #tpu.memory_space<vmem>>, vector<4x8x8xf32>
      tpu.vector_store %arg10[%c0_13, %c0_14, %c0_15], %17 {strides = array<i32>} : memref<4x8x8xf32, #tpu.memory_space<vmem>>, vector<4x8x8xf32>,
    } else {
    }
    %c8_i32 = arith.constant 8 : i32
    %3 = arith.muli %arg2, %c8_i32 : i32
    %c1_i32 = arith.constant 1 : i32
    %4 = arith.addi %arg1, %c1_i32 : i32
    %c8_i32_1 = arith.constant 8 : i32
    %5 = arith.muli %4, %c8_i32_1 : i32
    %c1_i32_2 = arith.constant 1 : i32
    %6 = arith.subi %5, %c1_i32_2 : i32
    %7 = arith.cmpi sle, %3, %6 : i32
    %8 = arith.extui %7 : i1 to i32
    %c0_i32_3 = arith.constant 0 : i32
    %9 = arith.cmpi ne, %8, %c0_i32_3 : i32
    scf.if %9 {
      %c0 = arith.constant 0 : index
      %c0_6 = arith.constant 0 : index
      %c0_7 = arith.constant 0 : index
      %13 = vector.load %arg3[%c0, %c0_6, %c0_7] : memref<1x1x8xf32, #tpu.memory_space<vmem>>, vector<1x1x8xf32>
      %14 = vector.shape_cast %13 : vector<1x1x8xf32> to vector<1x8xf32>
      %cst = arith.constant 0.000000e+00 : f32
      %15 = vector.broadcast %cst : f32 to vector<1x8xf32>
      %16 = arith.cmpf one, %14, %15 : vector<1x8xf32>
      %17 = vector.shape_cast %16 : vector<1x8xi1> to vector<1x8xi1>
      %18 = vector.broadcast %17 : vector<1x8xi1> to vector<8x8xi1>
      %19 = tpu.iota {dimensions = array<i32: 0>} : vector<8x8xi32>
      %c8_i32_8 = arith.constant 8 : i32
      %20 = arith.muli %arg1, %c8_i32_8 : i32
      %21 = vector.broadcast %20 : i32 to vector<8x8xi32>
      %22 = arith.addi %19, %21 : vector<8x8xi32>
      %23 = tpu.iota {dimensions = array<i32: 1>} : vector<8x8xi32>
      %c8_i32_9 = arith.constant 8 : i32
      %24 = arith.muli %arg2, %c8_i32_9 : i32
      %25 = vector.broadcast %24 : i32 to vector<8x8xi32>
      %26 = arith.addi %23, %25 : vector<8x8xi32>
      %27 = arith.cmpi sgt, %26, %22 : vector<8x8xi32>
      %28 = arith.ori %18, %27 : vector<8x8xi1>
      %c0_10 = arith.constant 0 : index
      %c0_11 = arith.constant 0 : index
      %c0_12 = arith.constant 0 : index
      %c0_13 = arith.constant 0 : index
      %29 = vector.load %arg4[%c0_10, %c0_11, %c0_12, %c0_13] : memref<1x4x8x8xbf16, #tpu.memory_space<vmem>>, vector<1x4x8x8xbf16>
      %30 = vector.shape_cast %29 : vector<1x4x8x8xbf16> to vector<4x8x8xbf16>
      %c0_14 = arith.constant 0 : index
      %c0_15 = arith.constant 0 : index
      %c0_16 = arith.constant 0 : index
      %c0_17 = arith.constant 0 : index
      %31 = vector.load %arg5[%c0_14, %c0_15, %c0_16, %c0_17] : memref<1x4x8x8xbf16, #tpu.memory_space<vmem>>, vector<1x4x8x8xbf16>
      %32 = vector.shape_cast %31 : vector<1x4x8x8xbf16> to vector<4x8x8xbf16>
      "tpu.trace_start"() <{level = 10 : i32, message = "hqd,hkd->hqk"}> : () -> ()
      %cst_18 = arith.constant dense<0.000000e+00> : vector<4x8x8xf32>
      %33 = tpu.matmul %30, %32, %cst_18 {dimension_numbers = #tpu.dot_dimension_numbers<[2], [2], [1], [1], [0, 0, 0, 1, 1, 1], [0], [0]>} : vector<4x8x8xbf16>, vector<4x8x8xbf16>, vector<4x8x8xf32> -> vector<4x8x8xf32>
      "tpu.trace_stop"() : () -> ()
      %cst_19 = arith.constant 0.353553385 : f32
      %34 = vector.broadcast %cst_19 : f32 to vector<4x8x8xf32>
      %35 = arith.mulf %33, %34 : vector<4x8x8xf32>
      %36 = vector.shape_cast %28 : vector<8x8xi1> to vector<1x8x8xi1>
      %cst_20 = arith.constant -1.000000e+04 : f32
      %37 = vector.shape_cast %36 : vector<1x8x8xi1> to vector<1x8x8xi1>
      %38 = vector.broadcast %37 : vector<1x8x8xi1> to vector<4x8x8xi1>
      %39 = vector.broadcast %cst_20 : f32 to vector<4x8x8xf32>
      %40 = arith.select %38, %39, %35 : vector<4x8x8xi1>, vector<4x8x8xf32>
      %c0_21 = arith.constant 0 : index
      %c0_22 = arith.constant 0 : index
      %c0_23 = arith.constant 0 : index
      %41 = vector.load %arg8[%c0_21, %c0_22, %c0_23] : memref<4x8x1xf32, #tpu.memory_space<vmem>>, vector<4x8x1xf32>
      %cst_24 = arith.constant dense<0xFF800000> : vector<4x8xf32>
      %42 = vector.multi_reduction <maximumf>, %40, %cst_24 [2] : vector<4x8x8xf32> to vector<4x8xf32>
      %43 = vector.shape_cast %42 : vector<4x8xf32> to vector<4x8x1xf32>
      %44 = arith.maximumf %41, %43 : vector<4x8x1xf32>
      %45 = arith.subf %41, %44 : vector<4x8x1xf32>
      %46 = math.exp %45 : vector<4x8x1xf32>
      %47 = vector.broadcast %44 : vector<4x8x1xf32> to vector<4x8x8xf32>
      %48 = arith.subf %40, %47 : vector<4x8x8xf32>
      %49 = math.exp %48 : vector<4x8x8xf32>
      %c0_25 = arith.constant 0 : index
      %c0_26 = arith.constant 0 : index
      %c0_27 = arith.constant 0 : index
      %50 = vector.load %arg9[%c0_25, %c0_26, %c0_27] : memref<4x8x1xf32, #tpu.memory_space<vmem>>, vector<4x8x1xf32>
      %51 = arith.mulf %46, %50 : vector<4x8x1xf32>
      %cst_28 = arith.constant dense<0.000000e+00> : vector<4x8xf32>
      %52 = vector.multi_reduction <add>, %49, %cst_28 [2] : vector<4x8x8xf32> to vector<4x8xf32>
      %53 = vector.shape_cast %52 : vector<4x8xf32> to vector<4x8x1xf32>
      %54 = arith.addf %51, %53 : vector<4x8x1xf32>
      %c0_29 = arith.constant 0 : index
      %c0_30 = arith.constant 0 : index
      %c0_31 = arith.constant 0 : index
      %55 = vector.load %arg9[%c0_29, %c0_30, %c0_31] : memref<4x8x1xf32, #tpu.memory_space<vmem>>, vector<4x8x1xf32>
      tpu.vector_store %arg9[%c0_29, %c0_30, %c0_31], %54 {strides = array<i32>} : memref<4x8x1xf32, #tpu.memory_space<vmem>>, vector<4x8x1xf32>,
      %c0_32 = arith.constant 0 : index
      %c0_33 = arith.constant 0 : index
      %c0_34 = arith.constant 0 : index
      %56 = vector.load %arg10[%c0_32, %c0_33, %c0_34] : memref<4x8x8xf32, #tpu.memory_space<vmem>>, vector<4x8x8xf32>
      %57 = vector.broadcast %46 : vector<4x8x1xf32> to vector<4x8x8xf32>
      %58 = arith.mulf %57, %56 : vector<4x8x8xf32>
      %59 = arith.truncf %49 : vector<4x8x8xf32> to vector<4x8x8xbf16>
      %c0_35 = arith.constant 0 : index
      %c0_36 = arith.constant 0 : index
      %c0_37 = arith.constant 0 : index
      %c0_38 = arith.constant 0 : index
      %60 = vector.load %arg6[%c0_35, %c0_36, %c0_37, %c0_38] : memref<1x4x8x8xbf16, #tpu.memory_space<vmem>>, vector<1x4x8x8xbf16>
      %61 = vector.shape_cast %60 : vector<1x4x8x8xbf16> to vector<4x8x8xbf16>
      "tpu.trace_start"() <{level = 10 : i32, message = "hqk,hkd->hqd"}> : () -> ()
      %cst_39 = arith.constant dense<0.000000e+00> : vector<4x8x8xf32>
      %62 = tpu.matmul %59, %61, %cst_39 {dimension_numbers = #tpu.dot_dimension_numbers<[2], [1], [1], [2], [0, 0, 0, 1, 1, 2], [0], [0]>} : vector<4x8x8xbf16>, vector<4x8x8xbf16>, vector<4x8x8xf32> -> vector<4x8x8xf32>
      "tpu.trace_stop"() : () -> ()
      %63 = arith.addf %58, %62 : vector<4x8x8xf32>
      %c0_40 = arith.constant 0 : index
      %c0_41 = arith.constant 0 : index
      %c0_42 = arith.constant 0 : index
      %64 = vector.load %arg10[%c0_40, %c0_41, %c0_42] : memref<4x8x8xf32, #tpu.memory_space<vmem>>, vector<4x8x8xf32>
      tpu.vector_store %arg10[%c0_40, %c0_41, %c0_42], %63 {strides = array<i32>} : memref<4x8x8xf32, #tpu.memory_space<vmem>>, vector<4x8x8xf32>,
      %c0_43 = arith.constant 0 : index
      %c0_44 = arith.constant 0 : index
      %c0_45 = arith.constant 0 : index
      %65 = vector.load %arg8[%c0_43, %c0_44, %c0_45] : memref<4x8x1xf32, #tpu.memory_space<vmem>>, vector<4x8x1xf32>
      tpu.vector_store %arg8[%c0_43, %c0_44, %c0_45], %44 {strides = array<i32>} : memref<4x8x1xf32, #tpu.memory_space<vmem>>, vector<4x8x1xf32>,
    } else {
    }
    %c0_i32_4 = arith.constant 0 : i32
    %10 = arith.cmpi eq, %arg2, %c0_i32_4 : i32
    %11 = arith.extui %10 : i1 to i32
    %c0_i32_5 = arith.constant 0 : i32
    %12 = arith.cmpi ne, %11, %c0_i32_5 : i32
    scf.if %12 {
      %c0 = arith.constant 0 : index
      %c0_6 = arith.constant 0 : index
      %c0_7 = arith.constant 0 : index
      %13 = vector.load %arg9[%c0, %c0_6, %c0_7] : memref<4x8x1xf32, #tpu.memory_space<vmem>>, vector<4x8x1xf32>
      %14 = tpu.reciprocal %13 {approx = true} : vector<4x8x1xf32> -> vector<4x8x1xf32>
      %c0_8 = arith.constant 0 : index
      %c0_9 = arith.constant 0 : index
      %c0_10 = arith.constant 0 : index
      %15 = vector.load %arg10[%c0_8, %c0_9, %c0_10] : memref<4x8x8xf32, #tpu.memory_space<vmem>>, vector<1x8x8xf32>
      %16 = vector.shape_cast %15 : vector<1x8x8xf32> to vector<8x8xf32>
      %17 = vector.extract_strided_slice %14 {offsets = [0, 0, 0], sizes = [1, 8, 1], strides = [1, 1, 1]} : vector<4x8x1xf32> to vector<1x8x1xf32>
      %18 = vector.shape_cast %17 : vector<1x8x1xf32> to vector<8x1xf32>
      %19 = vector.broadcast %18 : vector<8x1xf32> to vector<8x8xf32>
      %20 = arith.mulf %16, %19 : vector<8x8xf32>
      %21 = arith.truncf %20 : vector<8x8xf32> to vector<8x8xbf16>
      %c0_11 = arith.constant 0 : index
      %c0_12 = arith.constant 0 : index
      %c0_13 = arith.constant 0 : index
      %22 = vector.load %arg7[%c0_11, %c0_12, %c0_13] : memref<1x8x32xbf16, #tpu.memory_space<vmem>>, vector<1x8x8xbf16>
      %23 = vector.shape_cast %22 : vector<1x8x8xbf16> to vector<8x8xbf16>
      %24 = vector.shape_cast %21 : vector<8x8xbf16> to vector<1x8x8xbf16>
      tpu.vector_store %arg7[%c0_11, %c0_12, %c0_13], %24 {strides = array<i32>} : memref<1x8x32xbf16, #tpu.memory_space<vmem>>, vector<1x8x8xbf16>,
      %c1 = arith.constant 1 : index
      %c0_14 = arith.constant 0 : index
      %c0_15 = arith.constant 0 : index
      %25 = vector.load %arg10[%c1, %c0_14, %c0_15] : memref<4x8x8xf32, #tpu.memory_space<vmem>>, vector<1x8x8xf32>
      %26 = vector.shape_cast %25 : vector<1x8x8xf32> to vector<8x8xf32>
      %27 = vector.extract_strided_slice %14 {offsets = [1, 0, 0], sizes = [1, 8, 1], strides = [1, 1, 1]} : vector<4x8x1xf32> to vector<1x8x1xf32>
      %28 = vector.shape_cast %27 : vector<1x8x1xf32> to vector<8x1xf32>
      %29 = vector.broadcast %28 : vector<8x1xf32> to vector<8x8xf32>
      %30 = arith.mulf %26, %29 : vector<8x8xf32>
      %31 = arith.truncf %30 : vector<8x8xf32> to vector<8x8xbf16>
      %c0_16 = arith.constant 0 : index
      %c0_17 = arith.constant 0 : index
      %c8 = arith.constant 8 : index
      %32 = vector.load %arg7[%c0_16, %c0_17, %c8] : memref<1x8x32xbf16, #tpu.memory_space<vmem>>, vector<1x8x8xbf16>
      %33 = vector.shape_cast %32 : vector<1x8x8xbf16> to vector<8x8xbf16>
      %34 = vector.shape_cast %31 : vector<8x8xbf16> to vector<1x8x8xbf16>
      tpu.vector_store %arg7[%c0_16, %c0_17, %c8], %34 {strides = array<i32>} : memref<1x8x32xbf16, #tpu.memory_space<vmem>>, vector<1x8x8xbf16>,
      %c2 = arith.constant 2 : index
      %c0_18 = arith.constant 0 : index
      %c0_19 = arith.constant 0 : index
      %35 = vector.load %arg10[%c2, %c0_18, %c0_19] : memref<4x8x8xf32, #tpu.memory_space<vmem>>, vector<1x8x8xf32>
      %36 = vector.shape_cast %35 : vector<1x8x8xf32> to vector<8x8xf32>
      %37 = vector.extract_strided_slice %14 {offsets = [2, 0, 0], sizes = [1, 8, 1], strides = [1, 1, 1]} : vector<4x8x1xf32> to vector<1x8x1xf32>
      %38 = vector.shape_cast %37 : vector<1x8x1xf32> to vector<8x1xf32>
      %39 = vector.broadcast %38 : vector<8x1xf32> to vector<8x8xf32>
      %40 = arith.mulf %36, %39 : vector<8x8xf32>
      %41 = arith.truncf %40 : vector<8x8xf32> to vector<8x8xbf16>
      %c0_20 = arith.constant 0 : index
      %c0_21 = arith.constant 0 : index
      %c16 = arith.constant 16 : index
      %42 = vector.load %arg7[%c0_20, %c0_21, %c16] : memref<1x8x32xbf16, #tpu.memory_space<vmem>>, vector<1x8x8xbf16>
      %43 = vector.shape_cast %42 : vector<1x8x8xbf16> to vector<8x8xbf16>
      %44 = vector.shape_cast %41 : vector<8x8xbf16> to vector<1x8x8xbf16>
      tpu.vector_store %arg7[%c0_20, %c0_21, %c16], %44 {strides = array<i32>} : memref<1x8x32xbf16, #tpu.memory_space<vmem>>, vector<1x8x8xbf16>,
      %c3 = arith.constant 3 : index
      %c0_22 = arith.constant 0 : index
      %c0_23 = arith.constant 0 : index
      %45 = vector.load %arg10[%c3, %c0_22, %c0_23] : memref<4x8x8xf32, #tpu.memory_space<vmem>>, vector<1x8x8xf32>
      %46 = vector.shape_cast %45 : vector<1x8x8xf32> to vector<8x8xf32>
      %47 = vector.extract_strided_slice %14 {offsets = [3, 0, 0], sizes = [1, 8, 1], strides = [1, 1, 1]} : vector<4x8x1xf32> to vector<1x8x1xf32>
      %48 = vector.shape_cast %47 : vector<1x8x1xf32> to vector<8x1xf32>
      %49 = vector.broadcast %48 : vector<8x1xf32> to vector<8x8xf32>
      %50 = arith.mulf %46, %49 : vector<8x8xf32>
      %51 = arith.truncf %50 : vector<8x8xf32> to vector<8x8xbf16>
      %c0_24 = arith.constant 0 : index
      %c0_25 = arith.constant 0 : index
      %c24 = arith.constant 24 : index
      %52 = vector.load %arg7[%c0_24, %c0_25, %c24] : memref<1x8x32xbf16, #tpu.memory_space<vmem>>, vector<1x8x8xbf16>
      %53 = vector.shape_cast %52 : vector<1x8x8xbf16> to vector<8x8xbf16>
      %54 = vector.shape_cast %51 : vector<8x8xbf16> to vector<1x8x8xbf16>
      tpu.vector_store %arg7[%c0_24, %c0_25, %c24], %54 {strides = array<i32>} : memref<1x8x32xbf16, #tpu.memory_space<vmem>>, vector<1x8x8xbf16>,
    } else {
    }
    return
  }
  func.func @transform_0(%arg0: i32, %arg1: i32, %arg2: i32) -> (i32, i32, i32) {
    %c0_i32 = arith.constant 0 : i32
    %c0_i32_0 = arith.constant 0 : i32
    return %arg0, %c0_i32, %arg2 : i32, i32, i32
  }
  func.func @transform_1(%arg0: i32, %arg1: i32, %arg2: i32) -> (i32, i32, i32, i32) {
    %c0_i32 = arith.constant 0 : i32
    %c0_i32_0 = arith.constant 0 : i32
    %c0_i32_1 = arith.constant 0 : i32
    return %arg0, %c0_i32, %arg1, %c0_i32_0 : i32, i32, i32, i32
  }
  func.func @transform_2(%arg0: i32, %arg1: i32, %arg2: i32) -> (i32, i32, i32, i32) {
    %c0_i32 = arith.constant 0 : i32
    %c0_i32_0 = arith.constant 0 : i32
    %c0_i32_1 = arith.constant 0 : i32
    return %arg0, %c0_i32, %arg2, %c0_i32_0 : i32, i32, i32, i32
  }
  func.func @transform_3(%arg0: i32, %arg1: i32, %arg2: i32) -> (i32, i32, i32, i32) {
    %c0_i32 = arith.constant 0 : i32
    %c0_i32_0 = arith.constant 0 : i32
    %c0_i32_1 = arith.constant 0 : i32
    return %arg0, %c0_i32, %arg2, %c0_i32_0 : i32, i32, i32, i32
  }
  func.func @transform_4(%arg0: i32, %arg1: i32, %arg2: i32) -> (i32, i32, i32) {
    %c0_i32 = arith.constant 0 : i32
    %c0_i32_0 = arith.constant 0 : i32
    return %arg0, %arg1, %c0_i32 : i32, i32, i32
  }
}

module attributes {stable_mosaic.version = 11 : i64} {
  func.func @_ln_linear_kernel(%arg0: i32, %arg1: i32, %arg2: memref<16x32xf32, #tpu.memory_space<vmem>>, %arg3: memref<1x32xf32, #tpu.memory_space<vmem>>, %arg4: memref<1x32xf32, #tpu.memory_space<vmem>>, %arg5: memref<32x96xbf16, #tpu.memory_space<vmem>>, %arg6: memref<1x96xf32, #tpu.memory_space<vmem>>, %arg7: memref<16x96xbf16, #tpu.memory_space<vmem>>, %arg8: memref<16x32xbf16, #tpu.memory_space<vmem>>) attributes {dimension_semantics = [#tpu.dimension_semantics<parallel>, #tpu.dimension_semantics<arbitrary>], iteration_bounds = array<i64: 1, 1>, scalar_prefetch = 0 : i64, scratch_operands = 1 : i64, tpu.core_type = #tpu.core_type<tc>, window_params = [{transform_indices = @transform_0, window_bounds = array<i64: 16, 32>}, {pipeline_mode = #tpu.pipeline_mode<synchronous>, transform_indices = @transform_1, window_bounds = array<i64: 1, 32>}, {pipeline_mode = #tpu.pipeline_mode<synchronous>, transform_indices = @transform_2, window_bounds = array<i64: 1, 32>}, {transform_indices = @transform_3, window_bounds = array<i64: 32, 96>}, {transform_indices = @transform_4, window_bounds = array<i64: 1, 96>}, {transform_indices = @transform_5, window_bounds = array<i64: 16, 96>}]} {
    %c0_i32 = arith.constant 0 : i32
    %0 = arith.cmpi eq, %arg1, %c0_i32 : i32
    %1 = arith.extui %0 : i1 to i32
    %c0_i32_0 = arith.constant 0 : i32
    %2 = arith.cmpi ne, %1, %c0_i32_0 : i32
    scf.if %2 {
      %c0_8 = arith.constant 0 : index
      %c0_9 = arith.constant 0 : index
      %11 = vector.load %arg2[%c0_8, %c0_9] : memref<16x32xf32, #tpu.memory_space<vmem>>, vector<16x32xf32>
      %cst_10 = arith.constant dense<0.000000e+00> : vector<16xf32>
      %12 = vector.multi_reduction <add>, %11, %cst_10 [1] : vector<16x32xf32> to vector<16xf32>
      %13 = vector.shape_cast %12 : vector<16xf32> to vector<16x1xf32>
      %cst_11 = arith.constant 3.200000e+01 : f32
      %14 = vector.broadcast %cst_11 : f32 to vector<16x1xf32>
      %15 = arith.divf %13, %14 : vector<16x1xf32>
      %16 = vector.broadcast %15 : vector<16x1xf32> to vector<16x32xf32>
      %17 = arith.subf %11, %16 : vector<16x32xf32>
      %18 = arith.mulf %17, %17 : vector<16x32xf32>
      %cst_12 = arith.constant dense<0.000000e+00> : vector<16xf32>
      %19 = vector.multi_reduction <add>, %18, %cst_12 [1] : vector<16x32xf32> to vector<16xf32>
      %20 = vector.shape_cast %19 : vector<16xf32> to vector<16x1xf32>
      %cst_13 = arith.constant 3.200000e+01 : f32
      %21 = vector.broadcast %cst_13 : f32 to vector<16x1xf32>
      %22 = arith.divf %20, %21 : vector<16x1xf32>
      %23 = vector.broadcast %15 : vector<16x1xf32> to vector<16x32xf32>
      %24 = arith.subf %11, %23 : vector<16x32xf32>
      %cst_14 = arith.constant 9.99999974E-6 : f32
      %25 = vector.broadcast %cst_14 : f32 to vector<16x1xf32>
      %26 = arith.addf %22, %25 : vector<16x1xf32>
      %27 = math.rsqrt %26 : vector<16x1xf32>
      %28 = vector.broadcast %27 : vector<16x1xf32> to vector<16x32xf32>
      %29 = arith.mulf %24, %28 : vector<16x32xf32>
      %c0_15 = arith.constant 0 : index
      %c0_16 = arith.constant 0 : index
      %30 = vector.load %arg3[%c0_15, %c0_16] : memref<1x32xf32, #tpu.memory_space<vmem>>, vector<1x32xf32>
      %31 = vector.broadcast %30 : vector<1x32xf32> to vector<16x32xf32>
      %32 = arith.mulf %29, %31 : vector<16x32xf32>
      %c0_17 = arith.constant 0 : index
      %c0_18 = arith.constant 0 : index
      %33 = vector.load %arg4[%c0_17, %c0_18] : memref<1x32xf32, #tpu.memory_space<vmem>>, vector<1x32xf32>
      %34 = vector.broadcast %33 : vector<1x32xf32> to vector<16x32xf32>
      %35 = arith.addf %32, %34 : vector<16x32xf32>
      %36 = arith.truncf %35 : vector<16x32xf32> to vector<16x32xbf16>
      %c0_19 = arith.constant 0 : index
      %c0_20 = arith.constant 0 : index
      %37 = vector.load %arg8[%c0_19, %c0_20] : memref<16x32xbf16, #tpu.memory_space<vmem>>, vector<16x32xbf16>
      tpu.vector_store %arg8[%c0_19, %c0_20], %36 {strides = array<i32>} : memref<16x32xbf16, #tpu.memory_space<vmem>>, vector<16x32xbf16>,
    } else {
    }
    %c0 = arith.constant 0 : index
    %c0_1 = arith.constant 0 : index
    %3 = vector.load %arg8[%c0, %c0_1] : memref<16x32xbf16, #tpu.memory_space<vmem>>, vector<16x32xbf16>
    %c0_2 = arith.constant 0 : index
    %c0_3 = arith.constant 0 : index
    %4 = vector.load %arg5[%c0_2, %c0_3] : memref<32x96xbf16, #tpu.memory_space<vmem>>, vector<32x96xbf16>
    %cst = arith.constant dense<0.000000e+00> : vector<16x96xf32>
    %5 = tpu.matmul %3, %4, %cst {dimension_numbers = #tpu.dot_dimension_numbers<[1], [0], [0], [1], [0, 0, 1, 1], [], []>} : vector<16x32xbf16>, vector<32x96xbf16>, vector<16x96xf32> -> vector<16x96xf32>
    %c0_4 = arith.constant 0 : index
    %c0_5 = arith.constant 0 : index
    %6 = vector.load %arg6[%c0_4, %c0_5] : memref<1x96xf32, #tpu.memory_space<vmem>>, vector<1x96xf32>
    %7 = vector.broadcast %6 : vector<1x96xf32> to vector<16x96xf32>
    %8 = arith.addf %5, %7 : vector<16x96xf32>
    %9 = arith.truncf %8 : vector<16x96xf32> to vector<16x96xbf16>
    %c0_6 = arith.constant 0 : index
    %c0_7 = arith.constant 0 : index
    %10 = vector.load %arg7[%c0_6, %c0_7] : memref<16x96xbf16, #tpu.memory_space<vmem>>, vector<16x96xbf16>
    tpu.vector_store %arg7[%c0_6, %c0_7], %9 {strides = array<i32>} : memref<16x96xbf16, #tpu.memory_space<vmem>>, vector<16x96xbf16>,
    return
  }
  func.func @transform_0(%arg0: i32, %arg1: i32) -> (i32, i32) {
    %c0_i32 = arith.constant 0 : i32
    %c0_i32_0 = arith.constant 0 : i32
    return %arg0, %c0_i32 : i32, i32
  }
  func.func @transform_1(%arg0: i32, %arg1: i32) -> (i32, i32) {
    %c0_i32 = arith.constant 0 : i32
    %c0_i32_0 = arith.constant 0 : i32
    %c0_i32_1 = arith.constant 0 : i32
    return %c0_i32, %c0_i32_0 : i32, i32
  }
  func.func @transform_2(%arg0: i32, %arg1: i32) -> (i32, i32) {
    %c0_i32 = arith.constant 0 : i32
    %c0_i32_0 = arith.constant 0 : i32
    %c0_i32_1 = arith.constant 0 : i32
    return %c0_i32, %c0_i32_0 : i32, i32
  }
  func.func @transform_3(%arg0: i32, %arg1: i32) -> (i32, i32) {
    %c0_i32 = arith.constant 0 : i32
    %c0_i32_0 = arith.constant 0 : i32
    return %c0_i32, %arg1 : i32, i32
  }
  func.func @transform_4(%arg0: i32, %arg1: i32) -> (i32, i32) {
    %c0_i32 = arith.constant 0 : i32
    %c0_i32_0 = arith.constant 0 : i32
    return %c0_i32, %arg1 : i32, i32
  }
  func.func @transform_5(%arg0: i32, %arg1: i32) -> (i32, i32) {
    %c0_i32 = arith.constant 0 : i32
    return %arg0, %arg1 : i32, i32
  }
}

module attributes {stable_mosaic.version = 11 : i64} {
  func.func @_linear_res_kernel(%arg0: i32, %arg1: i32, %arg2: i32, %arg3: memref<16x32xbf16, #tpu.memory_space<vmem>>, %arg4: memref<32x32xbf16, #tpu.memory_space<vmem>>, %arg5: memref<1x32xf32, #tpu.memory_space<vmem>>, %arg6: memref<16x32xf32, #tpu.memory_space<vmem>>, %arg7: memref<16x32xf32, #tpu.memory_space<vmem>>) attributes {dimension_semantics = [#tpu.dimension_semantics<parallel>, #tpu.dimension_semantics<parallel>, #tpu.dimension_semantics<arbitrary>], iteration_bounds = array<i64: 1, 1, 1>, scalar_prefetch = 0 : i64, scratch_operands = 0 : i64, tpu.core_type = #tpu.core_type<tc>, window_params = [{transform_indices = @transform_0, window_bounds = array<i64: 16, 32>}, {transform_indices = @transform_1, window_bounds = array<i64: 32, 32>}, {transform_indices = @transform_2, window_bounds = array<i64: 1, 32>}, {transform_indices = @transform_3, window_bounds = array<i64: 16, 32>}, {transform_indices = @transform_4, window_bounds = array<i64: 16, 32>}]} {
    %c0_i32 = arith.constant 0 : i32
    %0 = arith.cmpi eq, %arg2, %c0_i32 : i32
    %1 = arith.extui %0 : i1 to i32
    %c0_i32_0 = arith.constant 0 : i32
    %2 = arith.cmpi ne, %1, %c0_i32_0 : i32
    scf.if %2 {
      %c0_8 = arith.constant 0 : index
      %c0_9 = arith.constant 0 : index
      %9 = vector.load %arg6[%c0_8, %c0_9] : memref<16x32xf32, #tpu.memory_space<vmem>>, vector<16x32xf32>
      %c0_10 = arith.constant 0 : index
      %c0_11 = arith.constant 0 : index
      %10 = vector.load %arg5[%c0_10, %c0_11] : memref<1x32xf32, #tpu.memory_space<vmem>>, vector<1x32xf32>
      %11 = vector.broadcast %10 : vector<1x32xf32> to vector<16x32xf32>
      %12 = arith.addf %9, %11 : vector<16x32xf32>
      %c0_12 = arith.constant 0 : index
      %c0_13 = arith.constant 0 : index
      %13 = vector.load %arg7[%c0_12, %c0_13] : memref<16x32xf32, #tpu.memory_space<vmem>>, vector<16x32xf32>
      tpu.vector_store %arg7[%c0_12, %c0_13], %12 {strides = array<i32>} : memref<16x32xf32, #tpu.memory_space<vmem>>, vector<16x32xf32>,
    } else {
    }
    %c0 = arith.constant 0 : index
    %c0_1 = arith.constant 0 : index
    %3 = vector.load %arg7[%c0, %c0_1] : memref<16x32xf32, #tpu.memory_space<vmem>>, vector<16x32xf32>
    %c0_2 = arith.constant 0 : index
    %c0_3 = arith.constant 0 : index
    %4 = vector.load %arg3[%c0_2, %c0_3] : memref<16x32xbf16, #tpu.memory_space<vmem>>, vector<16x32xbf16>
    %c0_4 = arith.constant 0 : index
    %c0_5 = arith.constant 0 : index
    %5 = vector.load %arg4[%c0_4, %c0_5] : memref<32x32xbf16, #tpu.memory_space<vmem>>, vector<32x32xbf16>
    %cst = arith.constant dense<0.000000e+00> : vector<16x32xf32>
    %6 = tpu.matmul %4, %5, %cst {dimension_numbers = #tpu.dot_dimension_numbers<[1], [0], [0], [1], [0, 0, 1, 1], [], []>} : vector<16x32xbf16>, vector<32x32xbf16>, vector<16x32xf32> -> vector<16x32xf32>
    %7 = arith.addf %3, %6 : vector<16x32xf32>
    %c0_6 = arith.constant 0 : index
    %c0_7 = arith.constant 0 : index
    %8 = vector.load %arg7[%c0_6, %c0_7] : memref<16x32xf32, #tpu.memory_space<vmem>>, vector<16x32xf32>
    tpu.vector_store %arg7[%c0_6, %c0_7], %7 {strides = array<i32>} : memref<16x32xf32, #tpu.memory_space<vmem>>, vector<16x32xf32>,
    return
  }
  func.func @transform_0(%arg0: i32, %arg1: i32, %arg2: i32) -> (i32, i32) {
    %c0_i32 = arith.constant 0 : i32
    return %arg0, %arg2 : i32, i32
  }
  func.func @transform_1(%arg0: i32, %arg1: i32, %arg2: i32) -> (i32, i32) {
    %c0_i32 = arith.constant 0 : i32
    return %arg2, %arg1 : i32, i32
  }
  func.func @transform_2(%arg0: i32, %arg1: i32, %arg2: i32) -> (i32, i32) {
    %c0_i32 = arith.constant 0 : i32
    %c0_i32_0 = arith.constant 0 : i32
    return %c0_i32, %arg1 : i32, i32
  }
  func.func @transform_3(%arg0: i32, %arg1: i32, %arg2: i32) -> (i32, i32) {
    %c0_i32 = arith.constant 0 : i32
    return %arg0, %arg1 : i32, i32
  }
  func.func @transform_4(%arg0: i32, %arg1: i32, %arg2: i32) -> (i32, i32) {
    %c0_i32 = arith.constant 0 : i32
    return %arg0, %arg1 : i32, i32
  }
}

module attributes {stable_mosaic.version = 11 : i64} {
  func.func @_ln_linear_kernel(%arg0: i32, %arg1: i32, %arg2: memref<16x32xf32, #tpu.memory_space<vmem>>, %arg3: memref<1x32xf32, #tpu.memory_space<vmem>>, %arg4: memref<1x32xf32, #tpu.memory_space<vmem>>, %arg5: memref<32x32xbf16, #tpu.memory_space<vmem>>, %arg6: memref<1x32xf32, #tpu.memory_space<vmem>>, %arg7: memref<16x32xbf16, #tpu.memory_space<vmem>>, %arg8: memref<16x32xbf16, #tpu.memory_space<vmem>>) attributes {dimension_semantics = [#tpu.dimension_semantics<parallel>, #tpu.dimension_semantics<arbitrary>], iteration_bounds = array<i64: 1, 1>, scalar_prefetch = 0 : i64, scratch_operands = 1 : i64, tpu.core_type = #tpu.core_type<tc>, window_params = [{transform_indices = @transform_0, window_bounds = array<i64: 16, 32>}, {pipeline_mode = #tpu.pipeline_mode<synchronous>, transform_indices = @transform_1, window_bounds = array<i64: 1, 32>}, {pipeline_mode = #tpu.pipeline_mode<synchronous>, transform_indices = @transform_2, window_bounds = array<i64: 1, 32>}, {transform_indices = @transform_3, window_bounds = array<i64: 32, 32>}, {transform_indices = @transform_4, window_bounds = array<i64: 1, 32>}, {transform_indices = @transform_5, window_bounds = array<i64: 16, 32>}]} {
    %c0_i32 = arith.constant 0 : i32
    %0 = arith.cmpi eq, %arg1, %c0_i32 : i32
    %1 = arith.extui %0 : i1 to i32
    %c0_i32_0 = arith.constant 0 : i32
    %2 = arith.cmpi ne, %1, %c0_i32_0 : i32
    scf.if %2 {
      %c0_8 = arith.constant 0 : index
      %c0_9 = arith.constant 0 : index
      %11 = vector.load %arg2[%c0_8, %c0_9] : memref<16x32xf32, #tpu.memory_space<vmem>>, vector<16x32xf32>
      %cst_10 = arith.constant dense<0.000000e+00> : vector<16xf32>
      %12 = vector.multi_reduction <add>, %11, %cst_10 [1] : vector<16x32xf32> to vector<16xf32>
      %13 = vector.shape_cast %12 : vector<16xf32> to vector<16x1xf32>
      %cst_11 = arith.constant 3.200000e+01 : f32
      %14 = vector.broadcast %cst_11 : f32 to vector<16x1xf32>
      %15 = arith.divf %13, %14 : vector<16x1xf32>
      %16 = vector.broadcast %15 : vector<16x1xf32> to vector<16x32xf32>
      %17 = arith.subf %11, %16 : vector<16x32xf32>
      %18 = arith.mulf %17, %17 : vector<16x32xf32>
      %cst_12 = arith.constant dense<0.000000e+00> : vector<16xf32>
      %19 = vector.multi_reduction <add>, %18, %cst_12 [1] : vector<16x32xf32> to vector<16xf32>
      %20 = vector.shape_cast %19 : vector<16xf32> to vector<16x1xf32>
      %cst_13 = arith.constant 3.200000e+01 : f32
      %21 = vector.broadcast %cst_13 : f32 to vector<16x1xf32>
      %22 = arith.divf %20, %21 : vector<16x1xf32>
      %23 = vector.broadcast %15 : vector<16x1xf32> to vector<16x32xf32>
      %24 = arith.subf %11, %23 : vector<16x32xf32>
      %cst_14 = arith.constant 9.99999974E-6 : f32
      %25 = vector.broadcast %cst_14 : f32 to vector<16x1xf32>
      %26 = arith.addf %22, %25 : vector<16x1xf32>
      %27 = math.rsqrt %26 : vector<16x1xf32>
      %28 = vector.broadcast %27 : vector<16x1xf32> to vector<16x32xf32>
      %29 = arith.mulf %24, %28 : vector<16x32xf32>
      %c0_15 = arith.constant 0 : index
      %c0_16 = arith.constant 0 : index
      %30 = vector.load %arg3[%c0_15, %c0_16] : memref<1x32xf32, #tpu.memory_space<vmem>>, vector<1x32xf32>
      %31 = vector.broadcast %30 : vector<1x32xf32> to vector<16x32xf32>
      %32 = arith.mulf %29, %31 : vector<16x32xf32>
      %c0_17 = arith.constant 0 : index
      %c0_18 = arith.constant 0 : index
      %33 = vector.load %arg4[%c0_17, %c0_18] : memref<1x32xf32, #tpu.memory_space<vmem>>, vector<1x32xf32>
      %34 = vector.broadcast %33 : vector<1x32xf32> to vector<16x32xf32>
      %35 = arith.addf %32, %34 : vector<16x32xf32>
      %36 = arith.truncf %35 : vector<16x32xf32> to vector<16x32xbf16>
      %c0_19 = arith.constant 0 : index
      %c0_20 = arith.constant 0 : index
      %37 = vector.load %arg8[%c0_19, %c0_20] : memref<16x32xbf16, #tpu.memory_space<vmem>>, vector<16x32xbf16>
      tpu.vector_store %arg8[%c0_19, %c0_20], %36 {strides = array<i32>} : memref<16x32xbf16, #tpu.memory_space<vmem>>, vector<16x32xbf16>,
    } else {
    }
    %c0 = arith.constant 0 : index
    %c0_1 = arith.constant 0 : index
    %3 = vector.load %arg8[%c0, %c0_1] : memref<16x32xbf16, #tpu.memory_space<vmem>>, vector<16x32xbf16>
    %c0_2 = arith.constant 0 : index
    %c0_3 = arith.constant 0 : index
    %4 = vector.load %arg5[%c0_2, %c0_3] : memref<32x32xbf16, #tpu.memory_space<vmem>>, vector<32x32xbf16>
    %cst = arith.constant dense<0.000000e+00> : vector<16x32xf32>
    %5 = tpu.matmul %3, %4, %cst {dimension_numbers = #tpu.dot_dimension_numbers<[1], [0], [0], [1], [0, 0, 1, 1], [], []>} : vector<16x32xbf16>, vector<32x32xbf16>, vector<16x32xf32> -> vector<16x32xf32>
    %c0_4 = arith.constant 0 : index
    %c0_5 = arith.constant 0 : index
    %6 = vector.load %arg6[%c0_4, %c0_5] : memref<1x32xf32, #tpu.memory_space<vmem>>, vector<1x32xf32>
    %7 = vector.broadcast %6 : vector<1x32xf32> to vector<16x32xf32>
    %8 = arith.addf %5, %7 : vector<16x32xf32>
    %9 = arith.truncf %8 : vector<16x32xf32> to vector<16x32xbf16>
    %c0_6 = arith.constant 0 : index
    %c0_7 = arith.constant 0 : index
    %10 = vector.load %arg7[%c0_6, %c0_7] : memref<16x32xbf16, #tpu.memory_space<vmem>>, vector<16x32xbf16>
    tpu.vector_store %arg7[%c0_6, %c0_7], %9 {strides = array<i32>} : memref<16x32xbf16, #tpu.memory_space<vmem>>, vector<16x32xbf16>,
    return
  }
  func.func @transform_0(%arg0: i32, %arg1: i32) -> (i32, i32) {
    %c0_i32 = arith.constant 0 : i32
    %c0_i32_0 = arith.constant 0 : i32
    return %arg0, %c0_i32 : i32, i32
  }
  func.func @transform_1(%arg0: i32, %arg1: i32) -> (i32, i32) {
    %c0_i32 = arith.constant 0 : i32
    %c0_i32_0 = arith.constant 0 : i32
    %c0_i32_1 = arith.constant 0 : i32
    return %c0_i32, %c0_i32_0 : i32, i32
  }
  func.func @transform_2(%arg0: i32, %arg1: i32) -> (i32, i32) {
    %c0_i32 = arith.constant 0 : i32
    %c0_i32_0 = arith.constant 0 : i32
    %c0_i32_1 = arith.constant 0 : i32
    return %c0_i32, %c0_i32_0 : i32, i32
  }
  func.func @transform_3(%arg0: i32, %arg1: i32) -> (i32, i32) {
    %c0_i32 = arith.constant 0 : i32
    %c0_i32_0 = arith.constant 0 : i32
    return %c0_i32, %arg1 : i32, i32
  }
  func.func @transform_4(%arg0: i32, %arg1: i32) -> (i32, i32) {
    %c0_i32 = arith.constant 0 : i32
    %c0_i32_0 = arith.constant 0 : i32
    return %c0_i32, %arg1 : i32, i32
  }
  func.func @transform_5(%arg0: i32, %arg1: i32) -> (i32, i32) {
    %c0_i32 = arith.constant 0 : i32
    return %arg0, %arg1 : i32, i32
  }
}

module attributes {stable_mosaic.version = 11 : i64} {
  func.func @_mha_kernel(%arg0: i32, %arg1: i32, %arg2: i32, %arg3: memref<1x1x8xf32, #tpu.memory_space<vmem>>, %arg4: memref<1x4x8x8xbf16, #tpu.memory_space<vmem>>, %arg5: memref<1x4x8x8xbf16, #tpu.memory_space<vmem>>, %arg6: memref<1x4x8x8xbf16, #tpu.memory_space<vmem>>, %arg7: memref<1x8x32xbf16, #tpu.memory_space<vmem>>, %arg8: memref<4x8x1xf32, #tpu.memory_space<vmem>>, %arg9: memref<4x8x1xf32, #tpu.memory_space<vmem>>, %arg10: memref<4x8x8xf32, #tpu.memory_space<vmem>>) attributes {dimension_semantics = [#tpu.dimension_semantics<parallel>, #tpu.dimension_semantics<parallel>, #tpu.dimension_semantics<arbitrary>], iteration_bounds = array<i64: 2, 1, 1>, scalar_prefetch = 0 : i64, scratch_operands = 3 : i64, tpu.core_type = #tpu.core_type<tc>, window_params = [{transform_indices = @transform_0, window_bounds = array<i64: 1, 1, 8>}, {transform_indices = @transform_1, window_bounds = array<i64: 1, 4, 8, 8>}, {transform_indices = @transform_2, window_bounds = array<i64: 1, 4, 8, 8>}, {transform_indices = @transform_3, window_bounds = array<i64: 1, 4, 8, 8>}, {transform_indices = @transform_4, window_bounds = array<i64: 1, 8, 32>}]} {
    %c0_i32 = arith.constant 0 : i32
    %0 = arith.cmpi eq, %arg2, %c0_i32 : i32
    %1 = arith.extui %0 : i1 to i32
    %c0_i32_0 = arith.constant 0 : i32
    %2 = arith.cmpi ne, %1, %c0_i32_0 : i32
    scf.if %2 {
      %cst_41 = arith.constant 0xFF800000 : f32
      %49 = vector.broadcast %cst_41 : f32 to vector<4x8x1xf32>
      %c0_42 = arith.constant 0 : index
      %c0_43 = arith.constant 0 : index
      %c0_44 = arith.constant 0 : index
      %50 = vector.load %arg8[%c0_42, %c0_43, %c0_44] : memref<4x8x1xf32, #tpu.memory_space<vmem>>, vector<4x8x1xf32>
      tpu.vector_store %arg8[%c0_42, %c0_43, %c0_44], %49 {strides = array<i32>} : memref<4x8x1xf32, #tpu.memory_space<vmem>>, vector<4x8x1xf32>,
      %cst_45 = arith.constant 0.000000e+00 : f32
      %51 = vector.broadcast %cst_45 : f32 to vector<4x8x1xf32>
      %c0_46 = arith.constant 0 : index
      %c0_47 = arith.constant 0 : index
      %c0_48 = arith.constant 0 : index
      %52 = vector.load %arg9[%c0_46, %c0_47, %c0_48] : memref<4x8x1xf32, #tpu.memory_space<vmem>>, vector<4x8x1xf32>
      tpu.vector_store %arg9[%c0_46, %c0_47, %c0_48], %51 {strides = array<i32>} : memref<4x8x1xf32, #tpu.memory_space<vmem>>, vector<4x8x1xf32>,
      %cst_49 = arith.constant 0.000000e+00 : f32
      %53 = vector.broadcast %cst_49 : f32 to vector<4x8x8xf32>
      %c0_50 = arith.constant 0 : index
      %c0_51 = arith.constant 0 : index
      %c0_52 = arith.constant 0 : index
      %54 = vector.load %arg10[%c0_50, %c0_51, %c0_52] : memref<4x8x8xf32, #tpu.memory_space<vmem>>, vector<4x8x8xf32>
      tpu.vector_store %arg10[%c0_50, %c0_51, %c0_52], %53 {strides = array<i32>} : memref<4x8x8xf32, #tpu.memory_space<vmem>>, vector<4x8x8xf32>,
    } else {
    }
    %c0 = arith.constant 0 : index
    %c0_1 = arith.constant 0 : index
    %c0_2 = arith.constant 0 : index
    %3 = vector.load %arg3[%c0, %c0_1, %c0_2] : memref<1x1x8xf32, #tpu.memory_space<vmem>>, vector<1x1x8xf32>
    %4 = vector.shape_cast %3 : vector<1x1x8xf32> to vector<1x8xf32>
    %cst = arith.constant 0.000000e+00 : f32
    %5 = vector.broadcast %cst : f32 to vector<1x8xf32>
    %6 = arith.cmpf one, %4, %5 : vector<1x8xf32>
    %7 = vector.shape_cast %6 : vector<1x8xi1> to vector<1x8xi1>
    %8 = vector.broadcast %7 : vector<1x8xi1> to vector<8x8xi1>
    %c0_3 = arith.constant 0 : index
    %c0_4 = arith.constant 0 : index
    %c0_5 = arith.constant 0 : index
    %c0_6 = arith.constant 0 : index
    %9 = vector.load %arg4[%c0_3, %c0_4, %c0_5, %c0_6] : memref<1x4x8x8xbf16, #tpu.memory_space<vmem>>, vector<1x4x8x8xbf16>
    %10 = vector.shape_cast %9 : vector<1x4x8x8xbf16> to vector<4x8x8xbf16>
    %c0_7 = arith.constant 0 : index
    %c0_8 = arith.constant 0 : index
    %c0_9 = arith.constant 0 : index
    %c0_10 = arith.constant 0 : index
    %11 = vector.load %arg5[%c0_7, %c0_8, %c0_9, %c0_10] : memref<1x4x8x8xbf16, #tpu.memory_space<vmem>>, vector<1x4x8x8xbf16>
    %12 = vector.shape_cast %11 : vector<1x4x8x8xbf16> to vector<4x8x8xbf16>
    "tpu.trace_start"() <{level = 10 : i32, message = "hqd,hkd->hqk"}> : () -> ()
    %cst_11 = arith.constant dense<0.000000e+00> : vector<4x8x8xf32>
    %13 = tpu.matmul %10, %12, %cst_11 {dimension_numbers = #tpu.dot_dimension_numbers<[2], [2], [1], [1], [0, 0, 0, 1, 1, 1], [0], [0]>} : vector<4x8x8xbf16>, vector<4x8x8xbf16>, vector<4x8x8xf32> -> vector<4x8x8xf32>
    "tpu.trace_stop"() : () -> ()
    %cst_12 = arith.constant 0.353553385 : f32
    %14 = vector.broadcast %cst_12 : f32 to vector<4x8x8xf32>
    %15 = arith.mulf %13, %14 : vector<4x8x8xf32>
    %16 = vector.shape_cast %8 : vector<8x8xi1> to vector<1x8x8xi1>
    %cst_13 = arith.constant -1.000000e+04 : f32
    %17 = vector.shape_cast %16 : vector<1x8x8xi1> to vector<1x8x8xi1>
    %18 = vector.broadcast %17 : vector<1x8x8xi1> to vector<4x8x8xi1>
    %19 = vector.broadcast %cst_13 : f32 to vector<4x8x8xf32>
    %20 = arith.select %18, %19, %15 : vector<4x8x8xi1>, vector<4x8x8xf32>
    %c0_14 = arith.constant 0 : index
    %c0_15 = arith.constant 0 : index
    %c0_16 = arith.constant 0 : index
    %21 = vector.load %arg8[%c0_14, %c0_15, %c0_16] : memref<4x8x1xf32, #tpu.memory_space<vmem>>, vector<4x8x1xf32>
    %cst_17 = arith.constant dense<0xFF800000> : vector<4x8xf32>
    %22 = vector.multi_reduction <maximumf>, %20, %cst_17 [2] : vector<4x8x8xf32> to vector<4x8xf32>
    %23 = vector.shape_cast %22 : vector<4x8xf32> to vector<4x8x1xf32>
    %24 = arith.maximumf %21, %23 : vector<4x8x1xf32>
    %25 = arith.subf %21, %24 : vector<4x8x1xf32>
    %26 = math.exp %25 : vector<4x8x1xf32>
    %27 = vector.broadcast %24 : vector<4x8x1xf32> to vector<4x8x8xf32>
    %28 = arith.subf %20, %27 : vector<4x8x8xf32>
    %29 = math.exp %28 : vector<4x8x8xf32>
    %c0_18 = arith.constant 0 : index
    %c0_19 = arith.constant 0 : index
    %c0_20 = arith.constant 0 : index
    %30 = vector.load %arg9[%c0_18, %c0_19, %c0_20] : memref<4x8x1xf32, #tpu.memory_space<vmem>>, vector<4x8x1xf32>
    %31 = arith.mulf %26, %30 : vector<4x8x1xf32>
    %cst_21 = arith.constant dense<0.000000e+00> : vector<4x8xf32>
    %32 = vector.multi_reduction <add>, %29, %cst_21 [2] : vector<4x8x8xf32> to vector<4x8xf32>
    %33 = vector.shape_cast %32 : vector<4x8xf32> to vector<4x8x1xf32>
    %34 = arith.addf %31, %33 : vector<4x8x1xf32>
    %c0_22 = arith.constant 0 : index
    %c0_23 = arith.constant 0 : index
    %c0_24 = arith.constant 0 : index
    %35 = vector.load %arg9[%c0_22, %c0_23, %c0_24] : memref<4x8x1xf32, #tpu.memory_space<vmem>>, vector<4x8x1xf32>
    tpu.vector_store %arg9[%c0_22, %c0_23, %c0_24], %34 {strides = array<i32>} : memref<4x8x1xf32, #tpu.memory_space<vmem>>, vector<4x8x1xf32>,
    %c0_25 = arith.constant 0 : index
    %c0_26 = arith.constant 0 : index
    %c0_27 = arith.constant 0 : index
    %36 = vector.load %arg10[%c0_25, %c0_26, %c0_27] : memref<4x8x8xf32, #tpu.memory_space<vmem>>, vector<4x8x8xf32>
    %37 = vector.broadcast %26 : vector<4x8x1xf32> to vector<4x8x8xf32>
    %38 = arith.mulf %37, %36 : vector<4x8x8xf32>
    %39 = arith.truncf %29 : vector<4x8x8xf32> to vector<4x8x8xbf16>
    %c0_28 = arith.constant 0 : index
    %c0_29 = arith.constant 0 : index
    %c0_30 = arith.constant 0 : index
    %c0_31 = arith.constant 0 : index
    %40 = vector.load %arg6[%c0_28, %c0_29, %c0_30, %c0_31] : memref<1x4x8x8xbf16, #tpu.memory_space<vmem>>, vector<1x4x8x8xbf16>
    %41 = vector.shape_cast %40 : vector<1x4x8x8xbf16> to vector<4x8x8xbf16>
    "tpu.trace_start"() <{level = 10 : i32, message = "hqk,hkd->hqd"}> : () -> ()
    %cst_32 = arith.constant dense<0.000000e+00> : vector<4x8x8xf32>
    %42 = tpu.matmul %39, %41, %cst_32 {dimension_numbers = #tpu.dot_dimension_numbers<[2], [1], [1], [2], [0, 0, 0, 1, 1, 2], [0], [0]>} : vector<4x8x8xbf16>, vector<4x8x8xbf16>, vector<4x8x8xf32> -> vector<4x8x8xf32>
    "tpu.trace_stop"() : () -> ()
    %43 = arith.addf %38, %42 : vector<4x8x8xf32>
    %c0_33 = arith.constant 0 : index
    %c0_34 = arith.constant 0 : index
    %c0_35 = arith.constant 0 : index
    %44 = vector.load %arg10[%c0_33, %c0_34, %c0_35] : memref<4x8x8xf32, #tpu.memory_space<vmem>>, vector<4x8x8xf32>
    tpu.vector_store %arg10[%c0_33, %c0_34, %c0_35], %43 {strides = array<i32>} : memref<4x8x8xf32, #tpu.memory_space<vmem>>, vector<4x8x8xf32>,
    %c0_36 = arith.constant 0 : index
    %c0_37 = arith.constant 0 : index
    %c0_38 = arith.constant 0 : index
    %45 = vector.load %arg8[%c0_36, %c0_37, %c0_38] : memref<4x8x1xf32, #tpu.memory_space<vmem>>, vector<4x8x1xf32>
    tpu.vector_store %arg8[%c0_36, %c0_37, %c0_38], %24 {strides = array<i32>} : memref<4x8x1xf32, #tpu.memory_space<vmem>>, vector<4x8x1xf32>,
    %c0_i32_39 = arith.constant 0 : i32
    %46 = arith.cmpi eq, %arg2, %c0_i32_39 : i32
    %47 = arith.extui %46 : i1 to i32
    %c0_i32_40 = arith.constant 0 : i32
    %48 = arith.cmpi ne, %47, %c0_i32_40 : i32
    scf.if %48 {
      %c0_41 = arith.constant 0 : index
      %c0_42 = arith.constant 0 : index
      %c0_43 = arith.constant 0 : index
      %49 = vector.load %arg9[%c0_41, %c0_42, %c0_43] : memref<4x8x1xf32, #tpu.memory_space<vmem>>, vector<4x8x1xf32>
      %50 = tpu.reciprocal %49 {approx = true} : vector<4x8x1xf32> -> vector<4x8x1xf32>
      %c0_44 = arith.constant 0 : index
      %c0_45 = arith.constant 0 : index
      %c0_46 = arith.constant 0 : index
      %51 = vector.load %arg10[%c0_44, %c0_45, %c0_46] : memref<4x8x8xf32, #tpu.memory_space<vmem>>, vector<1x8x8xf32>
      %52 = vector.shape_cast %51 : vector<1x8x8xf32> to vector<8x8xf32>
      %53 = vector.extract_strided_slice %50 {offsets = [0, 0, 0], sizes = [1, 8, 1], strides = [1, 1, 1]} : vector<4x8x1xf32> to vector<1x8x1xf32>
      %54 = vector.shape_cast %53 : vector<1x8x1xf32> to vector<8x1xf32>
      %55 = vector.broadcast %54 : vector<8x1xf32> to vector<8x8xf32>
      %56 = arith.mulf %52, %55 : vector<8x8xf32>
      %57 = arith.truncf %56 : vector<8x8xf32> to vector<8x8xbf16>
      %c0_47 = arith.constant 0 : index
      %c0_48 = arith.constant 0 : index
      %c0_49 = arith.constant 0 : index
      %58 = vector.load %arg7[%c0_47, %c0_48, %c0_49] : memref<1x8x32xbf16, #tpu.memory_space<vmem>>, vector<1x8x8xbf16>
      %59 = vector.shape_cast %58 : vector<1x8x8xbf16> to vector<8x8xbf16>
      %60 = vector.shape_cast %57 : vector<8x8xbf16> to vector<1x8x8xbf16>
      tpu.vector_store %arg7[%c0_47, %c0_48, %c0_49], %60 {strides = array<i32>} : memref<1x8x32xbf16, #tpu.memory_space<vmem>>, vector<1x8x8xbf16>,
      %c1 = arith.constant 1 : index
      %c0_50 = arith.constant 0 : index
      %c0_51 = arith.constant 0 : index
      %61 = vector.load %arg10[%c1, %c0_50, %c0_51] : memref<4x8x8xf32, #tpu.memory_space<vmem>>, vector<1x8x8xf32>
      %62 = vector.shape_cast %61 : vector<1x8x8xf32> to vector<8x8xf32>
      %63 = vector.extract_strided_slice %50 {offsets = [1, 0, 0], sizes = [1, 8, 1], strides = [1, 1, 1]} : vector<4x8x1xf32> to vector<1x8x1xf32>
      %64 = vector.shape_cast %63 : vector<1x8x1xf32> to vector<8x1xf32>
      %65 = vector.broadcast %64 : vector<8x1xf32> to vector<8x8xf32>
      %66 = arith.mulf %62, %65 : vector<8x8xf32>
      %67 = arith.truncf %66 : vector<8x8xf32> to vector<8x8xbf16>
      %c0_52 = arith.constant 0 : index
      %c0_53 = arith.constant 0 : index
      %c8 = arith.constant 8 : index
      %68 = vector.load %arg7[%c0_52, %c0_53, %c8] : memref<1x8x32xbf16, #tpu.memory_space<vmem>>, vector<1x8x8xbf16>
      %69 = vector.shape_cast %68 : vector<1x8x8xbf16> to vector<8x8xbf16>
      %70 = vector.shape_cast %67 : vector<8x8xbf16> to vector<1x8x8xbf16>
      tpu.vector_store %arg7[%c0_52, %c0_53, %c8], %70 {strides = array<i32>} : memref<1x8x32xbf16, #tpu.memory_space<vmem>>, vector<1x8x8xbf16>,
      %c2 = arith.constant 2 : index
      %c0_54 = arith.constant 0 : index
      %c0_55 = arith.constant 0 : index
      %71 = vector.load %arg10[%c2, %c0_54, %c0_55] : memref<4x8x8xf32, #tpu.memory_space<vmem>>, vector<1x8x8xf32>
      %72 = vector.shape_cast %71 : vector<1x8x8xf32> to vector<8x8xf32>
      %73 = vector.extract_strided_slice %50 {offsets = [2, 0, 0], sizes = [1, 8, 1], strides = [1, 1, 1]} : vector<4x8x1xf32> to vector<1x8x1xf32>
      %74 = vector.shape_cast %73 : vector<1x8x1xf32> to vector<8x1xf32>
      %75 = vector.broadcast %74 : vector<8x1xf32> to vector<8x8xf32>
      %76 = arith.mulf %72, %75 : vector<8x8xf32>
      %77 = arith.truncf %76 : vector<8x8xf32> to vector<8x8xbf16>
      %c0_56 = arith.constant 0 : index
      %c0_57 = arith.constant 0 : index
      %c16 = arith.constant 16 : index
      %78 = vector.load %arg7[%c0_56, %c0_57, %c16] : memref<1x8x32xbf16, #tpu.memory_space<vmem>>, vector<1x8x8xbf16>
      %79 = vector.shape_cast %78 : vector<1x8x8xbf16> to vector<8x8xbf16>
      %80 = vector.shape_cast %77 : vector<8x8xbf16> to vector<1x8x8xbf16>
      tpu.vector_store %arg7[%c0_56, %c0_57, %c16], %80 {strides = array<i32>} : memref<1x8x32xbf16, #tpu.memory_space<vmem>>, vector<1x8x8xbf16>,
      %c3 = arith.constant 3 : index
      %c0_58 = arith.constant 0 : index
      %c0_59 = arith.constant 0 : index
      %81 = vector.load %arg10[%c3, %c0_58, %c0_59] : memref<4x8x8xf32, #tpu.memory_space<vmem>>, vector<1x8x8xf32>
      %82 = vector.shape_cast %81 : vector<1x8x8xf32> to vector<8x8xf32>
      %83 = vector.extract_strided_slice %50 {offsets = [3, 0, 0], sizes = [1, 8, 1], strides = [1, 1, 1]} : vector<4x8x1xf32> to vector<1x8x1xf32>
      %84 = vector.shape_cast %83 : vector<1x8x1xf32> to vector<8x1xf32>
      %85 = vector.broadcast %84 : vector<8x1xf32> to vector<8x8xf32>
      %86 = arith.mulf %82, %85 : vector<8x8xf32>
      %87 = arith.truncf %86 : vector<8x8xf32> to vector<8x8xbf16>
      %c0_60 = arith.constant 0 : index
      %c0_61 = arith.constant 0 : index
      %c24 = arith.constant 24 : index
      %88 = vector.load %arg7[%c0_60, %c0_61, %c24] : memref<1x8x32xbf16, #tpu.memory_space<vmem>>, vector<1x8x8xbf16>
      %89 = vector.shape_cast %88 : vector<1x8x8xbf16> to vector<8x8xbf16>
      %90 = vector.shape_cast %87 : vector<8x8xbf16> to vector<1x8x8xbf16>
      tpu.vector_store %arg7[%c0_60, %c0_61, %c24], %90 {strides = array<i32>} : memref<1x8x32xbf16, #tpu.memory_space<vmem>>, vector<1x8x8xbf16>,
    } else {
    }
    return
  }
  func.func @transform_0(%arg0: i32, %arg1: i32, %arg2: i32) -> (i32, i32, i32) {
    %c0_i32 = arith.constant 0 : i32
    %c0_i32_0 = arith.constant 0 : i32
    return %arg0, %c0_i32, %arg2 : i32, i32, i32
  }
  func.func @transform_1(%arg0: i32, %arg1: i32, %arg2: i32) -> (i32, i32, i32, i32) {
    %c0_i32 = arith.constant 0 : i32
    %c0_i32_0 = arith.constant 0 : i32
    %c0_i32_1 = arith.constant 0 : i32
    return %arg0, %c0_i32, %arg1, %c0_i32_0 : i32, i32, i32, i32
  }
  func.func @transform_2(%arg0: i32, %arg1: i32, %arg2: i32) -> (i32, i32, i32, i32) {
    %c0_i32 = arith.constant 0 : i32
    %c0_i32_0 = arith.constant 0 : i32
    %c0_i32_1 = arith.constant 0 : i32
    return %arg0, %c0_i32, %arg2, %c0_i32_0 : i32, i32, i32, i32
  }
  func.func @transform_3(%arg0: i32, %arg1: i32, %arg2: i32) -> (i32, i32, i32, i32) {
    %c0_i32 = arith.constant 0 : i32
    %c0_i32_0 = arith.constant 0 : i32
    %c0_i32_1 = arith.constant 0 : i32
    return %arg0, %c0_i32, %arg2, %c0_i32_0 : i32, i32, i32, i32
  }
  func.func @transform_4(%arg0: i32, %arg1: i32, %arg2: i32) -> (i32, i32, i32) {
    %c0_i32 = arith.constant 0 : i32
    %c0_i32_0 = arith.constant 0 : i32
    return %arg0, %arg1, %c0_i32 : i32, i32, i32
  }
}

module attributes {stable_mosaic.version = 11 : i64} {
  func.func @_linear_bf16_kernel(%arg0: i32, %arg1: i32, %arg2: i32, %arg3: memref<16x32xf32, #tpu.memory_space<vmem>>, %arg4: memref<32x64xbf16, #tpu.memory_space<vmem>>, %arg5: memref<1x64xf32, #tpu.memory_space<vmem>>, %arg6: memref<16x64xbf16, #tpu.memory_space<vmem>>, %arg7: memref<16x64xf32, #tpu.memory_space<vmem>>) attributes {dimension_semantics = [#tpu.dimension_semantics<parallel>, #tpu.dimension_semantics<parallel>, #tpu.dimension_semantics<arbitrary>], iteration_bounds = array<i64: 1, 1, 1>, scalar_prefetch = 0 : i64, scratch_operands = 1 : i64, tpu.core_type = #tpu.core_type<tc>, window_params = [{transform_indices = @transform_0, window_bounds = array<i64: 16, 32>}, {transform_indices = @transform_1, window_bounds = array<i64: 32, 64>}, {transform_indices = @transform_2, window_bounds = array<i64: 1, 64>}, {transform_indices = @transform_3, window_bounds = array<i64: 16, 64>}]} {
    %c0_i32 = arith.constant 0 : i32
    %0 = arith.cmpi eq, %arg2, %c0_i32 : i32
    %1 = arith.extui %0 : i1 to i32
    %c0_i32_0 = arith.constant 0 : i32
    %2 = arith.cmpi ne, %1, %c0_i32_0 : i32
    scf.if %2 {
      %c0_10 = arith.constant 0 : index
      %c0_11 = arith.constant 0 : index
      %13 = vector.load %arg5[%c0_10, %c0_11] : memref<1x64xf32, #tpu.memory_space<vmem>>, vector<1x64xf32>
      %14 = vector.shape_cast %13 : vector<1x64xf32> to vector<1x64xf32>
      %15 = vector.broadcast %14 : vector<1x64xf32> to vector<16x64xf32>
      %c0_12 = arith.constant 0 : index
      %c0_13 = arith.constant 0 : index
      %16 = vector.load %arg7[%c0_12, %c0_13] : memref<16x64xf32, #tpu.memory_space<vmem>>, vector<16x64xf32>
      tpu.vector_store %arg7[%c0_12, %c0_13], %15 {strides = array<i32>} : memref<16x64xf32, #tpu.memory_space<vmem>>, vector<16x64xf32>,
    } else {
    }
    %c0 = arith.constant 0 : index
    %c0_1 = arith.constant 0 : index
    %3 = vector.load %arg7[%c0, %c0_1] : memref<16x64xf32, #tpu.memory_space<vmem>>, vector<16x64xf32>
    %c0_2 = arith.constant 0 : index
    %c0_3 = arith.constant 0 : index
    %4 = vector.load %arg3[%c0_2, %c0_3] : memref<16x32xf32, #tpu.memory_space<vmem>>, vector<16x32xf32>
    %5 = arith.truncf %4 : vector<16x32xf32> to vector<16x32xbf16>
    %c0_4 = arith.constant 0 : index
    %c0_5 = arith.constant 0 : index
    %6 = vector.load %arg4[%c0_4, %c0_5] : memref<32x64xbf16, #tpu.memory_space<vmem>>, vector<32x64xbf16>
    %cst = arith.constant dense<0.000000e+00> : vector<16x64xf32>
    %7 = tpu.matmul %5, %6, %cst {dimension_numbers = #tpu.dot_dimension_numbers<[1], [0], [0], [1], [0, 0, 1, 1], [], []>} : vector<16x32xbf16>, vector<32x64xbf16>, vector<16x64xf32> -> vector<16x64xf32>
    %8 = arith.addf %3, %7 : vector<16x64xf32>
    %c0_6 = arith.constant 0 : index
    %c0_7 = arith.constant 0 : index
    %9 = vector.load %arg7[%c0_6, %c0_7] : memref<16x64xf32, #tpu.memory_space<vmem>>, vector<16x64xf32>
    tpu.vector_store %arg7[%c0_6, %c0_7], %8 {strides = array<i32>} : memref<16x64xf32, #tpu.memory_space<vmem>>, vector<16x64xf32>,
    %c0_i32_8 = arith.constant 0 : i32
    %10 = arith.cmpi eq, %arg2, %c0_i32_8 : i32
    %11 = arith.extui %10 : i1 to i32
    %c0_i32_9 = arith.constant 0 : i32
    %12 = arith.cmpi ne, %11, %c0_i32_9 : i32
    scf.if %12 {
      %c0_10 = arith.constant 0 : index
      %c0_11 = arith.constant 0 : index
      %13 = vector.load %arg7[%c0_10, %c0_11] : memref<16x64xf32, #tpu.memory_space<vmem>>, vector<16x64xf32>
      %14 = arith.truncf %13 : vector<16x64xf32> to vector<16x64xbf16>
      %c0_12 = arith.constant 0 : index
      %c0_13 = arith.constant 0 : index
      %15 = vector.load %arg6[%c0_12, %c0_13] : memref<16x64xbf16, #tpu.memory_space<vmem>>, vector<16x64xbf16>
      tpu.vector_store %arg6[%c0_12, %c0_13], %14 {strides = array<i32>} : memref<16x64xbf16, #tpu.memory_space<vmem>>, vector<16x64xbf16>,
    } else {
    }
    return
  }
  func.func @transform_0(%arg0: i32, %arg1: i32, %arg2: i32) -> (i32, i32) {
    %c0_i32 = arith.constant 0 : i32
    return %arg0, %arg2 : i32, i32
  }
  func.func @transform_1(%arg0: i32, %arg1: i32, %arg2: i32) -> (i32, i32) {
    %c0_i32 = arith.constant 0 : i32
    return %arg2, %arg1 : i32, i32
  }
  func.func @transform_2(%arg0: i32, %arg1: i32, %arg2: i32) -> (i32, i32) {
    %c0_i32 = arith.constant 0 : i32
    %c0_i32_0 = arith.constant 0 : i32
    return %c0_i32, %arg1 : i32, i32
  }
  func.func @transform_3(%arg0: i32, %arg1: i32, %arg2: i32) -> (i32, i32) {
    %c0_i32 = arith.constant 0 : i32
    return %arg0, %arg1 : i32, i32
  }
}

module attributes {stable_mosaic.version = 11 : i64} {
  func.func @_ln_ffn_kernel(%arg0: i32, %arg1: i32, %arg2: memref<16x32xf32, #tpu.memory_space<vmem>>, %arg3: memref<1x32xf32, #tpu.memory_space<vmem>>, %arg4: memref<1x32xf32, #tpu.memory_space<vmem>>, %arg5: memref<32x64xbf16, #tpu.memory_space<vmem>>, %arg6: memref<1x64xf32, #tpu.memory_space<vmem>>, %arg7: memref<64x32xbf16, #tpu.memory_space<vmem>>, %arg8: memref<1x32xf32, #tpu.memory_space<vmem>>, %arg9: memref<16x32xf32, #tpu.memory_space<vmem>>, %arg10: memref<16x32xbf16, #tpu.memory_space<vmem>>) attributes {dimension_semantics = [#tpu.dimension_semantics<parallel>, #tpu.dimension_semantics<arbitrary>], iteration_bounds = array<i64: 1, 1>, scalar_prefetch = 0 : i64, scratch_operands = 1 : i64, tpu.core_type = #tpu.core_type<tc>, window_params = [{transform_indices = @transform_0, window_bounds = array<i64: 16, 32>}, {pipeline_mode = #tpu.pipeline_mode<synchronous>, transform_indices = @transform_1, window_bounds = array<i64: 1, 32>}, {pipeline_mode = #tpu.pipeline_mode<synchronous>, transform_indices = @transform_2, window_bounds = array<i64: 1, 32>}, {transform_indices = @transform_3, window_bounds = array<i64: 32, 64>}, {transform_indices = @transform_4, window_bounds = array<i64: 1, 64>}, {transform_indices = @transform_5, window_bounds = array<i64: 64, 32>}, {pipeline_mode = #tpu.pipeline_mode<synchronous>, transform_indices = @transform_6, window_bounds = array<i64: 1, 32>}, {transform_indices = @transform_7, window_bounds = array<i64: 16, 32>}]} {
    %c0_i32 = arith.constant 0 : i32
    %0 = arith.cmpi eq, %arg1, %c0_i32 : i32
    %1 = arith.extui %0 : i1 to i32
    %c0_i32_0 = arith.constant 0 : i32
    %2 = arith.cmpi ne, %1, %c0_i32_0 : i32
    scf.if %2 {
      %c0_14 = arith.constant 0 : index
      %c0_15 = arith.constant 0 : index
      %17 = vector.load %arg2[%c0_14, %c0_15] : memref<16x32xf32, #tpu.memory_space<vmem>>, vector<16x32xf32>
      %cst_16 = arith.constant dense<0.000000e+00> : vector<16xf32>
      %18 = vector.multi_reduction <add>, %17, %cst_16 [1] : vector<16x32xf32> to vector<16xf32>
      %19 = vector.shape_cast %18 : vector<16xf32> to vector<16x1xf32>
      %cst_17 = arith.constant 3.200000e+01 : f32
      %20 = vector.broadcast %cst_17 : f32 to vector<16x1xf32>
      %21 = arith.divf %19, %20 : vector<16x1xf32>
      %22 = vector.broadcast %21 : vector<16x1xf32> to vector<16x32xf32>
      %23 = arith.subf %17, %22 : vector<16x32xf32>
      %24 = arith.mulf %23, %23 : vector<16x32xf32>
      %cst_18 = arith.constant dense<0.000000e+00> : vector<16xf32>
      %25 = vector.multi_reduction <add>, %24, %cst_18 [1] : vector<16x32xf32> to vector<16xf32>
      %26 = vector.shape_cast %25 : vector<16xf32> to vector<16x1xf32>
      %cst_19 = arith.constant 3.200000e+01 : f32
      %27 = vector.broadcast %cst_19 : f32 to vector<16x1xf32>
      %28 = arith.divf %26, %27 : vector<16x1xf32>
      %29 = vector.broadcast %21 : vector<16x1xf32> to vector<16x32xf32>
      %30 = arith.subf %17, %29 : vector<16x32xf32>
      %cst_20 = arith.constant 9.99999974E-6 : f32
      %31 = vector.broadcast %cst_20 : f32 to vector<16x1xf32>
      %32 = arith.addf %28, %31 : vector<16x1xf32>
      %33 = math.rsqrt %32 : vector<16x1xf32>
      %34 = vector.broadcast %33 : vector<16x1xf32> to vector<16x32xf32>
      %35 = arith.mulf %30, %34 : vector<16x32xf32>
      %c0_21 = arith.constant 0 : index
      %c0_22 = arith.constant 0 : index
      %36 = vector.load %arg3[%c0_21, %c0_22] : memref<1x32xf32, #tpu.memory_space<vmem>>, vector<1x32xf32>
      %37 = vector.broadcast %36 : vector<1x32xf32> to vector<16x32xf32>
      %38 = arith.mulf %35, %37 : vector<16x32xf32>
      %c0_23 = arith.constant 0 : index
      %c0_24 = arith.constant 0 : index
      %39 = vector.load %arg4[%c0_23, %c0_24] : memref<1x32xf32, #tpu.memory_space<vmem>>, vector<1x32xf32>
      %40 = vector.broadcast %39 : vector<1x32xf32> to vector<16x32xf32>
      %41 = arith.addf %38, %40 : vector<16x32xf32>
      %42 = arith.truncf %41 : vector<16x32xf32> to vector<16x32xbf16>
      %c0_25 = arith.constant 0 : index
      %c0_26 = arith.constant 0 : index
      %43 = vector.load %arg10[%c0_25, %c0_26] : memref<16x32xbf16, #tpu.memory_space<vmem>>, vector<16x32xbf16>
      tpu.vector_store %arg10[%c0_25, %c0_26], %42 {strides = array<i32>} : memref<16x32xbf16, #tpu.memory_space<vmem>>, vector<16x32xbf16>,
      %c0_27 = arith.constant 0 : index
      %c0_28 = arith.constant 0 : index
      %44 = vector.load %arg8[%c0_27, %c0_28] : memref<1x32xf32, #tpu.memory_space<vmem>>, vector<1x32xf32>
      %45 = vector.broadcast %44 : vector<1x32xf32> to vector<16x32xf32>
      %46 = arith.addf %17, %45 : vector<16x32xf32>
      %c0_29 = arith.constant 0 : index
      %c0_30 = arith.constant 0 : index
      %47 = vector.load %arg9[%c0_29, %c0_30] : memref<16x32xf32, #tpu.memory_space<vmem>>, vector<16x32xf32>
      tpu.vector_store %arg9[%c0_29, %c0_30], %46 {strides = array<i32>} : memref<16x32xf32, #tpu.memory_space<vmem>>, vector<16x32xf32>,
    } else {
    }
    %c0 = arith.constant 0 : index
    %c0_1 = arith.constant 0 : index
    %3 = vector.load %arg10[%c0, %c0_1] : memref<16x32xbf16, #tpu.memory_space<vmem>>, vector<16x32xbf16>
    %c0_2 = arith.constant 0 : index
    %c0_3 = arith.constant 0 : index
    %4 = vector.load %arg5[%c0_2, %c0_3] : memref<32x64xbf16, #tpu.memory_space<vmem>>, vector<32x64xbf16>
    %cst = arith.constant dense<0.000000e+00> : vector<16x64xf32>
    %5 = tpu.matmul %3, %4, %cst {dimension_numbers = #tpu.dot_dimension_numbers<[1], [0], [0], [1], [0, 0, 1, 1], [], []>} : vector<16x32xbf16>, vector<32x64xbf16>, vector<16x64xf32> -> vector<16x64xf32>
    %c0_4 = arith.constant 0 : index
    %c0_5 = arith.constant 0 : index
    %6 = vector.load %arg6[%c0_4, %c0_5] : memref<1x64xf32, #tpu.memory_space<vmem>>, vector<1x64xf32>
    %7 = vector.broadcast %6 : vector<1x64xf32> to vector<16x64xf32>
    %8 = arith.addf %5, %7 : vector<16x64xf32>
    %cst_6 = arith.constant 0.000000e+00 : f32
    %9 = vector.broadcast %cst_6 : f32 to vector<16x64xf32>
    %10 = arith.maximumf %8, %9 : vector<16x64xf32>
    %c0_7 = arith.constant 0 : index
    %c0_8 = arith.constant 0 : index
    %11 = vector.load %arg9[%c0_7, %c0_8] : memref<16x32xf32, #tpu.memory_space<vmem>>, vector<16x32xf32>
    %12 = arith.truncf %10 : vector<16x64xf32> to vector<16x64xbf16>
    %c0_9 = arith.constant 0 : index
    %c0_10 = arith.constant 0 : index
    %13 = vector.load %arg7[%c0_9, %c0_10] : memref<64x32xbf16, #tpu.memory_space<vmem>>, vector<64x32xbf16>
    %cst_11 = arith.constant dense<0.000000e+00> : vector<16x32xf32>
    %14 = tpu.matmul %12, %13, %cst_11 {dimension_numbers = #tpu.dot_dimension_numbers<[1], [0], [0], [1], [0, 0, 1, 1], [], []>} : vector<16x64xbf16>, vector<64x32xbf16>, vector<16x32xf32> -> vector<16x32xf32>
    %15 = arith.addf %11, %14 : vector<16x32xf32>
    %c0_12 = arith.constant 0 : index
    %c0_13 = arith.constant 0 : index
    %16 = vector.load %arg9[%c0_12, %c0_13] : memref<16x32xf32, #tpu.memory_space<vmem>>, vector<16x32xf32>
    tpu.vector_store %arg9[%c0_12, %c0_13], %15 {strides = array<i32>} : memref<16x32xf32, #tpu.memory_space<vmem>>, vector<16x32xf32>,
    return
  }
  func.func @transform_0(%arg0: i32, %arg1: i32) -> (i32, i32) {
    %c0_i32 = arith.constant 0 : i32
    %c0_i32_0 = arith.constant 0 : i32
    return %arg0, %c0_i32 : i32, i32
  }
  func.func @transform_1(%arg0: i32, %arg1: i32) -> (i32, i32) {
    %c0_i32 = arith.constant 0 : i32
    %c0_i32_0 = arith.constant 0 : i32
    %c0_i32_1 = arith.constant 0 : i32
    return %c0_i32, %c0_i32_0 : i32, i32
  }
  func.func @transform_2(%arg0: i32, %arg1: i32) -> (i32, i32) {
    %c0_i32 = arith.constant 0 : i32
    %c0_i32_0 = arith.constant 0 : i32
    %c0_i32_1 = arith.constant 0 : i32
    return %c0_i32, %c0_i32_0 : i32, i32
  }
  func.func @transform_3(%arg0: i32, %arg1: i32) -> (i32, i32) {
    %c0_i32 = arith.constant 0 : i32
    %c0_i32_0 = arith.constant 0 : i32
    return %c0_i32, %arg1 : i32, i32
  }
  func.func @transform_4(%arg0: i32, %arg1: i32) -> (i32, i32) {
    %c0_i32 = arith.constant 0 : i32
    %c0_i32_0 = arith.constant 0 : i32
    return %c0_i32, %arg1 : i32, i32
  }
  func.func @transform_5(%arg0: i32, %arg1: i32) -> (i32, i32) {
    %c0_i32 = arith.constant 0 : i32
    %c0_i32_0 = arith.constant 0 : i32
    return %arg1, %c0_i32 : i32, i32
  }
  func.func @transform_6(%arg0: i32, %arg1: i32) -> (i32, i32) {
    %c0_i32 = arith.constant 0 : i32
    %c0_i32_0 = arith.constant 0 : i32
    %c0_i32_1 = arith.constant 0 : i32
    return %c0_i32, %c0_i32_0 : i32, i32
  }
  func.func @transform_7(%arg0: i32, %arg1: i32) -> (i32, i32) {
    %c0_i32 = arith.constant 0 : i32
    %c0_i32_0 = arith.constant 0 : i32
    return %arg0, %c0_i32 : i32, i32
  }
}

module attributes {stable_mosaic.version = 11 : i64} {
  func.func @_linear_f32_kernel(%arg0: i32, %arg1: i32, %arg2: i32, %arg3: memref<16x32xf32, #tpu.memory_space<vmem>>, %arg4: memref<32x32xbf16, #tpu.memory_space<vmem>>, %arg5: memref<1x32xf32, #tpu.memory_space<vmem>>, %arg6: memref<16x32xf32, #tpu.memory_space<vmem>>) attributes {dimension_semantics = [#tpu.dimension_semantics<parallel>, #tpu.dimension_semantics<parallel>, #tpu.dimension_semantics<arbitrary>], iteration_bounds = array<i64: 1, 1, 1>, scalar_prefetch = 0 : i64, scratch_operands = 0 : i64, tpu.core_type = #tpu.core_type<tc>, window_params = [{transform_indices = @transform_0, window_bounds = array<i64: 16, 32>}, {transform_indices = @transform_1, window_bounds = array<i64: 32, 32>}, {transform_indices = @transform_2, window_bounds = array<i64: 1, 32>}, {transform_indices = @transform_3, window_bounds = array<i64: 16, 32>}]} {
    %c0_i32 = arith.constant 0 : i32
    %0 = arith.cmpi eq, %arg2, %c0_i32 : i32
    %1 = arith.extui %0 : i1 to i32
    %c0_i32_0 = arith.constant 0 : i32
    %2 = arith.cmpi ne, %1, %c0_i32_0 : i32
    scf.if %2 {
      %c0_8 = arith.constant 0 : index
      %c0_9 = arith.constant 0 : index
      %10 = vector.load %arg5[%c0_8, %c0_9] : memref<1x32xf32, #tpu.memory_space<vmem>>, vector<1x32xf32>
      %11 = vector.shape_cast %10 : vector<1x32xf32> to vector<1x32xf32>
      %12 = vector.broadcast %11 : vector<1x32xf32> to vector<16x32xf32>
      %c0_10 = arith.constant 0 : index
      %c0_11 = arith.constant 0 : index
      %13 = vector.load %arg6[%c0_10, %c0_11] : memref<16x32xf32, #tpu.memory_space<vmem>>, vector<16x32xf32>
      tpu.vector_store %arg6[%c0_10, %c0_11], %12 {strides = array<i32>} : memref<16x32xf32, #tpu.memory_space<vmem>>, vector<16x32xf32>,
    } else {
    }
    %c0 = arith.constant 0 : index
    %c0_1 = arith.constant 0 : index
    %3 = vector.load %arg6[%c0, %c0_1] : memref<16x32xf32, #tpu.memory_space<vmem>>, vector<16x32xf32>
    %c0_2 = arith.constant 0 : index
    %c0_3 = arith.constant 0 : index
    %4 = vector.load %arg3[%c0_2, %c0_3] : memref<16x32xf32, #tpu.memory_space<vmem>>, vector<16x32xf32>
    %5 = arith.truncf %4 : vector<16x32xf32> to vector<16x32xbf16>
    %c0_4 = arith.constant 0 : index
    %c0_5 = arith.constant 0 : index
    %6 = vector.load %arg4[%c0_4, %c0_5] : memref<32x32xbf16, #tpu.memory_space<vmem>>, vector<32x32xbf16>
    %cst = arith.constant dense<0.000000e+00> : vector<16x32xf32>
    %7 = tpu.matmul %5, %6, %cst {dimension_numbers = #tpu.dot_dimension_numbers<[1], [0], [0], [1], [0, 0, 1, 1], [], []>} : vector<16x32xbf16>, vector<32x32xbf16>, vector<16x32xf32> -> vector<16x32xf32>
    %8 = arith.addf %3, %7 : vector<16x32xf32>
    %c0_6 = arith.constant 0 : index
    %c0_7 = arith.constant 0 : index
    %9 = vector.load %arg6[%c0_6, %c0_7] : memref<16x32xf32, #tpu.memory_space<vmem>>, vector<16x32xf32>
    tpu.vector_store %arg6[%c0_6, %c0_7], %8 {strides = array<i32>} : memref<16x32xf32, #tpu.memory_space<vmem>>, vector<16x32xf32>,
    return
  }
  func.func @transform_0(%arg0: i32, %arg1: i32, %arg2: i32) -> (i32, i32) {
    %c0_i32 = arith.constant 0 : i32
    return %arg0, %arg2 : i32, i32
  }
  func.func @transform_1(%arg0: i32, %arg1: i32, %arg2: i32) -> (i32, i32) {
    %c0_i32 = arith.constant 0 : i32
    return %arg2, %arg1 : i32, i32
  }
  func.func @transform_2(%arg0: i32, %arg1: i32, %arg2: i32) -> (i32, i32) {
    %c0_i32 = arith.constant 0 : i32
    %c0_i32_0 = arith.constant 0 : i32
    return %c0_i32, %arg1 : i32, i32
  }
  func.func @transform_3(%arg0: i32, %arg1: i32, %arg2: i32) -> (i32, i32) {
    %c0_i32 = arith.constant 0 : i32
    return %arg0, %arg1 : i32, i32
  }
}

</mosaic_0001>

<bundles_post_ra>
// kernel: _lambda_.33
= control target key start
LH: loop header
LB: loop body
LE: loop exit
PB: predicated region body
PF: predicated region fallthrough
CT: control target
= control target key end

     0   :  { %vm27_vm0 = vcmask 261120   ;;  %v176_v4 = vmov 32.0   ;;  %vm93_vm6 = vcmask 257024   ;;  %vm143_vm9 = vcmask 781312   ;;  %s239_s0 = inlined_call_operand.vmem [shape: f32[16,32], index: 0, kind: input, shape index: {}]   ;;  %s240_s1 = inlined_call_operand.vmem [shape: f32[1,32], index: 1, kind: input, shape index: {}]   ;;  %s241_s2 = inlined_call_operand.vmem [shape: f32[1,32], index: 2, kind: input, shape index: {}]   ;;  %s242_s4 = inlined_call_operand.vmem [shape: f32[1,96], index: 4, kind: input, shape index: {}]   ;;  %s243_s3 = inlined_call_operand.vmem [shape: bf16[32,96], index: 3, kind: input, shape index: {}]   ;;  %s244_s5 = inlined_call_operand.vmem [shape: bf16[16,96], index: 5, kind: output, shape index: {}]  }
   0x1   :  { %v25_v0 = vld [vmem:[%s239_s0] sm:$0xff]  ;;  %v26_v2 = vld [vmem:[%s239_s0 + $0x8] sm:$0xff]  ;;  %170 = vrcp.f32 %v176_v4 }
   0x2   :  { %v28_v1 = vsel %vm27_vm0, %v25_v0, 0.0  ;;  %v31_v3 = vsel %vm27_vm0, %v26_v2, 0.0  ;;  %v165_v24 = vld [vmem:[%s243_s3 + $0x8] sm:$0xff]  ;;  %v164_v27 = vld [vmem:[%s243_s3] sm:$0xff] }
   0x3   :  { %29 = vadd.xlane.f32.xlu0 %v28_v1  ;;  %133 = vmatpush.bf16.msra.mxu0 %v165_v24  ;;  %v167_v37 = vld [vmem:[%s240_s1] ss:$0 sm:$0xff] }
   0x4   :  { %v168_v40 = vld [vmem:[%s241_s2] ss:$0 sm:$0xff] }
   0x5   :  { %v169_v54 = vld [vmem:[%s242_s4] ss:$0 sm:$0xff] }
   0x7   :  { %v171_v5 = vpop.eup %170  ;;  %134 = vmatpush.bf16.msra.mxu0 %v164_v27 }
   0x8   :  { %v35_v6 = vmul.f32 32.0, %v171_v5  ;;  %vm39_vm1 = vweird.f32 %v171_v5 }
   0xa   :  { %v36_v7 = vsub.f32 1.0, %v35_v6 }
   0xb   :  { %32 = vadd.xlane.f32.xlu0 %v31_v3 }
   0xc   :  { %v37_v8 = vmul.f32 %v171_v5, %v36_v7 }
   0xe   :  { %v38_v9 = vadd.f32 %v171_v5, %v37_v8 }
  0x10   :  { %v40_v10 = vsel %vm39_vm1, %v171_v5, %v38_v9 }
  0x76   :  { %v30_v11 = vpop.xlane.xlu0 %29 }
  0x77   :  { %v41_v12 = vmul.f32 %v40_v10, %v30_v11 }
  0x79   :  { %v43_v13 = vsub.f32 %v25_v0, %v41_v12 }
  0x7b   :  { %v45_v14 = vmul.f32 %v43_v13, %v43_v13 }
  0x7d   :  { %v47_v15 = vsel %vm27_vm0, %v45_v14, 0.0 }
  0x7e   :  { %48 = vadd.xlane.f32.xlu1 %v47_v15  ;;  %v33_v16 = vpop.xlane.xlu0 %32 }
  0x7f   :  { %v42_v17 = vmul.f32 %v40_v10, %v33_v16 }
  0x81   :  { %v44_v18 = vsub.f32 %v26_v2, %v42_v17 }
  0x83   :  { %v46_v19 = vmul.f32 %v44_v18, %v44_v18 }
  0x85   :  { %v50_v20 = vsel %vm27_vm0, %v46_v19, 0.0 }
  0x86   :  { %51 = vadd.xlane.f32.xlu1 %v50_v20 }
  0xf1   :  { %v49_v21 = vpop.xlane.xlu1 %48 }
  0xf2   :  { %v53_v22 = vmul.f32 %v49_v21, %v40_v10 }
  0xf4   :  { %v55_v23 = vadd.f32 1e-05, %v53_v22 }
  0xf6   :  { %172 = vrsqrt.f32 %v55_v23  ;;  %vm63_vm3 = vweird.f32 %v55_v23 }
  0xf9   :  { %v52_v25 = vpop.xlane.xlu1 %51 }
  0xfa   :  { %v54_v26 = vmul.f32 %v52_v25, %v40_v10 }
  0xfc   :  { %v173_v28 = vpop.eup %172  ;;  %v56_v29 = vadd.f32 1e-05, %v54_v26 }
  0xfd   :  { %v58_v30 = vmul.f32 %v173_v28, %v55_v23  ;;  %vm64_vm2 = vweird.f32 %v173_v28 }
  0xfe   :  { %174 = vrsqrt.f32 %v56_v29  ;;  %vm65_vm4 = vmor %vm63_vm3, %vm64_vm2  ;;  %vm73_vm7 = vweird.f32 %v56_v29 }
  0xff   :  { %v59_v31 = vmul.f32 %v173_v28, %v58_v30 }
 0x101   :  { %v60_v32 = vmul.f32 0.5, %v59_v31 }
 0x103   :  { %v61_v33 = vsub.f32 1.5, %v60_v32 }
 0x104   :  { %v175_v34 = vpop.eup %174 }
 0x105   :  { %v62_v35 = vmul.f32 %v173_v28, %v61_v33  ;;  %v68_v36 = vmul.f32 %v175_v34, %v56_v29  ;;  %vm74_vm5 = vweird.f32 %v175_v34 }
 0x106   :  { %vm75_vm8 = vmor %vm73_vm7, %vm74_vm5 }
 0x107   :  { %v66_v38 = vsel %vm65_vm4, %v173_v28, %v62_v35  ;;  %v69_v39 = vmul.f32 %v175_v34, %v68_v36 }
 0x108   :  { %v77_v41 = vmul.f32 %v66_v38, %v43_v13 }
 0x109   :  { %v70_v42 = vmul.f32 0.5, %v69_v39 }
 0x10a   :  { %v83_v43 = vmul.f32 %v167_v37, %v77_v41 }
 0x10b   :  { %v71_v44 = vsub.f32 1.5, %v70_v42 }
 0x10c   :  { %v89_v45 = vadd.f32 %v168_v40, %v83_v43 }
 0x10d   :  { %v72_v46 = vmul.f32 %v175_v34, %v71_v44 }
 0x10e   :  { %v91_v47 = vpack.c.bf16 %v89_v45, %v89_v45 }
 0x10f   :  { %v76_v48 = vsel %vm75_vm8, %v175_v34, %v72_v46 }
 0x110   :  { %94 = vst.msk [vmem:[#allocation2] sm:$0xf] %vm93_vm6, %v91_v47  ;;  %v78_v49 = vmul.f32 %v76_v48, %v44_v18 }
 0x112   :  { %v84_v50 = vmul.f32 %v167_v37, %v78_v49 }
 0x114   :  { %v90_v51 = vadd.f32 %v168_v40, %v84_v50 }
 0x116   :  { %v92_v52 = vpack.c.bf16 %v90_v51, %v90_v51 }
 0x118   :  { %95 = vst.msk [vmem:[#allocation2 + $0x4] sm:$0xf] %vm93_vm6, %v92_v52 }
 0x11f   :  { %v163_v53 = vld [vmem:[#allocation2] sm:$0xff] }
 0x120   :  { %162 = vmatmul.msk.bf16.vlgmr.msra.gmra.mxu0 %vm27_vm0, %v163_v53 }
 0x19d   :  { %v136_v55 = vpop.f32.mrf.mxu0 }
 0x19e   :  { %v137_v56 = vadd.f32 %v169_v54, %v136_v55 }
 0x1a0   :  { %v141_v57 = vpack.c.bf16 %v137_v56, %v137_v56 }
 0x1a2   :  { %144 = vst.msk [vmem:[%s244_s5] sm:$0xf] %vm143_vm9, %v141_v57 }
 0x1a5   :  { %v138_v58 = vpop.f32.mrf.mxu0 }
 0x1a6   :  { %v139_v59 = vadd.f32 %v169_v54, %v138_v58 }
 0x1a8   :  { %v142_v60 = vpack.c.bf16 %v139_v59, %v139_v59 }
 0x1aa   :  { %145 = vst.msk [vmem:[%s244_s5 + $0x4] sm:$0xf] %vm143_vm9, %v142_v60 }

// kernel: _lambda_.35
= control target key start
LH: loop header
LB: loop body
LE: loop exit
PB: predicated region body
PF: predicated region fallthrough
CT: control target
= control target key end

     0   :  { %vm30_vm0 = vcmask 261120   ;;  %s162_s1 = inlined_call_operand.vmem [shape: bf16[32,32], index: 1, kind: input, shape index: {}]   ;;  %s163_s2 = inlined_call_operand.vmem [shape: f32[1,32], index: 2, kind: input, shape index: {}]   ;;  %s164_s3 = inlined_call_operand.vmem [shape: f32[16,32], index: 3, kind: input, shape index: {}]   ;;  %s165_s0 = inlined_call_operand.vmem [shape: bf16[16,32], index: 0, kind: input, shape index: {}]   ;;  %s166_s4 = inlined_call_operand.vmem [shape: f32[16,32], index: 4, kind: output, shape index: {}]  }
   0x1   :  { %v99_v0 = vld [vmem:[%s162_s1 + $0x8] sm:$0xff]  ;;  %v22_v1 = vld [vmem:[%s164_s3] sm:$0xff] }
   0x2   :  { %v100_v2 = vld [vmem:[%s163_s2] ss:$0 sm:$0xff]  ;;  %68 = vmatpush.bf16.msra.mxu0 %v99_v0  ;;  %v23_v6 = vld [vmem:[%s164_s3 + $0x8] sm:$0xff] }
   0x3   :  { %v98_v3 = vld [vmem:[%s162_s1] sm:$0xff]  ;;  %v28_v4 = vadd.f32 %v100_v2, %v22_v1  ;;  %v29_v7 = vadd.f32 %v100_v2, %v23_v6 }
   0x4   :  { %v97_v5 = vld [vmem:[%s165_s0] sm:$0xff] }
   0x5   :  { %31 = vst.msk [vmem:[%s166_s4] sm:$0xff] %vm30_vm0, %v28_v4 }
   0x6   :  { %69 = vmatpush.bf16.msra.mxu0 %v98_v3  ;;  %32 = vst.msk [vmem:[%s166_s4 + $0x8] sm:$0xff] %vm30_vm0, %v29_v7 }
   0x9   :  { %96 = vmatmul.msk.bf16.vlgmr.msra.gmra.mxu0 %vm30_vm0, %v97_v5 }
   0xc   :  { %v33_v8 = vld [vmem:[%s166_s4] sm:$0xff] }
   0xd   :  { %v34_v11 = vld [vmem:[%s166_s4 + $0x8] sm:$0xff] }
  0x86   :  { %v71_v9 = vpop.f32.mrf.mxu0 }
  0x87   :  { %v76_v10 = vadd.f32 %v71_v9, %v33_v8 }
  0x89   :  { %78 = vst.msk [vmem:[%s166_s4] sm:$0xff] %vm30_vm0, %v76_v10 }
  0x8e   :  { %v73_v12 = vpop.f32.mrf.mxu0 }
  0x8f   :  { %v77_v13 = vadd.f32 %v73_v12, %v34_v11 }
  0x91   :  { %79 = vst.msk [vmem:[%s166_s4 + $0x8] sm:$0xff] %vm30_vm0, %v77_v13 }

// kernel: _lambda_.34
= control target key start
LH: loop header
LB: loop body
LE: loop exit
PB: predicated region body
PF: predicated region fallthrough
CT: control target
= control target key end

     0   :  { %s1008_s15 = smov 0   ;;  %s1010_s16 = smov 0   ;;  %s1164_s0 = inlined_call_operand.vmem [shape: f32[2,1,8], index: 0, kind: input, shape index: {}]   ;;  %s1165_s1 = inlined_call_operand.vmem [shape: bf16[2,4,8,8], index: 1, kind: input, shape index: {}]   ;;  %s1166_s2 = inlined_call_operand.vmem [shape: bf16[2,4,8,8], index: 2, kind: input, shape index: {}]   ;;  %s1167_s3 = inlined_call_operand.vmem [shape: bf16[2,4,8,8], index: 3, kind: input, shape index: {}]   ;;  %s1168_s4 = inlined_call_operand.vmem [shape: bf16[2,8,32], index: 4, kind: output, shape index: {}]  }
   0x1   :  { %s1012_s17 = smov 0  }
   0x2 LB: > { %s33_s18 = sadd.s32 1, %s971_s16  ;;  %p875_p0 = scmp.ge.s32.totalorder %s975_s17, 1  ;;  %s975_s17 = sphi %s1012_s17, %s14_s17   ;;  %s971_s16 = sphi %s1010_s16, %s1172_s16   ;;  %s967_s15 = sphi %s1008_s15, %s1171_s15  }
   0x3   : > { %p35_p1 = scmp.ge.s32.totalorder %s33_s18, 2  ;;  %p231_p2 = scmp.lt.s32.totalorder %s975_s17, 3 }
   0x5   : > { %s1174_s18 = smov (%p35_p1, %s33_s18), 0  ;;  %p232_p3 = pnand %p875_p0, %p231_p2 }
   0x6   : > { %p284_p4 = scmp.lt.s32.totalorder (!%p232_p3), %s967_s15, 1  ;;  %s980_s6 = smov (!%p232_p3), 8  }
   0x7   : > { %235 = sbr.rel (%p232_p3) target bundleno = 774 (0x306), region = 36  ;;  %s981_s7 = smov (!%p232_p3), 24  }
   0x8   : > { %s982_s8 = smov (!%p232_p3), 16  }
   0xc   : > { %s1176_s15 = smov (!%p284_p4, %s967_s15), 1  ;;  %vm335_vm0 = vcmask 64512   ;;  %v977_v12 = vmov 0   ;;  %vm326_vm2 = vcmask 7168   ;;  %v978_v14 = vmov -inf  }
   0xd   : > { %s1029_s19 = sshll.u32 %s1176_s15, 4  ;;  %928 = vset.pattern.permute.xlu0 %v977_v12  ;;  %926 = vset.pattern.permute.xlu1 %v977_v12  ;;  %s289_s28 = scalar_lea.vmem %s1164_s0, %s1176_s15  ;;  %328 = vst.msk [vmem:[#allocation2 + $0x8] sm:$0xff] %vm326_vm2, %v978_v14  ;;  %v353_v15 = vlaneseq  ;;  %v979_v41 = vmov 0.0   ;;  %vm591_vm6 = vcmask 1043456   ;;  %vm696_vm7 = vcmask 60416  }
   0xe   : > { %s305_s22 = scalar_lea.vmem %s1166_s2, %s1029_s19  ;;  %s297_s25 = scalar_lea.vmem %s1165_s1, %s1029_s19  ;;  %927 = vset.pattern.permute.xlu2 %v977_v12  ;;  %v348_v13 = vld [vmem:[%s289_s28] sm:$0x1]  ;;  %327 = vst.msk [vmem:[#allocation2] sm:$0xff] %vm326_vm2, %v978_v14  ;;  %vm711_vm8 = vcmask 126016   ;;  %vm726_vm9 = vcmask 191616   ;;  %vm741_vm10 = vcmask 257216  }
   0xf   : > { %v369_v0 = vld [vmem:[%s305_s22 + $0x4] sm:$0xf]  ;;  %v370_v1 = vld [vmem:[%s305_s22 + $0x8] sm:$0xf]  ;;  %v371_v4 = vld [vmem:[%s305_s22 + $0xc] sm:$0xf]  ;;  %s313_s5 = scalar_lea.vmem %s1167_s3, %s1029_s19 }
  0x10   : > { %v396_v2 = vsel %vm335_vm0, %v369_v0, 0  ;;  %v415_v3 = vsel %vm335_vm0, %v370_v1, 0  ;;  %v434_v5 = vsel %vm335_vm0, %v371_v4, 0  ;;  %v368_v6 = vld [vmem:[%s305_s22] sm:$0xf]  ;;  %vm349_vm1 = vcmp.ne.f32.partialorder %v348_v13, 0.0 }
  0x11   : > { %405 = vmatpush.bf16.xpose.msra.mxu1 %v396_v2  ;;  %424 = vmatpush.bf16.xpose.msra.mxu2 %v415_v3  ;;  %v377_v7 = vsel %vm335_vm0, %v368_v6, 0  ;;  %v365_v8 = vld [vmem:[%s297_s25 + $0x4] sm:$0xf]  ;;  %v366_v9 = vld [vmem:[%s297_s25 + $0x8] sm:$0xf]  ;;  %v350_v16 = vsel %vm349_vm1, 1, %v977_v12 }
  0x12   : > { %443 = vmatpush.bf16.xpose.msra.mxu3 %v434_v5  ;;  %386 = vmatpush.bf16.xpose.msra.mxu0 %v377_v7  ;;  %v367_v10 = vld [vmem:[%s297_s25 + $0xc] sm:$0xf]  ;;  %v364_v11 = vld [vmem:[%s297_s25] sm:$0xf]  ;;  %329 = vst.msk [vmem:[#allocation2 + $0x10] sm:$0xff] %vm326_vm2, %v978_v14  ;;  %v351_v17 = vperm.slane %v350_v16, 0 }
  0x13   : > { %330 = vst.msk [vmem:[#allocation2 + $0x18] sm:$0xff] %vm326_vm2, %v978_v14  ;;  %v354_v18 = vshrl.u32 %v353_v15, 7  ;;  %v359_v19 = vand.u32 127, %v353_v15  ;;  %v587_v58 = vld [vmem:[%s313_s5 + $0xc] sm:$0xf]  ;;  %s882_s9 = sshll.u32 %s1176_s15, 2 }
  0x14   : > { %vm352_vm3 = vcmp.eq.s32.totalorder %v351_v17, 1  ;;  %334 = vst.msk [vmem:[#allocation3 + $0x18] sm:$0xff] %vm326_vm2, %v979_v41  ;;  %v1088_v42 = vld [vmem:[#allocation2 + $0x8] sm:$0xff]  ;;  %v650_v59 = vsel %vm591_vm6, %v587_v58, 0  ;;  %v584_v60 = vld [vmem:[%s313_s5] sm:$0xf]  ;;  %s320_s12 = scalar_lea.vmem %s1168_s4, %s882_s9 }
  0x15   : > { %vm362_vm4 = vcmp.gt.s32.totalorder %v359_v19, %v354_v18  ;;  %331 = vst.msk [vmem:[#allocation3] sm:$0xff] %vm326_vm2, %v979_v41  ;;  %v1090_v44 = vld [vmem:[#allocation2] sm:$0xff]  ;;  %v593_v61 = vsel %vm591_vm6, %v584_v60, 0  ;;  %v586_v0 = vld [vmem:[%s313_s5 + $0x8] sm:$0xf] }
  0x16   : > { %vm1055_vm5 = vmor %vm352_vm3, %vm362_vm4  ;;  %332 = vst.msk [vmem:[#allocation3 + $0x8] sm:$0xff] %vm326_vm2, %v979_v41  ;;  %v585_v62 = vld [vmem:[%s313_s5 + $0x4] sm:$0xf]  ;;  %v631_v1 = vsel %vm591_vm6, %v586_v0, 0 }
  0x17   : > { %333 = vst.msk [vmem:[#allocation3 + $0x10] sm:$0xff] %vm326_vm2, %v979_v41  ;;  %v612_v63 = vsel %vm591_vm6, %v585_v62, 0 }
  0x18   : > { %884 = vmatmul.msk.bf16.vlgmr.msra.gmra.mxu1 %vm335_vm0, %v365_v8  ;;  %885 = vmatmul.msk.bf16.vlgmr.msra.gmra.mxu2 %vm335_vm0, %v366_v9  ;;  %336 = vst.msk [vmem:[#allocation4] sm:$0xff] %vm335_vm0, %v979_v41 }
  0x19   : > { %886 = vmatmul.msk.bf16.vlgmr.msra.gmra.mxu3 %vm335_vm0, %v367_v10  ;;  %883 = vmatmul.msk.bf16.vlgmr.msra.gmra.mxu0 %vm335_vm0, %v364_v11  ;;  %337 = vst.msk [vmem:[#allocation4 + $0x8] sm:$0xff] %vm335_vm0, %v979_v41  ;;  %v1103_v49 = vld [vmem:[#allocation2 + $0x10] sm:$0xff] }
  0x1a   : > { %338 = vst.msk [vmem:[#allocation4 + $0x10] sm:$0xff] %vm335_vm0, %v979_v41  ;;  %v462_v54 = vld [vmem:[#allocation2 + $0x18] sm:$0xff]  ;;  %659 = vmatpush.bf16.msrb.mxu3 %v650_v59  ;;  %602 = vmatpush.bf16.msrb.mxu0 %v593_v61 }
  0x1b   : > { %339 = vst.msk [vmem:[#allocation4 + $0x18] sm:$0xff] %vm335_vm0, %v979_v41  ;;  %621 = vmatpush.bf16.msrb.mxu1 %v612_v63  ;;  %640 = vmatpush.bf16.msrb.mxu2 %v631_v1 }
  0x1e   : > { %v525_v41 = vld [vmem:[#allocation3 + $0x10] sm:$0xff] }
  0x20   : > { %v553_v58 = vld [vmem:[#allocation4 + $0x8] sm:$0xff] }
  0x95   : > { %v407_v20 = vpop.f32.mrf.mxu1 }
  0x96   : > { %v450_v22 = vmul.f32 0.35355338, %v407_v20  ;;  %v388_v23 = vpop.f32.mrf.mxu0 }
  0x97   : > { %v449_v25 = vmul.f32 0.35355338, %v388_v23 }
  0x98   : > { %v1061_v24 = vsel %vm1055_vm5, -10000.0, %v450_v22 }
  0x99   : > { %v466_v26 = vsel %vm335_vm0, %v1061_v24, -inf  ;;  %v1067_v27 = vsel %vm1055_vm5, -10000.0, %v449_v25 }
  0x9a   : > { %467 = vmax.xlane.f32.xlu1 %v466_v26  ;;  %v463_v29 = vsel %vm335_vm0, %v1067_v27, -inf }
  0x9b   : > { %v426_v28 = vpop.f32.mrf.mxu2  ;;  %464 = vmax.xlane.f32.xlu2 %v463_v29 }
  0x9c   : > { %v451_v30 = vmul.f32 0.35355338, %v426_v28  ;;  %v445_v31 = vpop.f32.mrf.mxu3 }
  0x9d   : > { %v409_v32 = vpop.f32.mrf.mxu1  ;;  %v452_v34 = vmul.f32 0.35355338, %v445_v31 }
  0x9e   : > { %v1073_v33 = vsel %vm1055_vm5, -10000.0, %v451_v30  ;;  %v390_v36 = vpop.f32.mrf.mxu0  ;;  %v526_v32 = vld [vmem:[#allocation3 + $0x18] sm:$0xff] }
  0x9f   : > { %v469_v35 = vsel %vm335_vm0, %v1073_v33, -inf  ;;  %v458_v37 = vsel %vm1055_vm5, -10000.0, %v452_v34 }
  0xa0   : > { %470 = vmax.xlane.f32.xlu0 %v469_v35  ;;  %v472_v40 = vsel %vm335_vm0, %v458_v37, -inf }
  0xa3   : > { %v428_v38 = vpop.f32.mrf.mxu2 }
  0xa4   : > { %v447_v39 = vpop.f32.mrf.mxu3 }
  0xa8   : > { %473 = vmax.xlane.f32.xlu0 %v472_v40 }
 0x10d   : > { %v468_v43 = vpop.xlane.xlu1 %467 }
 0x10e   : > { %v1093_v45 = vmax.f32 %v1088_v42, %v468_v43  ;;  %v465_v46 = vpop.xlane.xlu2 %464  ;;  %v523_v43 = vld [vmem:[#allocation3] sm:$0xff] }
 0x10f   : > { %v1101_v48 = vmax.f32 %v1090_v44, %v465_v46 }
 0x110   : > { %v480_v47 = vsub.f32 %v1088_v42, %v1093_v45  ;;  %674 = vst.msk [vmem:[#allocation2 + $0x8] sm:$0xff] %vm326_vm2, %v1093_v45  ;;  %498 = vperm.xlu0 %928, %v1093_v45  }
 0x111   : > { %v479_v50 = vsub.f32 %v1090_v44, %v1101_v48  ;;  %673 = vst.msk [vmem:[#allocation2] sm:$0xff] %vm326_vm2, %v1101_v48 }
 0x112   : > { %v485_v28 = vmul.f32 1.442695, %v480_v47 }
 0x113   : > { %v471_v51 = vpop.xlane.xlu0 %470  ;;  %v483_v36 = vmul.f32 1.442695, %v479_v50 }
 0x114   : > { %v1110_v52 = vmax.f32 %v1103_v49, %v471_v51 }
 0x116   : > { %v481_v53 = vsub.f32 %v1103_v49, %v1110_v52  ;;  %675 = vst.msk [vmem:[#allocation2 + $0x10] sm:$0xff] %vm326_vm2, %v1110_v52  ;;  %503 = vperm.xlu1 %926, %v1110_v52   ;;  %v555_v52 = vld [vmem:[#allocation4 + $0x18] sm:$0xff] }
 0x118   : > { %v487_v29 = vmul.f32 1.442695, %v481_v53 }
 0x11b   : > { %v474_v55 = vpop.xlane.xlu0 %473 }
 0x11c   : > { %v478_v56 = vmax.f32 %v462_v54, %v474_v55 }
 0x11e   : > { %v482_v57 = vsub.f32 %v462_v54, %v478_v56  ;;  %676 = vst.msk [vmem:[#allocation2 + $0x18] sm:$0xff] %vm326_vm2, %v478_v56  ;;  %508 = vperm.xlu2 %927, %v478_v56  }
 0x120   : > { %v489_v20 = vmul.f32 1.442695, %v482_v57 }
 0x126   : > { %493 = vperm.xlu2 %927, %v1101_v48  }
 0x178   : > { %v509_v2 = vpop.permute.xlu2 %508 }
 0x179   : > { %v514_v3 = vsub.f32 %v458_v37, %v509_v2  ;;  %v524_v37 = vld [vmem:[#allocation3 + $0x8] sm:$0xff] }
 0x17b   : > { %v521_v4 = vmul.f32 1.442695, %v514_v3 }
 0x17d   : > { %929 = vpow2.f32 %v521_v4 }
 0x180   : > { %v494_v5 = vpop.permute.xlu2 %493 }
 0x181   : > { %v511_v6 = vsub.f32 %v1067_v27, %v494_v5 }
 0x182   : > { %v499_v7 = vpop.permute.xlu0 %498 }
 0x183   : > { %v930_v8 = vpop.eup %929  ;;  %v515_v9 = vmul.f32 1.442695, %v511_v6  ;;  %v512_v10 = vsub.f32 %v1061_v24, %v499_v7 }
 0x184   : > { %v540_v11 = vsel %vm335_vm0, %v930_v8, 0.0  ;;  %v583_v12 = vpack.c.bf16 %v930_v8, %v930_v8 }
 0x185   : > { %931 = vpow2.f32 %v515_v9  ;;  %v517_v13 = vmul.f32 1.442695, %v512_v10  ;;  %541 = vadd.xlane.f32.xlu0 %v540_v11  ;;  %v554_v9 = vld [vmem:[#allocation4 + $0x10] sm:$0xff] }
 0x186   : > { %890 = vmatmul.msk.bf16.vlgmr.msrb.gmra.mxu3 %vm335_vm0, %v583_v12 }
 0x187   : > { %933 = vpow2.f32 %v517_v13 }
 0x188   : > { %v504_v14 = vpop.permute.xlu1 %503 }
 0x189   : > { %v513_v15 = vsub.f32 %v1073_v33, %v504_v14 }
 0x18b   : > { %v932_v16 = vpop.eup %931  ;;  %v519_v17 = vmul.f32 1.442695, %v513_v15 }
 0x18c   : > { %v580_v18 = vpack.c.bf16 %v932_v16, %v932_v16  ;;  %v531_v26 = vsel %vm335_vm0, %v932_v16, 0.0 }
 0x18d   : > { %v934_v19 = vpop.eup %933  ;;  %935 = vpow2.f32 %v519_v17 }
 0x18e   : > { %887 = vmatmul.msk.bf16.vlgmr.msrb.gmra.mxu0 %vm335_vm0, %v580_v18  ;;  %v534_v21 = vsel %vm335_vm0, %v934_v19, 0.0  ;;  %v581_v22 = vpack.c.bf16 %v934_v19, %v934_v19  ;;  %937 = vpow2.f32 %v489_v20 }
 0x18f   : > { %535 = vadd.xlane.f32.xlu1 %v534_v21  ;;  %939 = vpow2.f32 %v485_v28 }
 0x190   : > { %888 = vmatmul.msk.bf16.vlgmr.msrb.gmra.mxu1 %vm335_vm0, %v581_v22  ;;  %941 = vpow2.f32 %v487_v29 }
 0x191   : > { %943 = vpow2.f32 %v483_v36 }
 0x193   : > { %v936_v23 = vpop.eup %935 }
 0x194   : > { %v537_v24 = vsel %vm335_vm0, %v936_v23, 0.0  ;;  %v582_v25 = vpack.c.bf16 %v936_v23, %v936_v23  ;;  %v938_v27 = vpop.eup %937 }
 0x195   : > { %538 = vadd.xlane.f32.xlu2 %v537_v24  ;;  %v940_v30 = vpop.eup %939  ;;  %v530_v33 = vmul.f32 %v938_v27, %v526_v32 }
 0x196   : > { %889 = vmatmul.msk.bf16.vlgmr.msrb.gmra.mxu2 %vm335_vm0, %v582_v25  ;;  %v942_v31 = vpop.eup %941  ;;  %v528_v38 = vmul.f32 %v940_v30, %v524_v37 }
 0x197   : > { %532 = vadd.xlane.f32.xlu1 %v531_v26  ;;  %v944_v42 = vpop.eup %943  ;;  %v529_v45 = vmul.f32 %v942_v31, %v525_v41  ;;  %v552_v26 = vld [vmem:[#allocation4] sm:$0xff] }
 0x198   : > { %v527_v51 = vmul.f32 %v944_v42, %v523_v43 }
 0x199   : > { %573 = vperm.xlu0 %928, %v938_v27  }
 0x1ad   : > { %563 = vperm.xlu2 %927, %v940_v30  }
 0x1b0   : > { %568 = vperm.xlu1 %926, %v942_v31  }
 0x1f8   : > { %v542_v34 = vpop.xlane.xlu0 %541 }
 0x1f9   : > { %v546_v35 = vadd.f32 %v542_v34, %v530_v33 }
 0x1fb   : > { %551 = vst.msk [vmem:[#allocation3 + $0x18] sm:$0xff] %vm326_vm2, %v546_v35 }
 0x202   : > { %v536_v39 = vpop.xlane.xlu1 %535  ;;  %v683_v62 = vld [vmem:[#allocation3 + $0x18] sm:$0xff] }
 0x203   : > { %v544_v40 = vadd.f32 %v536_v39, %v528_v38 }
 0x205   : > { %549 = vst.msk [vmem:[#allocation3 + $0x8] sm:$0xff] %vm326_vm2, %v544_v40 }
 0x208   : > { %v539_v46 = vpop.xlane.xlu2 %538 }
 0x209   : > { %v545_v47 = vadd.f32 %v539_v46, %v529_v45  ;;  %v661_v49 = vpop.f32.mrf.mxu3 }
 0x20a   : > { %v533_v53 = vpop.xlane.xlu1 %532 }
 0x20b   : > { %550 = vst.msk [vmem:[#allocation3 + $0x10] sm:$0xff] %vm326_vm2, %v545_v47  ;;  %v543_v44 = vadd.f32 %v533_v53, %v527_v51  ;;  %v574_v48 = vpop.permute.xlu0 %573  ;;  %v604_v50 = vpop.f32.mrf.mxu0 }
 0x20c   : > { %v579_v54 = vmul.f32 %v574_v48, %v555_v52  ;;  %v681_v55 = vld [vmem:[#allocation3 + $0x8] sm:$0xff] }
 0x20d   : > { %548 = vst.msk [vmem:[#allocation3] sm:$0xff] %vm326_vm2, %v543_v44  ;;  %v623_v56 = vpop.f32.mrf.mxu1  ;;  %945 = vrcp.f32 %v681_v55 }
 0x20e   : > { %v668_v57 = vadd.f32 %v661_v49, %v579_v54 }
 0x210   : > { %672 = vst.msk [vmem:[#allocation4 + $0x18] sm:$0xff] %vm335_vm0, %v668_v57  ;;  %v564_v59 = vpop.permute.xlu2 %563 }
 0x211   : > { %v577_v60 = vmul.f32 %v564_v59, %v553_v58  ;;  %v663_v61 = vpop.f32.mrf.mxu3 }
 0x212   : > { %v682_v63 = vld [vmem:[#allocation3 + $0x10] sm:$0xff] }
 0x213   : > { %v946_v0 = vpop.eup %945  ;;  %v666_v1 = vadd.f32 %v623_v56, %v577_v60  ;;  %v606_v2 = vpop.f32.mrf.mxu0  ;;  %947 = vrcp.f32 %v682_v63 }
 0x214   : > { %702 = vperm.xlu2 %927, %v946_v0   ;;  %949 = vrcp.f32 %v683_v62  ;;  %v680_v3 = vld [vmem:[#allocation3] sm:$0xff] }
 0x215   : > { %670 = vst.msk [vmem:[#allocation4 + $0x8] sm:$0xff] %vm335_vm0, %v666_v1  ;;  %v625_v4 = vpop.f32.mrf.mxu1  ;;  %951 = vrcp.f32 %v680_v3 }
 0x217   : > { %v729_v18 = vld [vmem:[#allocation4 + $0x18] sm:$0xff] }
 0x219   : > { %v948_v5 = vpop.eup %947  ;;  %v642_v6 = vpop.f32.mrf.mxu2 }
 0x21a   : > { %v950_v7 = vpop.eup %949  ;;  %717 = vperm.xlu1 %926, %v948_v5  }
 0x21b   : > { %v952_v8 = vpop.eup %951 }
 0x21c   : > { %732 = vperm.xlu2 %927, %v950_v7   ;;  %691 = vperm.xlu0 %928, %v952_v8   ;;  %v699_v14 = vld [vmem:[#allocation4 + $0x8] sm:$0xff] }
 0x221   : > { %v644_v10 = vpop.f32.mrf.mxu2 }
 0x222   : > { %v569_v11 = vpop.permute.xlu1 %568  ;;  %558 = vperm.xlu1 %926, %v944_v42  }
 0x223   : > { %v578_v12 = vmul.f32 %v569_v11, %v554_v9 }
 0x225   : > { %v667_v13 = vadd.f32 %v642_v6, %v578_v12 }
 0x227   : > { %671 = vst.msk [vmem:[#allocation4 + $0x10] sm:$0xff] %vm335_vm0, %v667_v13 }
 0x22e   : > { %v714_v22 = vld [vmem:[#allocation4 + $0x10] sm:$0xff] }
 0x26e   : > { %v703_v15 = vpop.permute.xlu2 %702 }
 0x26f   : > { %v705_v16 = vmul.f32 %v703_v15, %v699_v14 }
 0x271   : > { %v706_v17 = vpack.c.bf16 %v705_v16, %v705_v16 }
 0x273   : > { %708 = vrot.lane.b32.xlu2 %v706_v17, %s980_s6 }
 0x276   : > { %v733_v19 = vpop.permute.xlu2 %732 }
 0x277   : > { %v735_v20 = vmul.f32 %v733_v19, %v729_v18 }
 0x279   : > { %v736_v21 = vpack.c.bf16 %v735_v20, %v735_v20 }
 0x27b   : > { %738 = vrot.lane.b32.xlu0 %v736_v21, %s981_s7 }
 0x28c   : > { %v718_v23 = vpop.permute.xlu1 %717 }
 0x28d   : > { %v720_v24 = vmul.f32 %v718_v23, %v714_v22 }
 0x28e   : > { %v692_v30 = vpop.permute.xlu0 %691 }
 0x28f   : > { %v721_v25 = vpack.c.bf16 %v720_v24, %v720_v24 }
 0x291   : > { %723 = vrot.lane.b32.xlu1 %v721_v25, %s982_s8 }
 0x294   : > { %v559_v27 = vpop.permute.xlu1 %558 }
 0x295   : > { %v576_v28 = vmul.f32 %v559_v27, %v552_v26 }
 0x297   : > { %v665_v29 = vadd.f32 %v604_v50, %v576_v28 }
 0x299   : > { %669 = vst.msk [vmem:[#allocation4] sm:$0xff] %vm335_vm0, %v665_v29 }
 0x2a0   : > { %v688_v31 = vld [vmem:[#allocation4] sm:$0xff] }
 0x2a1   : > { %v694_v32 = vmul.f32 %v692_v30, %v688_v31 }
 0x2a3   : > { %v695_v33 = vpack.c.bf16 %v694_v32, %v694_v32 }
 0x2a5   : > { %697 = vst.msk [vmem:[%s320_s12] sm:$0xf] %vm696_vm7, %v695_v33 }
 0x2cd   : > { %v709_v34 = vpop.permute.xlu2 %708 }
 0x2ce   : > { %712 = vst.msk [vmem:[%s320_s12] sm:$0xf] %vm711_vm8, %v709_v34 }
 0x2ed   : > { %v739_v36 = vpop.permute.xlu0 %738 }
 0x303   : > { %v724_v35 = vpop.permute.xlu1 %723 }
 0x304   : > { %727 = vst.msk [vmem:[%s320_s12] sm:$0xf] %vm726_vm9, %v724_v35 }
 0x305   : > { %742 = vst.msk [vmem:[%s320_s12] sm:$0xf] %vm741_vm10, %v739_v36 }
 0x306 PF: > { %s14_s17 = sadd.s32 1, %s975_s17   ;;  %s1171_s15 = smov %s971_s16 }
 0x307   : > { %p11_p5 = scmp.ge.s32.totalorder %s14_s17, 4   ;;  %s1172_s16 = smov %s1174_s18 }
 0x309   :  { %13 = sbr.rel (!%p11_p5) target bundleno = 2 (0x2), region = 90 }

// kernel: _lambda_.36
= control target key start
LH: loop header
LB: loop body
LE: loop exit
PB: predicated region body
PF: predicated region fallthrough
CT: control target
= control target key end

     0   :  { %vm27_vm0 = vcmask 261120   ;;  %v176_v4 = vmov 32.0   ;;  %vm93_vm6 = vcmask 257024   ;;  %s243_s0 = inlined_call_operand.vmem [shape: f32[16,32], index: 0, kind: input, shape index: {}]   ;;  %s244_s1 = inlined_call_operand.vmem [shape: f32[1,32], index: 1, kind: input, shape index: {}]   ;;  %s245_s2 = inlined_call_operand.vmem [shape: f32[1,32], index: 2, kind: input, shape index: {}]   ;;  %s246_s4 = inlined_call_operand.vmem [shape: f32[1,32], index: 4, kind: input, shape index: {}]   ;;  %s247_s3 = inlined_call_operand.vmem [shape: bf16[32,32], index: 3, kind: input, shape index: {}]   ;;  %s248_s5 = inlined_call_operand.vmem [shape: bf16[16,32], index: 5, kind: output, shape index: {}]  }
   0x1   :  { %v25_v0 = vld [vmem:[%s243_s0] sm:$0xff]  ;;  %v26_v2 = vld [vmem:[%s243_s0 + $0x8] sm:$0xff]  ;;  %170 = vrcp.f32 %v176_v4 }
   0x2   :  { %v28_v1 = vsel %vm27_vm0, %v25_v0, 0.0  ;;  %v31_v3 = vsel %vm27_vm0, %v26_v2, 0.0  ;;  %v165_v24 = vld [vmem:[%s247_s3 + $0x8] sm:$0xff]  ;;  %v164_v27 = vld [vmem:[%s247_s3] sm:$0xff] }
   0x3   :  { %29 = vadd.xlane.f32.xlu0 %v28_v1  ;;  %133 = vmatpush.bf16.msra.mxu0 %v165_v24  ;;  %v167_v37 = vld [vmem:[%s244_s1] ss:$0 sm:$0xff] }
   0x4   :  { %v168_v40 = vld [vmem:[%s245_s2] ss:$0 sm:$0xff] }
   0x5   :  { %v169_v54 = vld [vmem:[%s246_s4] ss:$0 sm:$0xff] }
   0x7   :  { %v171_v5 = vpop.eup %170  ;;  %134 = vmatpush.bf16.msra.mxu0 %v164_v27 }
   0x8   :  { %v35_v6 = vmul.f32 32.0, %v171_v5  ;;  %vm39_vm1 = vweird.f32 %v171_v5 }
   0xa   :  { %v36_v7 = vsub.f32 1.0, %v35_v6 }
   0xb   :  { %32 = vadd.xlane.f32.xlu0 %v31_v3 }
   0xc   :  { %v37_v8 = vmul.f32 %v171_v5, %v36_v7 }
   0xe   :  { %v38_v9 = vadd.f32 %v171_v5, %v37_v8 }
  0x10   :  { %v40_v10 = vsel %vm39_vm1, %v171_v5, %v38_v9 }
  0x76   :  { %v30_v11 = vpop.xlane.xlu0 %29 }
  0x77   :  { %v41_v12 = vmul.f32 %v40_v10, %v30_v11 }
  0x79   :  { %v43_v13 = vsub.f32 %v25_v0, %v41_v12 }
  0x7b   :  { %v45_v14 = vmul.f32 %v43_v13, %v43_v13 }
  0x7d   :  { %v47_v15 = vsel %vm27_vm0, %v45_v14, 0.0 }
  0x7e   :  { %48 = vadd.xlane.f32.xlu1 %v47_v15  ;;  %v33_v16 = vpop.xlane.xlu0 %32 }
  0x7f   :  { %v42_v17 = vmul.f32 %v40_v10, %v33_v16 }
  0x81   :  { %v44_v18 = vsub.f32 %v26_v2, %v42_v17 }
  0x83   :  { %v46_v19 = vmul.f32 %v44_v18, %v44_v18 }
  0x85   :  { %v50_v20 = vsel %vm27_vm0, %v46_v19, 0.0 }
  0x86   :  { %51 = vadd.xlane.f32.xlu1 %v50_v20 }
  0xf1   :  { %v49_v21 = vpop.xlane.xlu1 %48 }
  0xf2   :  { %v53_v22 = vmul.f32 %v49_v21, %v40_v10 }
  0xf4   :  { %v55_v23 = vadd.f32 1e-05, %v53_v22 }
  0xf6   :  { %172 = vrsqrt.f32 %v55_v23  ;;  %vm63_vm3 = vweird.f32 %v55_v23 }
  0xf9   :  { %v52_v25 = vpop.xlane.xlu1 %51 }
  0xfa   :  { %v54_v26 = vmul.f32 %v52_v25, %v40_v10 }
  0xfc   :  { %v173_v28 = vpop.eup %172  ;;  %v56_v29 = vadd.f32 1e-05, %v54_v26 }
  0xfd   :  { %v58_v30 = vmul.f32 %v173_v28, %v55_v23  ;;  %vm64_vm2 = vweird.f32 %v173_v28 }
  0xfe   :  { %174 = vrsqrt.f32 %v56_v29  ;;  %vm65_vm4 = vmor %vm63_vm3, %vm64_vm2  ;;  %vm73_vm7 = vweird.f32 %v56_v29 }
  0xff   :  { %v59_v31 = vmul.f32 %v173_v28, %v58_v30 }
 0x101   :  { %v60_v32 = vmul.f32 0.5, %v59_v31 }
 0x103   :  { %v61_v33 = vsub.f32 1.5, %v60_v32 }
 0x104   :  { %v175_v34 = vpop.eup %174 }
 0x105   :  { %v62_v35 = vmul.f32 %v173_v28, %v61_v33  ;;  %v68_v36 = vmul.f32 %v175_v34, %v56_v29  ;;  %vm74_vm5 = vweird.f32 %v175_v34 }
 0x106   :  { %vm75_vm8 = vmor %vm73_vm7, %vm74_vm5 }
 0x107   :  { %v66_v38 = vsel %vm65_vm4, %v173_v28, %v62_v35  ;;  %v69_v39 = vmul.f32 %v175_v34, %v68_v36 }
 0x108   :  { %v77_v41 = vmul.f32 %v66_v38, %v43_v13 }
 0x109   :  { %v70_v42 = vmul.f32 0.5, %v69_v39 }
 0x10a   :  { %v83_v43 = vmul.f32 %v167_v37, %v77_v41 }
 0x10b   :  { %v71_v44 = vsub.f32 1.5, %v70_v42 }
 0x10c   :  { %v89_v45 = vadd.f32 %v168_v40, %v83_v43 }
 0x10d   :  { %v72_v46 = vmul.f32 %v175_v34, %v71_v44 }
 0x10e   :  { %v91_v47 = vpack.c.bf16 %v89_v45, %v89_v45 }
 0x10f   :  { %v76_v48 = vsel %vm75_vm8, %v175_v34, %v72_v46 }
 0x110   :  { %94 = vst.msk [vmem:[#allocation2] sm:$0xf] %vm93_vm6, %v91_v47  ;;  %v78_v49 = vmul.f32 %v76_v48, %v44_v18 }
 0x112   :  { %v84_v50 = vmul.f32 %v167_v37, %v78_v49 }
 0x114   :  { %v90_v51 = vadd.f32 %v168_v40, %v84_v50 }
 0x116   :  { %v92_v52 = vpack.c.bf16 %v90_v51, %v90_v51 }
 0x118   :  { %95 = vst.msk [vmem:[#allocation2 + $0x4] sm:$0xf] %vm93_vm6, %v92_v52 }
 0x11f   :  { %v163_v53 = vld [vmem:[#allocation2] sm:$0xff] }
 0x120   :  { %162 = vmatmul.msk.bf16.vlgmr.msra.gmra.mxu0 %vm27_vm0, %v163_v53 }
 0x19d   :  { %v136_v55 = vpop.f32.mrf.mxu0 }
 0x19e   :  { %v137_v56 = vadd.f32 %v169_v54, %v136_v55 }
 0x1a0   :  { %v141_v57 = vpack.c.bf16 %v137_v56, %v137_v56 }
 0x1a2   :  { %144 = vst.msk [vmem:[%s248_s5] sm:$0xf] %vm93_vm6, %v141_v57 }
 0x1a5   :  { %v138_v58 = vpop.f32.mrf.mxu0 }
 0x1a6   :  { %v139_v59 = vadd.f32 %v169_v54, %v138_v58 }
 0x1a8   :  { %v142_v60 = vpack.c.bf16 %v139_v59, %v139_v59 }
 0x1aa   :  { %145 = vst.msk [vmem:[%s248_s5 + $0x4] sm:$0xf] %vm93_vm6, %v142_v60 }

// kernel: _lambda_.37
= control target key start
LH: loop header
LB: loop body
LE: loop exit
PB: predicated region body
PF: predicated region fallthrough
CT: control target
= control target key end

     0   :  { %vm23_vm0 = vcmask 523264   ;;  %vm47_vm1 = vcmask 261120   ;;  %vm77_vm2 = vcmask 519168   ;;  %s141_s1 = inlined_call_operand.vmem [shape: bf16[32,64], index: 1, kind: input, shape index: {}]   ;;  %s142_s0 = inlined_call_operand.vmem [shape: f32[16,32], index: 0, kind: input, shape index: {}]   ;;  %s143_s2 = inlined_call_operand.vmem [shape: f32[1,64], index: 2, kind: input, shape index: {}]   ;;  %s144_s3 = inlined_call_operand.vmem [shape: bf16[16,64], index: 3, kind: output, shape index: {}]  }
   0x1   :  { %v94_v0 = vld [vmem:[%s141_s1 + $0x8] sm:$0xff]  ;;  %v95_v1 = vld [vmem:[%s143_s2] ss:$0 sm:$0xff] }
   0x2   :  { %57 = vmatpush.bf16.msra.mxu0 %v94_v0  ;;  %v93_v2 = vld [vmem:[%s141_s1] sm:$0xff]  ;;  %v29_v4 = vld [vmem:[%s142_s0 + $0x8] sm:$0xff]  ;;  %24 = vst.msk [vmem:[#allocation2] sm:$0xff] %vm23_vm0, %v95_v1 }
   0x3   :  { %v28_v3 = vld [vmem:[%s142_s0] sm:$0xff]  ;;  %25 = vst.msk [vmem:[#allocation2 + $0x8] sm:$0xff] %vm23_vm0, %v95_v1 }
   0x4   :  { %v30_v5 = vpack.c.bf16 %v29_v4, %v28_v3 }
   0x6   :  { %58 = vmatpush.bf16.msra.mxu0 %v93_v2 }
   0x9   :  { %92 = vmatmul.msk.bf16.vlgmr.msra.gmra.mxu0 %vm47_vm1, %v30_v5  ;;  %v26_v6 = vld [vmem:[#allocation2] sm:$0xff] }
   0xa   :  { %v27_v9 = vld [vmem:[#allocation2 + $0x8] sm:$0xff] }
  0x86   :  { %v60_v7 = vpop.f32.mrf.mxu0 }
  0x87   :  { %v65_v8 = vadd.f32 %v60_v7, %v26_v6 }
  0x89   :  { %68 = vst.msk [vmem:[#allocation2] sm:$0xff] %vm23_vm0, %v65_v8 }
  0x8e   :  { %v62_v10 = vpop.f32.mrf.mxu0 }
  0x8f   :  { %v66_v11 = vadd.f32 %v62_v10, %v27_v9 }
  0x90   :  { %v73_v12 = vld [vmem:[#allocation2] sm:$0xff] }
  0x91   :  { %v75_v13 = vpack.c.bf16 %v73_v12, %v73_v12  ;;  %69 = vst.msk [vmem:[#allocation2 + $0x8] sm:$0xff] %vm23_vm0, %v66_v11 }
  0x93   :  { %78 = vst.msk [vmem:[%s144_s3] sm:$0xf] %vm77_vm2, %v75_v13 }
  0x98   :  { %v74_v14 = vld [vmem:[#allocation2 + $0x8] sm:$0xff] }
  0x99   :  { %v76_v15 = vpack.c.bf16 %v74_v14, %v74_v14 }
  0x9b   :  { %79 = vst.msk [vmem:[%s144_s3 + $0x4] sm:$0xf] %vm77_vm2, %v76_v15 }

// kernel: _lambda_.28
= control target key start
LH: loop header
LB: loop body
LE: loop exit
PB: predicated region body
PF: predicated region fallthrough
CT: control target
= control target key end

     0   :  { %vm33_vm0 = vcmask 261120   ;;  %v266_v7 = vmov 32.0   ;;  %vm99_vm6 = vcmask 257024   ;;  %vm192_vm9 = vcmask 523264   ;;  %s370_s0 = inlined_call_operand.vmem [shape: f32[16,32], index: 0, kind: input, shape index: {}]   ;;  %s371_s6 = inlined_call_operand.vmem [shape: f32[1,32], index: 6, kind: input, shape index: {}]   ;;  %s372_s7 = inlined_call_operand.vmem [shape: f32[16,32], index: 7, kind: output, shape index: {}]   ;;  %s373_s1 = inlined_call_operand.vmem [shape: f32[1,32], index: 1, kind: input, shape index: {}]   ;;  %s374_s2 = inlined_call_operand.vmem [shape: f32[1,32], index: 2, kind: input, shape index: {}]   ;;  %s375_s4 = inlined_call_operand.vmem [shape: f32[1,64], index: 4, kind: input, shape index: {}]   ;;  %s376_s3 = inlined_call_operand.vmem [shape: bf16[32,64], index: 3, kind: input, shape index: {}]   ;;  %s377_s5 = inlined_call_operand.vmem [shape: bf16[64,32], index: 5, kind: input, shape index: {}]  }
   0x1   :  { %v31_v0 = vld [vmem:[%s370_s0] sm:$0xff]  ;;  %v32_v3 = vld [vmem:[%s370_s0 + $0x8] sm:$0xff]  ;;  %260 = vrcp.f32 %v266_v7  ;;  %v254_v57 = vld [vmem:[%s377_s5 + $0x18] sm:$0xff] }
   0x2   :  { %v256_v1 = vld [vmem:[%s371_s6] ss:$0 sm:$0xff]  ;;  %v34_v2 = vsel %vm33_vm0, %v31_v0, 0.0  ;;  %v37_v6 = vsel %vm33_vm0, %v32_v3, 0.0  ;;  %v250_v27 = vld [vmem:[%s376_s3 + $0x8] sm:$0xff]  ;;  %200 = vmatpush.bf16.msra.mxu1 %v254_v57  ;;  %v253_v58 = vld [vmem:[%s377_s5 + $0x10] sm:$0xff] }
   0x3   :  { %v106_v4 = vadd.f32 %v256_v1, %v31_v0  ;;  %35 = vadd.xlane.f32.xlu0 %v34_v2  ;;  %v107_v5 = vadd.f32 %v256_v1, %v32_v3  ;;  %147 = vmatpush.bf16.msra.mxu0 %v250_v27  ;;  %v249_v30 = vld [vmem:[%s376_s3] sm:$0xff]  ;;  %v252_v59 = vld [vmem:[%s377_s5 + $0x8] sm:$0xff] }
   0x4   :  { %v257_v40 = vld [vmem:[%s373_s1] ss:$0 sm:$0xff] }
   0x5   :  { %108 = vst.msk [vmem:[%s372_s7] sm:$0xff] %vm33_vm0, %v106_v4  ;;  %v258_v43 = vld [vmem:[%s374_s2] ss:$0 sm:$0xff] }
   0x6   :  { %109 = vst.msk [vmem:[%s372_s7 + $0x8] sm:$0xff] %vm33_vm0, %v107_v5  ;;  %201 = vmatpush.bf16.msra.mxu1 %v253_v58  ;;  %v251_v60 = vld [vmem:[%s377_s5] sm:$0xff] }
   0x7   :  { %v261_v8 = vpop.eup %260  ;;  %148 = vmatpush.bf16.msra.mxu0 %v249_v30  ;;  %v259_v62 = vld [vmem:[%s375_s4] ss:$0 sm:$0xff] }
   0x8   :  { %v41_v9 = vmul.f32 32.0, %v261_v8  ;;  %vm45_vm1 = vweird.f32 %v261_v8 }
   0xa   :  { %v42_v10 = vsub.f32 1.0, %v41_v9  ;;  %202 = vmatpush.bf16.msra.mxu1 %v252_v59 }
   0xb   :  { %38 = vadd.xlane.f32.xlu0 %v37_v6 }
   0xc   :  { %v43_v11 = vmul.f32 %v261_v8, %v42_v10  ;;  %v157_v5 = vld [vmem:[%s372_s7] sm:$0xff] }
   0xe   :  { %v44_v12 = vadd.f32 %v261_v8, %v43_v11  ;;  %203 = vmatpush.bf16.msra.mxu1 %v251_v60 }
  0x10   :  { %v46_v13 = vsel %vm45_vm1, %v261_v8, %v44_v12  ;;  %v158_v8 = vld [vmem:[%s372_s7 + $0x8] sm:$0xff] }
  0x76   :  { %v36_v14 = vpop.xlane.xlu0 %35 }
  0x77   :  { %v47_v15 = vmul.f32 %v46_v13, %v36_v14 }
  0x79   :  { %v49_v16 = vsub.f32 %v31_v0, %v47_v15 }
  0x7b   :  { %v51_v17 = vmul.f32 %v49_v16, %v49_v16 }
  0x7d   :  { %v53_v18 = vsel %vm33_vm0, %v51_v17, 0.0 }
  0x7e   :  { %54 = vadd.xlane.f32.xlu1 %v53_v18  ;;  %v39_v19 = vpop.xlane.xlu0 %38 }
  0x7f   :  { %v48_v20 = vmul.f32 %v46_v13, %v39_v19 }
  0x81   :  { %v50_v21 = vsub.f32 %v32_v3, %v48_v20 }
  0x83   :  { %v52_v22 = vmul.f32 %v50_v21, %v50_v21 }
  0x85   :  { %v56_v23 = vsel %vm33_vm0, %v52_v22, 0.0 }
  0x86   :  { %57 = vadd.xlane.f32.xlu1 %v56_v23 }
  0xf1   :  { %v55_v24 = vpop.xlane.xlu1 %54 }
  0xf2   :  { %v59_v25 = vmul.f32 %v55_v24, %v46_v13 }
  0xf4   :  { %v61_v26 = vadd.f32 1e-05, %v59_v25 }
  0xf6   :  { %262 = vrsqrt.f32 %v61_v26  ;;  %vm69_vm3 = vweird.f32 %v61_v26 }
  0xf9   :  { %v58_v28 = vpop.xlane.xlu1 %57 }
  0xfa   :  { %v60_v29 = vmul.f32 %v58_v28, %v46_v13 }
  0xfc   :  { %v263_v31 = vpop.eup %262  ;;  %v62_v32 = vadd.f32 1e-05, %v60_v29 }
  0xfd   :  { %v64_v33 = vmul.f32 %v263_v31, %v61_v26  ;;  %vm70_vm2 = vweird.f32 %v263_v31 }
  0xfe   :  { %264 = vrsqrt.f32 %v62_v32  ;;  %vm71_vm4 = vmor %vm69_vm3, %vm70_vm2  ;;  %vm79_vm7 = vweird.f32 %v62_v32 }
  0xff   :  { %v65_v34 = vmul.f32 %v263_v31, %v64_v33 }
 0x101   :  { %v66_v35 = vmul.f32 0.5, %v65_v34 }
 0x103   :  { %v67_v36 = vsub.f32 1.5, %v66_v35 }
 0x104   :  { %v265_v37 = vpop.eup %264 }
 0x105   :  { %v68_v38 = vmul.f32 %v263_v31, %v67_v36  ;;  %v74_v39 = vmul.f32 %v265_v37, %v62_v32  ;;  %vm80_vm5 = vweird.f32 %v265_v37 }
 0x106   :  { %vm81_vm8 = vmor %vm79_vm7, %vm80_vm5 }
 0x107   :  { %v72_v41 = vsel %vm71_vm4, %v263_v31, %v68_v38  ;;  %v75_v42 = vmul.f32 %v265_v37, %v74_v39 }
 0x108   :  { %v83_v44 = vmul.f32 %v72_v41, %v49_v16 }
 0x109   :  { %v76_v45 = vmul.f32 0.5, %v75_v42 }
 0x10a   :  { %v89_v46 = vmul.f32 %v257_v40, %v83_v44 }
 0x10b   :  { %v77_v47 = vsub.f32 1.5, %v76_v45 }
 0x10c   :  { %v95_v48 = vadd.f32 %v258_v43, %v89_v46 }
 0x10d   :  { %v78_v49 = vmul.f32 %v265_v37, %v77_v47 }
 0x10e   :  { %v97_v50 = vpack.c.bf16 %v95_v48, %v95_v48 }
 0x10f   :  { %v82_v51 = vsel %vm81_vm8, %v265_v37, %v78_v49 }
 0x110   :  { %100 = vst.msk [vmem:[#allocation2] sm:$0xf] %vm99_vm6, %v97_v50  ;;  %v84_v52 = vmul.f32 %v82_v51, %v50_v21 }
 0x112   :  { %v90_v53 = vmul.f32 %v257_v40, %v84_v52 }
 0x114   :  { %v96_v54 = vadd.f32 %v258_v43, %v90_v53 }
 0x116   :  { %v98_v55 = vpack.c.bf16 %v96_v54, %v96_v54 }
 0x118   :  { %101 = vst.msk [vmem:[#allocation2 + $0x4] sm:$0xf] %vm99_vm6, %v98_v55 }
 0x11f   :  { %v248_v56 = vld [vmem:[#allocation2] sm:$0xff] }
 0x120   :  { %230 = vmatmul.msk.bf16.vlgmr.msra.gmra.mxu0 %vm33_vm0, %v248_v56 }
 0x19d   :  { %v150_v61 = vpop.f32.mrf.mxu0 }
 0x19e   :  { %v151_v63 = vadd.f32 %v259_v62, %v150_v61 }
 0x1a0   :  { %v155_v2 = vmax.f32 %v151_v63, 0.0 }
 0x1a5   :  { %v152_v0 = vpop.f32.mrf.mxu0 }
 0x1a6   :  { %v153_v1 = vadd.f32 %v259_v62, %v152_v0 }
 0x1a8   :  { %v156_v3 = vmax.f32 %v153_v1, 0.0 }
 0x1aa   :  { %v159_v4 = vpack.c.bf16 %v156_v3, %v155_v2 }
 0x1ac   :  { %247 = vmatmul.msk.bf16.vlgmr.msra.gmra.mxu1 %vm192_vm9, %v159_v4 }
 0x229   :  { %v205_v6 = vpop.f32.mrf.mxu1 }
 0x22a   :  { %v210_v7 = vadd.f32 %v205_v6, %v157_v5 }
 0x22c   :  { %212 = vst.msk [vmem:[%s372_s7] sm:$0xff] %vm33_vm0, %v210_v7 }
 0x231   :  { %v207_v9 = vpop.f32.mrf.mxu1 }
 0x232   :  { %v211_v10 = vadd.f32 %v207_v9, %v158_v8 }
 0x234   :  { %213 = vst.msk [vmem:[%s372_s7 + $0x8] sm:$0xff] %vm33_vm0, %v211_v10 }

// kernel: _lambda_.49
= control target key start
LH: loop header
LB: loop body
LE: loop exit
PB: predicated region body
PF: predicated region fallthrough
CT: control target
= control target key end

     0   :  { %vm24_vm0 = vcmask 261120   ;;  %s175_s0 = inlined_call_operand.vmem [shape: f32[16,32], index: 0, kind: input, shape index: {}]   ;;  %s176_s1 = inlined_call_operand.vmem [shape: bf16[32,32], index: 1, kind: input, shape index: {}]   ;;  %s177_s2 = inlined_call_operand.vmem [shape: f32[1,32], index: 2, kind: input, shape index: {}]   ;;  %s178_s3 = inlined_call_operand.hbm [shape: f32[16,32], index: 3, kind: output, shape index: {}]  }
   0x1   :  { %v98_v0 = vld [vmem:[%s176_s1 + $0x8] sm:$0xff]  ;;  %v97_v1 = vld [vmem:[%s176_s1] sm:$0xff] }
   0x2   :  { %v102_v2 = vld [vmem:[%s177_s2] ss:$0 sm:$0xff]  ;;  %58 = vmatpush.bf16.msra.mxu0 %v98_v0  ;;  %v30_v4 = vld [vmem:[%s175_s0 + $0x8] sm:$0xff] }
   0x3   :  { %v29_v3 = vld [vmem:[%s175_s0] sm:$0xff] }
   0x4   :  { %8 = vsyncpa [#allocation3], 0  ;;  %25 = vst.msk [vmem:[#allocation2] sm:$0xff] %vm24_vm0, %v102_v2  ;;  %v31_v5 = vpack.c.bf16 %v30_v4, %v29_v3  ;;  %s129_s1 = smov [#allocation2]   ;;  %s76_s0 = sshll.u32 %s178_s3, 4  ;;  %s77_s0 = int_to_ptr.hbm [resolvable:$true] %s76_s0 }
   0x5   :  { %26 = vst.msk [vmem:[#allocation2 + $0x8] sm:$0xff] %vm24_vm0, %v102_v2  ;;  %s74_s2 = sshll.u32 %s129_s1, 4  ;;  %s130_s24 = smov 128   ;;  %s75_s2 = int_to_ptr.vmem [resolvable:$true] %s74_s2 }
   0x6   :  { %59 = vmatpush.bf16.msra.mxu0 %v97_v1  ;;  %s131_s25 = smov 8  }
   0x9   :  { %96 = vmatmul.msk.bf16.vlgmr.msra.gmra.mxu0 %vm24_vm0, %v31_v5 }
   0xb   :  { %v27_v6 = vld [vmem:[#allocation2] sm:$0xff] }
   0xc   :  { %v28_v9 = vld [vmem:[#allocation2 + $0x8] sm:$0xff] }
  0x86   :  { %v61_v7 = vpop.f32.mrf.mxu0 }
  0x87   :  { %v66_v8 = vadd.f32 %v61_v7, %v27_v6 }
  0x89   :  { %68 = vst.msk [vmem:[#allocation2] sm:$0xff] %vm24_vm0, %v66_v8 }
  0x8e   :  { %v63_v10 = vpop.f32.mrf.mxu0 }
  0x8f   :  { %v67_v11 = vadd.f32 %v63_v10, %v28_v9 }
  0x91   :  { %69 = vst.msk [vmem:[#allocation2 + $0x8] sm:$0xff] %vm24_vm0, %v67_v11 }
  0x92   :  { %82 = dma.vmem_to_hbm [thread:$0]  %s75_s2, 256, %s77_s0, [#allocation3], %s130_s24, %s130_s24, %s131_s25  }
  0x93   :  { %127 = dma.done.wait [#allocation3], 256  }
  0x94   :  { %128 = vsyncadd [#allocation3], 4294967040 }
  0x95   :  { %87 = vsyncpa [#allocation3], 1 }

// kernel: _lambda_.26
= control target key start
LH: loop header
LB: loop body
LE: loop exit
PB: predicated region body
PF: predicated region fallthrough
CT: control target
= control target key end

     0   :  { %s987_s15 = smov 0   ;;  %s989_s16 = smov 0   ;;  %s1143_s0 = inlined_call_operand.vmem [shape: f32[2,1,8], index: 0, kind: input, shape index: {}]   ;;  %s1144_s1 = inlined_call_operand.vmem [shape: bf16[2,4,8,8], index: 1, kind: input, shape index: {}]   ;;  %s1145_s2 = inlined_call_operand.vmem [shape: bf16[2,4,8,8], index: 2, kind: input, shape index: {}]   ;;  %s1146_s3 = inlined_call_operand.vmem [shape: bf16[2,4,8,8], index: 3, kind: input, shape index: {}]   ;;  %s1147_s4 = inlined_call_operand.vmem [shape: bf16[2,8,32], index: 4, kind: output, shape index: {}]  }
   0x1   :  { %s991_s17 = smov 0  }
   0x2 LB: > { %s33_s18 = sadd.s32 1, %s950_s16  ;;  %p854_p0 = scmp.ge.s32.totalorder %s954_s17, 1  ;;  %s954_s17 = sphi %s991_s17, %s14_s17   ;;  %s950_s16 = sphi %s989_s16, %s1151_s16   ;;  %s946_s15 = sphi %s987_s15, %s1150_s15  }
   0x3   : > { %p35_p1 = scmp.ge.s32.totalorder %s33_s18, 2  ;;  %p231_p2 = scmp.lt.s32.totalorder %s954_s17, 3 }
   0x5   : > { %s1153_s18 = smov (%p35_p1, %s33_s18), 0  ;;  %p232_p3 = pnand %p854_p0, %p231_p2 }
   0x6   : > { %p284_p4 = scmp.lt.s32.totalorder (!%p232_p3), %s946_s15, 1  ;;  %s959_s6 = smov (!%p232_p3), 8  }
   0x7   : > { %235 = sbr.rel (%p232_p3) target bundleno = 774 (0x306), region = 36  ;;  %s960_s7 = smov (!%p232_p3), 24  }
   0x8   : > { %s961_s8 = smov (!%p232_p3), 16  }
   0xc   : > { %s1155_s15 = smov (!%p284_p4, %s946_s15), 1  ;;  %vm335_vm0 = vcmask 64512   ;;  %v956_v12 = vmov 0   ;;  %vm326_vm1 = vcmask 7168   ;;  %v957_v14 = vmov -inf  }
   0xd   : > { %s1008_s19 = sshll.u32 %s1155_s15, 4  ;;  %907 = vset.pattern.permute.xlu0 %v956_v12  ;;  %905 = vset.pattern.permute.xlu1 %v956_v12  ;;  %s289_s28 = scalar_lea.vmem %s1143_s0, %s1155_s15  ;;  %328 = vst.msk [vmem:[#allocation2 + $0x8] sm:$0xff] %vm326_vm1, %v957_v14  ;;  %v958_v38 = vmov 0.0   ;;  %vm570_vm4 = vcmask 1043456   ;;  %vm675_vm5 = vcmask 60416   ;;  %vm690_vm6 = vcmask 126016  }
   0xe   : > { %s305_s22 = scalar_lea.vmem %s1145_s2, %s1008_s19  ;;  %s297_s25 = scalar_lea.vmem %s1144_s1, %s1008_s19  ;;  %906 = vset.pattern.permute.xlu2 %v956_v12  ;;  %v340_v13 = vld [vmem:[%s289_s28] sm:$0x1]  ;;  %327 = vst.msk [vmem:[#allocation2] sm:$0xff] %vm326_vm1, %v957_v14  ;;  %vm705_vm7 = vcmask 191616   ;;  %vm720_vm8 = vcmask 257216  }
   0xf   : > { %v347_v0 = vld [vmem:[%s305_s22 + $0x4] sm:$0xf]  ;;  %v348_v1 = vld [vmem:[%s305_s22 + $0x8] sm:$0xf]  ;;  %v349_v4 = vld [vmem:[%s305_s22 + $0xc] sm:$0xf]  ;;  %s313_s5 = scalar_lea.vmem %s1146_s3, %s1008_s19 }
  0x10   : > { %v374_v2 = vsel %vm335_vm0, %v347_v0, 0  ;;  %v393_v3 = vsel %vm335_vm0, %v348_v1, 0  ;;  %v412_v5 = vsel %vm335_vm0, %v349_v4, 0  ;;  %v346_v6 = vld [vmem:[%s305_s22] sm:$0xf]  ;;  %vm341_vm2 = vcmp.ne.f32.partialorder %v340_v13, 0.0 }
  0x11   : > { %383 = vmatpush.bf16.xpose.msra.mxu1 %v374_v2  ;;  %402 = vmatpush.bf16.xpose.msra.mxu2 %v393_v3  ;;  %v355_v7 = vsel %vm335_vm0, %v346_v6, 0  ;;  %v343_v8 = vld [vmem:[%s297_s25 + $0x4] sm:$0xf]  ;;  %v344_v9 = vld [vmem:[%s297_s25 + $0x8] sm:$0xf]  ;;  %329 = vst.msk [vmem:[#allocation2 + $0x10] sm:$0xff] %vm326_vm1, %v957_v14 }
  0x12   : > { %421 = vmatpush.bf16.xpose.msra.mxu3 %v412_v5  ;;  %364 = vmatpush.bf16.xpose.msra.mxu0 %v355_v7  ;;  %v345_v10 = vld [vmem:[%s297_s25 + $0xc] sm:$0xf]  ;;  %v342_v11 = vld [vmem:[%s297_s25] sm:$0xf]  ;;  %330 = vst.msk [vmem:[#allocation2 + $0x18] sm:$0xff] %vm326_vm1, %v957_v14  ;;  %v431_v15 = vsel %vm341_vm2, 1, %v956_v12 }
  0x13   : > { %v432_v16 = vperm.slane %v431_v15, 0  ;;  %334 = vst.msk [vmem:[#allocation3 + $0x18] sm:$0xff] %vm326_vm1, %v958_v38  ;;  %v566_v55 = vld [vmem:[%s313_s5 + $0xc] sm:$0xf]  ;;  %v563_v57 = vld [vmem:[%s313_s5] sm:$0xf] }
  0x14   : > { %331 = vst.msk [vmem:[#allocation3] sm:$0xff] %vm326_vm1, %v958_v38  ;;  %v1067_v39 = vld [vmem:[#allocation2 + $0x8] sm:$0xff]  ;;  %v629_v56 = vsel %vm570_vm4, %v566_v55, 0  ;;  %v572_v58 = vsel %vm570_vm4, %v563_v57, 0  ;;  %v564_v59 = vld [vmem:[%s313_s5 + $0x4] sm:$0xf] }
  0x15   : > { %vm1034_vm3 = vcmp.eq.s32.totalorder %v432_v16, 1  ;;  %332 = vst.msk [vmem:[#allocation3 + $0x8] sm:$0xff] %vm326_vm1, %v958_v38  ;;  %v1069_v41 = vld [vmem:[#allocation2] sm:$0xff]  ;;  %v591_v60 = vsel %vm570_vm4, %v564_v59, 0  ;;  %v565_v61 = vld [vmem:[%s313_s5 + $0x8] sm:$0xf] }
  0x16   : > { %333 = vst.msk [vmem:[#allocation3 + $0x10] sm:$0xff] %vm326_vm1, %v958_v38  ;;  %v610_v62 = vsel %vm570_vm4, %v565_v61, 0  ;;  %s861_s9 = sshll.u32 %s1155_s15, 2 }
  0x17   : > { %336 = vst.msk [vmem:[#allocation4] sm:$0xff] %vm335_vm0, %v958_v38  ;;  %s320_s12 = scalar_lea.vmem %s1147_s4, %s861_s9 }
  0x18   : > { %863 = vmatmul.msk.bf16.vlgmr.msra.gmra.mxu1 %vm335_vm0, %v343_v8  ;;  %864 = vmatmul.msk.bf16.vlgmr.msra.gmra.mxu2 %vm335_vm0, %v344_v9  ;;  %337 = vst.msk [vmem:[#allocation4 + $0x8] sm:$0xff] %vm335_vm0, %v958_v38  ;;  %v1082_v46 = vld [vmem:[#allocation2 + $0x10] sm:$0xff] }
  0x19   : > { %865 = vmatmul.msk.bf16.vlgmr.msra.gmra.mxu3 %vm335_vm0, %v345_v10  ;;  %862 = vmatmul.msk.bf16.vlgmr.msra.gmra.mxu0 %vm335_vm0, %v342_v11  ;;  %338 = vst.msk [vmem:[#allocation4 + $0x10] sm:$0xff] %vm335_vm0, %v958_v38  ;;  %v441_v51 = vld [vmem:[#allocation2 + $0x18] sm:$0xff] }
  0x1a   : > { %339 = vst.msk [vmem:[#allocation4 + $0x18] sm:$0xff] %vm335_vm0, %v958_v38  ;;  %638 = vmatpush.bf16.msrb.mxu3 %v629_v56  ;;  %581 = vmatpush.bf16.msrb.mxu0 %v572_v58 }
  0x1b   : > { %600 = vmatpush.bf16.msrb.mxu1 %v591_v60  ;;  %619 = vmatpush.bf16.msrb.mxu2 %v610_v62 }
  0x1d   : > { %v504_v38 = vld [vmem:[#allocation3 + $0x10] sm:$0xff] }
  0x1f   : > { %v532_v55 = vld [vmem:[#allocation4 + $0x8] sm:$0xff] }
  0x95   : > { %v385_v17 = vpop.f32.mrf.mxu1 }
  0x96   : > { %v428_v19 = vmul.f32 0.35355338, %v385_v17  ;;  %v366_v20 = vpop.f32.mrf.mxu0 }
  0x97   : > { %v427_v22 = vmul.f32 0.35355338, %v366_v20 }
  0x98   : > { %v1040_v21 = vsel %vm1034_vm3, -10000.0, %v428_v19 }
  0x99   : > { %v445_v23 = vsel %vm335_vm0, %v1040_v21, -inf  ;;  %v1046_v24 = vsel %vm1034_vm3, -10000.0, %v427_v22 }
  0x9a   : > { %446 = vmax.xlane.f32.xlu1 %v445_v23  ;;  %v442_v26 = vsel %vm335_vm0, %v1046_v24, -inf }
  0x9b   : > { %v404_v25 = vpop.f32.mrf.mxu2  ;;  %443 = vmax.xlane.f32.xlu2 %v442_v26 }
  0x9c   : > { %v429_v27 = vmul.f32 0.35355338, %v404_v25  ;;  %v423_v28 = vpop.f32.mrf.mxu3 }
  0x9d   : > { %v387_v29 = vpop.f32.mrf.mxu1  ;;  %v430_v31 = vmul.f32 0.35355338, %v423_v28 }
  0x9e   : > { %v1052_v30 = vsel %vm1034_vm3, -10000.0, %v429_v27  ;;  %v368_v33 = vpop.f32.mrf.mxu0  ;;  %v505_v29 = vld [vmem:[#allocation3 + $0x18] sm:$0xff] }
  0x9f   : > { %v448_v32 = vsel %vm335_vm0, %v1052_v30, -inf  ;;  %v437_v34 = vsel %vm1034_vm3, -10000.0, %v430_v31 }
  0xa0   : > { %449 = vmax.xlane.f32.xlu0 %v448_v32  ;;  %v451_v37 = vsel %vm335_vm0, %v437_v34, -inf }
  0xa3   : > { %v406_v35 = vpop.f32.mrf.mxu2 }
  0xa4   : > { %v425_v36 = vpop.f32.mrf.mxu3 }
  0xa8   : > { %452 = vmax.xlane.f32.xlu0 %v451_v37 }
 0x10d   : > { %v447_v40 = vpop.xlane.xlu1 %446 }
 0x10e   : > { %v1072_v42 = vmax.f32 %v1067_v39, %v447_v40  ;;  %v444_v43 = vpop.xlane.xlu2 %443  ;;  %v502_v40 = vld [vmem:[#allocation3] sm:$0xff] }
 0x10f   : > { %v1080_v45 = vmax.f32 %v1069_v41, %v444_v43 }
 0x110   : > { %v459_v44 = vsub.f32 %v1067_v39, %v1072_v42  ;;  %653 = vst.msk [vmem:[#allocation2 + $0x8] sm:$0xff] %vm326_vm1, %v1072_v42  ;;  %477 = vperm.xlu0 %907, %v1072_v42  }
 0x111   : > { %v458_v47 = vsub.f32 %v1069_v41, %v1080_v45  ;;  %652 = vst.msk [vmem:[#allocation2] sm:$0xff] %vm326_vm1, %v1080_v45 }
 0x112   : > { %v464_v25 = vmul.f32 1.442695, %v459_v44 }
 0x113   : > { %v450_v48 = vpop.xlane.xlu0 %449  ;;  %v462_v33 = vmul.f32 1.442695, %v458_v47 }
 0x114   : > { %v1089_v49 = vmax.f32 %v1082_v46, %v450_v48 }
 0x116   : > { %v460_v50 = vsub.f32 %v1082_v46, %v1089_v49  ;;  %654 = vst.msk [vmem:[#allocation2 + $0x10] sm:$0xff] %vm326_vm1, %v1089_v49  ;;  %482 = vperm.xlu1 %905, %v1089_v49   ;;  %v534_v49 = vld [vmem:[#allocation4 + $0x18] sm:$0xff] }
 0x118   : > { %v466_v26 = vmul.f32 1.442695, %v460_v50 }
 0x11b   : > { %v453_v52 = vpop.xlane.xlu0 %452 }
 0x11c   : > { %v457_v53 = vmax.f32 %v441_v51, %v453_v52 }
 0x11e   : > { %v461_v54 = vsub.f32 %v441_v51, %v457_v53  ;;  %655 = vst.msk [vmem:[#allocation2 + $0x18] sm:$0xff] %vm326_vm1, %v457_v53  ;;  %487 = vperm.xlu2 %906, %v457_v53  }
 0x120   : > { %v468_v17 = vmul.f32 1.442695, %v461_v54 }
 0x126   : > { %472 = vperm.xlu2 %906, %v1080_v45  }
 0x178   : > { %v488_v63 = vpop.permute.xlu2 %487 }
 0x179   : > { %v493_v0 = vsub.f32 %v437_v34, %v488_v63  ;;  %v503_v34 = vld [vmem:[#allocation3 + $0x8] sm:$0xff] }
 0x17b   : > { %v500_v1 = vmul.f32 1.442695, %v493_v0 }
 0x17d   : > { %908 = vpow2.f32 %v500_v1 }
 0x180   : > { %v473_v2 = vpop.permute.xlu2 %472 }
 0x181   : > { %v490_v3 = vsub.f32 %v1046_v24, %v473_v2 }
 0x182   : > { %v478_v4 = vpop.permute.xlu0 %477 }
 0x183   : > { %v909_v5 = vpop.eup %908  ;;  %v494_v6 = vmul.f32 1.442695, %v490_v3  ;;  %v491_v7 = vsub.f32 %v1040_v21, %v478_v4 }
 0x184   : > { %v519_v8 = vsel %vm335_vm0, %v909_v5, 0.0  ;;  %v562_v9 = vpack.c.bf16 %v909_v5, %v909_v5 }
 0x185   : > { %910 = vpow2.f32 %v494_v6  ;;  %v496_v10 = vmul.f32 1.442695, %v491_v7  ;;  %520 = vadd.xlane.f32.xlu0 %v519_v8  ;;  %v533_v6 = vld [vmem:[#allocation4 + $0x10] sm:$0xff] }
 0x186   : > { %869 = vmatmul.msk.bf16.vlgmr.msrb.gmra.mxu3 %vm335_vm0, %v562_v9 }
 0x187   : > { %912 = vpow2.f32 %v496_v10 }
 0x188   : > { %v483_v11 = vpop.permute.xlu1 %482 }
 0x189   : > { %v492_v12 = vsub.f32 %v1052_v30, %v483_v11 }
 0x18b   : > { %v911_v13 = vpop.eup %910  ;;  %v498_v14 = vmul.f32 1.442695, %v492_v12 }
 0x18c   : > { %v559_v15 = vpack.c.bf16 %v911_v13, %v911_v13  ;;  %v510_v23 = vsel %vm335_vm0, %v911_v13, 0.0 }
 0x18d   : > { %v913_v16 = vpop.eup %912  ;;  %914 = vpow2.f32 %v498_v14 }
 0x18e   : > { %866 = vmatmul.msk.bf16.vlgmr.msrb.gmra.mxu0 %vm335_vm0, %v559_v15  ;;  %v513_v18 = vsel %vm335_vm0, %v913_v16, 0.0  ;;  %v560_v19 = vpack.c.bf16 %v913_v16, %v913_v16  ;;  %916 = vpow2.f32 %v468_v17 }
 0x18f   : > { %514 = vadd.xlane.f32.xlu1 %v513_v18  ;;  %918 = vpow2.f32 %v464_v25 }
 0x190   : > { %867 = vmatmul.msk.bf16.vlgmr.msrb.gmra.mxu1 %vm335_vm0, %v560_v19  ;;  %920 = vpow2.f32 %v466_v26 }
 0x191   : > { %922 = vpow2.f32 %v462_v33 }
 0x193   : > { %v915_v20 = vpop.eup %914 }
 0x194   : > { %v516_v21 = vsel %vm335_vm0, %v915_v20, 0.0  ;;  %v561_v22 = vpack.c.bf16 %v915_v20, %v915_v20  ;;  %v917_v24 = vpop.eup %916 }
 0x195   : > { %517 = vadd.xlane.f32.xlu2 %v516_v21  ;;  %v919_v27 = vpop.eup %918  ;;  %v509_v30 = vmul.f32 %v917_v24, %v505_v29 }
 0x196   : > { %868 = vmatmul.msk.bf16.vlgmr.msrb.gmra.mxu2 %vm335_vm0, %v561_v22  ;;  %v921_v28 = vpop.eup %920  ;;  %v507_v35 = vmul.f32 %v919_v27, %v503_v34 }
 0x197   : > { %511 = vadd.xlane.f32.xlu1 %v510_v23  ;;  %v923_v39 = vpop.eup %922  ;;  %v508_v42 = vmul.f32 %v921_v28, %v504_v38  ;;  %v531_v23 = vld [vmem:[#allocation4] sm:$0xff] }
 0x198   : > { %v506_v48 = vmul.f32 %v923_v39, %v502_v40 }
 0x199   : > { %552 = vperm.xlu0 %907, %v917_v24  }
 0x1ad   : > { %542 = vperm.xlu2 %906, %v919_v27  }
 0x1b0   : > { %547 = vperm.xlu1 %905, %v921_v28  }
 0x1f8   : > { %v521_v31 = vpop.xlane.xlu0 %520 }
 0x1f9   : > { %v525_v32 = vadd.f32 %v521_v31, %v509_v30 }
 0x1fb   : > { %530 = vst.msk [vmem:[#allocation3 + $0x18] sm:$0xff] %vm326_vm1, %v525_v32 }
 0x202   : > { %v515_v36 = vpop.xlane.xlu1 %514  ;;  %v662_v59 = vld [vmem:[#allocation3 + $0x18] sm:$0xff] }
 0x203   : > { %v523_v37 = vadd.f32 %v515_v36, %v507_v35 }
 0x205   : > { %528 = vst.msk [vmem:[#allocation3 + $0x8] sm:$0xff] %vm326_vm1, %v523_v37 }
 0x208   : > { %v518_v43 = vpop.xlane.xlu2 %517 }
 0x209   : > { %v524_v44 = vadd.f32 %v518_v43, %v508_v42  ;;  %v640_v46 = vpop.f32.mrf.mxu3 }
 0x20a   : > { %v512_v50 = vpop.xlane.xlu1 %511 }
 0x20b   : > { %529 = vst.msk [vmem:[#allocation3 + $0x10] sm:$0xff] %vm326_vm1, %v524_v44  ;;  %v522_v41 = vadd.f32 %v512_v50, %v506_v48  ;;  %v553_v45 = vpop.permute.xlu0 %552  ;;  %v583_v47 = vpop.f32.mrf.mxu0 }
 0x20c   : > { %v558_v51 = vmul.f32 %v553_v45, %v534_v49  ;;  %v660_v52 = vld [vmem:[#allocation3 + $0x8] sm:$0xff] }
 0x20d   : > { %527 = vst.msk [vmem:[#allocation3] sm:$0xff] %vm326_vm1, %v522_v41  ;;  %v602_v53 = vpop.f32.mrf.mxu1  ;;  %924 = vrcp.f32 %v660_v52 }
 0x20e   : > { %v647_v54 = vadd.f32 %v640_v46, %v558_v51 }
 0x210   : > { %651 = vst.msk [vmem:[#allocation4 + $0x18] sm:$0xff] %vm335_vm0, %v647_v54  ;;  %v543_v56 = vpop.permute.xlu2 %542 }
 0x211   : > { %v556_v57 = vmul.f32 %v543_v56, %v532_v55  ;;  %v642_v58 = vpop.f32.mrf.mxu3 }
 0x212   : > { %v661_v60 = vld [vmem:[#allocation3 + $0x10] sm:$0xff] }
 0x213   : > { %v925_v61 = vpop.eup %924  ;;  %v645_v62 = vadd.f32 %v602_v53, %v556_v57  ;;  %v585_v63 = vpop.f32.mrf.mxu0  ;;  %926 = vrcp.f32 %v661_v60 }
 0x214   : > { %681 = vperm.xlu2 %906, %v925_v61   ;;  %928 = vrcp.f32 %v662_v59  ;;  %v659_v0 = vld [vmem:[#allocation3] sm:$0xff] }
 0x215   : > { %649 = vst.msk [vmem:[#allocation4 + $0x8] sm:$0xff] %vm335_vm0, %v645_v62  ;;  %v604_v1 = vpop.f32.mrf.mxu1  ;;  %930 = vrcp.f32 %v659_v0 }
 0x217   : > { %v708_v15 = vld [vmem:[#allocation4 + $0x18] sm:$0xff] }
 0x219   : > { %v927_v2 = vpop.eup %926  ;;  %v621_v3 = vpop.f32.mrf.mxu2 }
 0x21a   : > { %v929_v4 = vpop.eup %928  ;;  %696 = vperm.xlu1 %905, %v927_v2  }
 0x21b   : > { %v931_v5 = vpop.eup %930 }
 0x21c   : > { %711 = vperm.xlu2 %906, %v929_v4   ;;  %670 = vperm.xlu0 %907, %v931_v5   ;;  %v678_v11 = vld [vmem:[#allocation4 + $0x8] sm:$0xff] }
 0x221   : > { %v623_v7 = vpop.f32.mrf.mxu2 }
 0x222   : > { %v548_v8 = vpop.permute.xlu1 %547  ;;  %537 = vperm.xlu1 %905, %v923_v39  }
 0x223   : > { %v557_v9 = vmul.f32 %v548_v8, %v533_v6 }
 0x225   : > { %v646_v10 = vadd.f32 %v621_v3, %v557_v9 }
 0x227   : > { %650 = vst.msk [vmem:[#allocation4 + $0x10] sm:$0xff] %vm335_vm0, %v646_v10 }
 0x22e   : > { %v693_v19 = vld [vmem:[#allocation4 + $0x10] sm:$0xff] }
 0x26e   : > { %v682_v12 = vpop.permute.xlu2 %681 }
 0x26f   : > { %v684_v13 = vmul.f32 %v682_v12, %v678_v11 }
 0x271   : > { %v685_v14 = vpack.c.bf16 %v684_v13, %v684_v13 }
 0x273   : > { %687 = vrot.lane.b32.xlu2 %v685_v14, %s959_s6 }
 0x276   : > { %v712_v16 = vpop.permute.xlu2 %711 }
 0x277   : > { %v714_v17 = vmul.f32 %v712_v16, %v708_v15 }
 0x279   : > { %v715_v18 = vpack.c.bf16 %v714_v17, %v714_v17 }
 0x27b   : > { %717 = vrot.lane.b32.xlu0 %v715_v18, %s960_s7 }
 0x28c   : > { %v697_v20 = vpop.permute.xlu1 %696 }
 0x28d   : > { %v699_v21 = vmul.f32 %v697_v20, %v693_v19 }
 0x28e   : > { %v671_v27 = vpop.permute.xlu0 %670 }
 0x28f   : > { %v700_v22 = vpack.c.bf16 %v699_v21, %v699_v21 }
 0x291   : > { %702 = vrot.lane.b32.xlu1 %v700_v22, %s961_s8 }
 0x294   : > { %v538_v24 = vpop.permute.xlu1 %537 }
 0x295   : > { %v555_v25 = vmul.f32 %v538_v24, %v531_v23 }
 0x297   : > { %v644_v26 = vadd.f32 %v583_v47, %v555_v25 }
 0x299   : > { %648 = vst.msk [vmem:[#allocation4] sm:$0xff] %vm335_vm0, %v644_v26 }
 0x2a0   : > { %v667_v28 = vld [vmem:[#allocation4] sm:$0xff] }
 0x2a1   : > { %v673_v29 = vmul.f32 %v671_v27, %v667_v28 }
 0x2a3   : > { %v674_v30 = vpack.c.bf16 %v673_v29, %v673_v29 }
 0x2a5   : > { %676 = vst.msk [vmem:[%s320_s12] sm:$0xf] %vm675_vm5, %v674_v30 }
 0x2cd   : > { %v688_v31 = vpop.permute.xlu2 %687 }
 0x2ce   : > { %691 = vst.msk [vmem:[%s320_s12] sm:$0xf] %vm690_vm6, %v688_v31 }
 0x2ed   : > { %v718_v33 = vpop.permute.xlu0 %717 }
 0x303   : > { %v703_v32 = vpop.permute.xlu1 %702 }
 0x304   : > { %706 = vst.msk [vmem:[%s320_s12] sm:$0xf] %vm705_vm7, %v703_v32 }
 0x305   : > { %721 = vst.msk [vmem:[%s320_s12] sm:$0xf] %vm720_vm8, %v718_v33 }
 0x306 PF: > { %s14_s17 = sadd.s32 1, %s954_s17   ;;  %s1150_s15 = smov %s950_s16 }
 0x307   : > { %p11_p5 = scmp.ge.s32.totalorder %s14_s17, 4   ;;  %s1151_s16 = smov %s1153_s18 }
 0x309   :  { %13 = sbr.rel (!%p11_p5) target bundleno = 2 (0x2), region = 86 }

</bundles_post_ra>
